<compile_context>
chip_gen: v6e
topology: v6e:2x2x1
jax: 0.10.0
libtpu: 0.0.40
codegen_flags: <defaults>
</compile_context>

<pallas_src>
import jax
import jax.numpy as jnp
from jax import lax
from jax.experimental import pallas as pl
from jax.experimental.pallas import tpu as pltpu


# ----------------------------- fused Pallas kernel -------------------------------

def fused_cnn_kernel(p1_ref, w1_ref, b1_ref, w2_ref, b2_ref,
                     fc1w_ref, fc1b_ref, fc2w_ref, fc2b_ref,
                     fc3w_ref, fc3b_ref, o_ref):
    """Whole CNN forward for ONE image (one grid step).

    p1_ref  : (1, 2304, 25) stage-1 im2col patches, rows ordered (q1, u, v, ph, pw) where
              q1 = stage-1 2x2 pool slot, (u, v) in [0,6)^2 = conv2 tap-base block,
              (ph, pw) in [0,4)^2 = final pooled pixel.  Row (q1,u,v,ph,pw) holds the 25
              conv1 taps for conv1-output position (2*(u+2ph)+wi1, 2*(v+2pw)+wj1).
    w1_ref  : (25, 8)        conv1 weight, rows = (i1, j1) taps (HWIO-flattened)
    w2_ref  : (25, 8, 16)    conv2 weight, [tap, cin, cout]
    fc1w_ref: (16, 16, 128)  FC1 weight regrouped as [spatial s, cin c, out]  (CHW flatten)
    fc3w_ref / fc3b_ref: lane-padded to 128 (cols 10.. are zero)
    o_ref   : (1, 1, 128)    lane-padded logits
    """
    # ---- stage 1: conv1 as ONE im2col matmul + bias + ReLU + 2x2 max-pool ----
    z1 = jnp.dot(p1_ref[0], w1_ref[...], preferred_element_type=jnp.float32)
    z1 = jnp.maximum(z1 + b1_ref[...], 0.0)                     # (2304, 8)
    m1 = 576                                                    # rows per pool-window slot
    a1 = jnp.maximum(jnp.maximum(z1[0 * m1:1 * m1], z1[1 * m1:2 * m1]),
                     jnp.maximum(z1[2 * m1:3 * m1], z1[3 * m1:4 * m1]))  # (576, 8)

    # ---- stage 2: conv2 via 25-tap MXU accumulation + bias + ReLU + 2x2 max-pool ----
    zt = jnp.zeros((32, 16), jnp.float32)   # pool slots (0,0),(0,1): rows (wj, ph, pw)
    zb = jnp.zeros((32, 16), jnp.float32)   # pool slots (1,0),(1,1)
    for i in range(5):
        for j in range(5):
            wt = w2_ref[i * 5 + j]                                       # (8, 16)
            top = a1[(i * 6 + j) * 16:(i * 6 + j + 2) * 16]              # blocks (i,j),(i,j+1)
            bot = a1[((i + 1) * 6 + j) * 16:((i + 1) * 6 + j + 2) * 16]  # blocks (i+1,j),(i+1,j+1)
            zt = zt + jnp.dot(top, wt, preferred_element_type=jnp.float32)
            zb = zb + jnp.dot(bot, wt, preferred_element_type=jnp.float32)
    zt = jnp.maximum(zt + b2_ref[...], 0.0)
    zb = jnp.maximum(zb + b2_ref[...], 0.0)
    y2 = jnp.maximum(jnp.maximum(zt[:16], zt[16:]),
                     jnp.maximum(zb[:16], zb[16:]))              # (16, 16): rows s=(ph,pw)

    # ---- MLP: FC1 (spatial-blocked == PyTorch CHW flatten) -> ReLU -> FC2 -> ReLU -> FC3 ----
    h = jnp.zeros((1, 128), jnp.float32)
    for s in range(16):
        h = h + jnp.dot(y2[s:s + 1, :], fc1w_ref[s],
                        preferred_element_type=jnp.float32)
    h = jnp.maximum(h + fc1b_ref[...], 0.0)                      # (1, 128)
    h = jnp.maximum(jnp.dot(h, fc2w_ref[...], preferred_element_type=jnp.float32)
                    + fc2b_ref[...], 0.0)                        # (1, 64)
    out = jnp.dot(h, fc3w_ref[...], preferred_element_type=jnp.float32) + fc3b_ref[...]
    o_ref[0] = out.astype(o_ref.dtype)                           # (1, 128), lane-dense store


# ------------------------------- JAX glue / wrapper ------------------------------

def _stage1_patches(x_img):
    """(B, 28, 28) -> (B, 2304, 25) window-major, block-duplicated conv1 im2col patches."""
    B = x_img.shape[0]
    # conv1 im2col, feature order (i1, j1): (B, 24, 24, 25)
    cols = [x_img[:, i:i + 24, j:j + 24] for i in range(5) for j in range(5)]
    patches = jnp.stack(cols, axis=-1)
    # group by conv1 2x2 pool window: (B, wi1, wj1, y1, x1, 25) -> (B, 4, 12, 12, 25)
    p = patches.reshape(B, 12, 2, 12, 2, 25).transpose(0, 2, 4, 1, 3, 5)
    p = p.reshape(B, 4, 12, 12, 25)
    # duplicate into the 6x6 conv2 tap-base blocks: row order (q1, u, v, ph, pw)
    blocks = [p[:, :, 2 * ph:2 * ph + 6, 2 * pw:2 * pw + 6, :]
              for ph in range(4) for pw in range(4)]             # each (B, 4, 6, 6, 25)
    p = jnp.stack(blocks, axis=4)                                # (B, 4, 6, 6, 16, 25)
    return p.reshape(B, 4 * 6 * 6 * 16, 25)


def cnn_forward(x_nchw, params):
    B = x_nchw.shape[0]
    x_img = x_nchw[:, 0, :, :]                                   # (B, 28, 28), in_channels=1
    p1 = _stage1_patches(x_img)                                  # (B, 2304, 25)

    w1f = params["w1"].reshape(25, 8)
    b1 = params["b1"].reshape(1, 8)
    w2r = params["w2"].reshape(25, 8, 16)
    b2 = params["b2"].reshape(1, 16)
    fc1w_s = params["fc1_w"].reshape(16, 16, 128).transpose(1, 0, 2)   # [s, c, out]
    fc1b = params["fc1_b"].reshape(1, 128)
    fc2w = params["fc2_w"]
    fc2b = params["fc2_b"].reshape(1, 64)
    fc3w_p = jnp.zeros((64, 128), jnp.float32).at[:, :10].set(params["fc3_w"])
    fc3b_p = jnp.zeros((1, 128), jnp.float32).at[0, :10].set(params["fc3_b"])

    flops = B * (2 * 2304 * 25 * 8 + 50 * 2 * 32 * 8 * 16
                 + 16 * 2 * 16 * 128 + 2 * 128 * 64 + 2 * 64 * 128)
    bytes_accessed = 4 * int(p1.size + w1f.size + b1.size + w2r.size + b2.size
                             + fc1w_s.size + fc1b.size + fc2w.size + fc2b.size
                             + fc3w_p.size + fc3b_p.size + B * 128)

    out = pl.pallas_call(
        fused_cnn_kernel,
        out_shape=jax.ShapeDtypeStruct((B, 1, 128), jnp.float32),
        grid=(B,),
        in_specs=[
            pl.BlockSpec((1, 2304, 25), lambda b: (b, 0, 0)),
            pl.BlockSpec((25, 8), lambda b: (0, 0)),
            pl.BlockSpec((1, 8), lambda b: (0, 0)),
            pl.BlockSpec((25, 8, 16), lambda b: (0, 0, 0)),
            pl.BlockSpec((1, 16), lambda b: (0, 0)),
            pl.BlockSpec((16, 16, 128), lambda b: (0, 0, 0)),
            pl.BlockSpec((1, 128), lambda b: (0, 0)),
            pl.BlockSpec((128, 64), lambda b: (0, 0)),
            pl.BlockSpec((1, 64), lambda b: (0, 0)),
            pl.BlockSpec((64, 128), lambda b: (0, 0)),
            pl.BlockSpec((1, 128), lambda b: (0, 0)),
        ],
        out_specs=pl.BlockSpec((1, 1, 128), lambda b: (b, 0, 0)),
        compiler_params=pltpu.CompilerParams(dimension_semantics=("parallel",)),
        cost_estimate=pl.CostEstimate(flops=flops, transcendentals=0,
                                      bytes_accessed=bytes_accessed),
    )(p1, w1f, b1, w2r, b2, fc1w_s, fc1b, fc2w, fc2b, fc3w_p, fc3b_p)
    return out[:, 0, :10]


def cnn_forward_ref(x_nchw, params):
    """Pure-JAX reference (same math, plain XLA ops) for correctness checking."""
    x = jnp.transpose(x_nchw, (0, 2, 3, 1))
    dn = ("NHWC", "HWIO", "NHWC")
    y = lax.conv_general_dilated(x, params["w1"], (1, 1), "VALID",
                                 dimension_numbers=dn) + params["b1"]
    y = jnp.maximum(y, 0.0)
    y = lax.reduce_window(y, -jnp.inf, lax.max, (1, 2, 2, 1), (1, 2, 2, 1), "VALID")
    y = lax.conv_general_dilated(y, params["w2"], (1, 1), "VALID",
                                 dimension_numbers=dn) + params["b2"]
    y = jnp.maximum(y, 0.0)
    y = lax.reduce_window(y, -jnp.inf, lax.max, (1, 2, 2, 1), (1, 2, 2, 1), "VALID")
    B = x.shape[0]
    flat = jnp.transpose(y, (0, 3, 1, 2)).reshape(B, -1)          # PyTorch (C, H, W) flatten
    h = jnp.maximum(flat @ params["fc1_w"] + params["fc1_b"], 0.0)
    h = jnp.maximum(h @ params["fc2_w"] + params["fc2_b"], 0.0)
    return h @ params["fc3_w"] + params["fc3_b"]


def init_params(key):
    ks = jax.random.split(key, 10)
    return {
        "w1": jax.random.normal(ks[0], (5, 5, 1, 8), jnp.float32) * 0.1,    # HWIO
        "b1": jax.random.normal(ks[1], (8,), jnp.float32) * 0.1,
        "w2": jax.random.normal(ks[2], (5, 5, 8, 16), jnp.float32) * 0.05,  # HWIO
        "b2": jax.random.normal(ks[3], (16,), jnp.float32) * 0.1,
        "fc1_w": jax.random.normal(ks[4], (256, 128), jnp.float32) * 0.05,
        "fc1_b": jax.random.normal(ks[5], (128,), jnp.float32) * 0.1,
        "fc2_w": jax.random.normal(ks[6], (128, 64), jnp.float32) * 0.05,
        "fc2_b": jax.random.normal(ks[7], (64,), jnp.float32) * 0.1,
        "fc3_w": jax.random.normal(ks[8], (64, 10), jnp.float32) * 0.05,
        "fc3_b": jax.random.normal(ks[9], (10,), jnp.float32) * 0.1,
    }


if __name__ == "__main__":
    key = jax.random.PRNGKey(0)
    pkey, xkey = jax.random.split(key)
    params = init_params(pkey)
    # FC_01 input size (16*4*4) fixes the input to 28x28 with in_channels=1.
    x = jax.random.normal(xkey, (2, 1, 28, 28), jnp.float32)

    fwd = jax.jit(cnn_forward)
    out = jax.block_until_ready(fwd(x, params))                  # (2, 10)
    ref = jax.block_until_ready(cnn_forward_ref(x, params))

    assert out.shape == (2, 10), out.shape
    err = float(jnp.max(jnp.abs(out - ref)))
    assert jnp.allclose(out, ref, atol=2e-4, rtol=2e-4), err
    print("KERNEL_OK")
</pallas_src>

<mosaic_0001>
module attributes {stable_mosaic.version = 11 : i64} {
  func.func @fused_cnn_kernel(%arg0: i32, %arg1: memref<1x2304x25xf32, #tpu.memory_space<vmem>>, %arg2: memref<25x8xf32, #tpu.memory_space<vmem>>, %arg3: memref<1x8xf32, #tpu.memory_space<vmem>>, %arg4: memref<25x8x16xf32, #tpu.memory_space<vmem>>, %arg5: memref<1x16xf32, #tpu.memory_space<vmem>>, %arg6: memref<16x16x128xf32, #tpu.memory_space<vmem>>, %arg7: memref<1x128xf32, #tpu.memory_space<vmem>>, %arg8: memref<128x64xf32, #tpu.memory_space<vmem>>, %arg9: memref<1x64xf32, #tpu.memory_space<vmem>>, %arg10: memref<64x128xf32, #tpu.memory_space<vmem>>, %arg11: memref<1x128xf32, #tpu.memory_space<vmem>>, %arg12: memref<1x1x128xf32, #tpu.memory_space<vmem>>) attributes {dimension_semantics = [#tpu.dimension_semantics<parallel>], iteration_bounds = array<i64: 2>, scalar_prefetch = 0 : i64, scratch_operands = 0 : i64, tpu.core_type = #tpu.core_type<tc>, window_params = [{transform_indices = @transform_0, window_bounds = array<i64: 1, 2304, 25>}, {pipeline_mode = #tpu.pipeline_mode<synchronous>, transform_indices = @transform_1, window_bounds = array<i64: 25, 8>}, {pipeline_mode = #tpu.pipeline_mode<synchronous>, transform_indices = @transform_2, window_bounds = array<i64: 1, 8>}, {pipeline_mode = #tpu.pipeline_mode<synchronous>, transform_indices = @transform_3, window_bounds = array<i64: 25, 8, 16>}, {pipeline_mode = #tpu.pipeline_mode<synchronous>, transform_indices = @transform_4, window_bounds = array<i64: 1, 16>}, {pipeline_mode = #tpu.pipeline_mode<synchronous>, transform_indices = @transform_5, window_bounds = array<i64: 16, 16, 128>}, {pipeline_mode = #tpu.pipeline_mode<synchronous>, transform_indices = @transform_6, window_bounds = array<i64: 1, 128>}, {pipeline_mode = #tpu.pipeline_mode<synchronous>, transform_indices = @transform_7, window_bounds = array<i64: 128, 64>}, {pipeline_mode = #tpu.pipeline_mode<synchronous>, transform_indices = @transform_8, window_bounds = array<i64: 1, 64>}, {pipeline_mode = #tpu.pipeline_mode<synchronous>, transform_indices = @transform_9, window_bounds = array<i64: 64, 128>}, {pipeline_mode = #tpu.pipeline_mode<synchronous>, transform_indices = @transform_10, window_bounds = array<i64: 1, 128>}, {transform_indices = @transform_11, window_bounds = array<i64: 1, 1, 128>}]} {
    %c0 = arith.constant 0 : index
    %c0_0 = arith.constant 0 : index
    %c0_1 = arith.constant 0 : index
    %0 = vector.load %arg1[%c0, %c0_0, %c0_1] : memref<1x2304x25xf32, #tpu.memory_space<vmem>>, vector<1x2304x25xf32>
    %1 = vector.shape_cast %0 : vector<1x2304x25xf32> to vector<2304x25xf32>
    %c0_2 = arith.constant 0 : index
    %c0_3 = arith.constant 0 : index
    %2 = vector.load %arg2[%c0_2, %c0_3] : memref<25x8xf32, #tpu.memory_space<vmem>>, vector<25x8xf32>
    %cst = arith.constant dense<0.000000e+00> : vector<2304x8xf32>
    %3 = tpu.matmul %1, %2, %cst {dimension_numbers = #tpu.dot_dimension_numbers<[1], [0], [0], [1], [0, 0, 1, 1], [], []>} : vector<2304x25xf32>, vector<25x8xf32>, vector<2304x8xf32> -> vector<2304x8xf32>
    %c0_4 = arith.constant 0 : index
    %c0_5 = arith.constant 0 : index
    %4 = vector.load %arg3[%c0_4, %c0_5] : memref<1x8xf32, #tpu.memory_space<vmem>>, vector<1x8xf32>
    %5 = vector.broadcast %4 : vector<1x8xf32> to vector<2304x8xf32>
    %6 = arith.addf %3, %5 : vector<2304x8xf32>
    %cst_6 = arith.constant 0.000000e+00 : f32
    %7 = vector.broadcast %cst_6 : f32 to vector<2304x8xf32>
    %8 = arith.maximumf %6, %7 : vector<2304x8xf32>
    %9 = vector.extract_strided_slice %8 {offsets = [0, 0], sizes = [576, 8], strides = [1, 1]} : vector<2304x8xf32> to vector<576x8xf32>
    %10 = vector.extract_strided_slice %8 {offsets = [576, 0], sizes = [576, 8], strides = [1, 1]} : vector<2304x8xf32> to vector<576x8xf32>
    %11 = arith.maximumf %9, %10 : vector<576x8xf32>
    %12 = vector.extract_strided_slice %8 {offsets = [1152, 0], sizes = [576, 8], strides = [1, 1]} : vector<2304x8xf32> to vector<576x8xf32>
    %13 = vector.extract_strided_slice %8 {offsets = [1728, 0], sizes = [576, 8], strides = [1, 1]} : vector<2304x8xf32> to vector<576x8xf32>
    %14 = arith.maximumf %12, %13 : vector<576x8xf32>
    %15 = arith.maximumf %11, %14 : vector<576x8xf32>
    %cst_7 = arith.constant 0.000000e+00 : f32
    %16 = vector.broadcast %cst_7 : f32 to vector<32x16xf32>
    %cst_8 = arith.constant 0.000000e+00 : f32
    %17 = vector.broadcast %cst_8 : f32 to vector<32x16xf32>
    %c0_9 = arith.constant 0 : index
    %c0_10 = arith.constant 0 : index
    %c0_11 = arith.constant 0 : index
    %18 = vector.load %arg4[%c0_9, %c0_10, %c0_11] : memref<25x8x16xf32, #tpu.memory_space<vmem>>, vector<1x8x16xf32>
    %19 = vector.shape_cast %18 : vector<1x8x16xf32> to vector<8x16xf32>
    %20 = vector.extract_strided_slice %15 {offsets = [0, 0], sizes = [32, 8], strides = [1, 1]} : vector<576x8xf32> to vector<32x8xf32>
    %21 = vector.extract_strided_slice %15 {offsets = [96, 0], sizes = [32, 8], strides = [1, 1]} : vector<576x8xf32> to vector<32x8xf32>
    %cst_12 = arith.constant dense<0.000000e+00> : vector<32x16xf32>
    %22 = tpu.matmul %20, %19, %cst_12 {dimension_numbers = #tpu.dot_dimension_numbers<[1], [0], [0], [1], [0, 0, 1, 1], [], []>} : vector<32x8xf32>, vector<8x16xf32>, vector<32x16xf32> -> vector<32x16xf32>
    %23 = arith.addf %16, %22 : vector<32x16xf32>
    %cst_13 = arith.constant dense<0.000000e+00> : vector<32x16xf32>
    %24 = tpu.matmul %21, %19, %cst_13 {dimension_numbers = #tpu.dot_dimension_numbers<[1], [0], [0], [1], [0, 0, 1, 1], [], []>} : vector<32x8xf32>, vector<8x16xf32>, vector<32x16xf32> -> vector<32x16xf32>
    %25 = arith.addf %17, %24 : vector<32x16xf32>
    %c1 = arith.constant 1 : index
    %c0_14 = arith.constant 0 : index
    %c0_15 = arith.constant 0 : index
    %26 = vector.load %arg4[%c1, %c0_14, %c0_15] : memref<25x8x16xf32, #tpu.memory_space<vmem>>, vector<1x8x16xf32>
    %27 = vector.shape_cast %26 : vector<1x8x16xf32> to vector<8x16xf32>
    %28 = vector.extract_strided_slice %15 {offsets = [16, 0], sizes = [32, 8], strides = [1, 1]} : vector<576x8xf32> to vector<32x8xf32>
    %29 = vector.extract_strided_slice %15 {offsets = [112, 0], sizes = [32, 8], strides = [1, 1]} : vector<576x8xf32> to vector<32x8xf32>
    %cst_16 = arith.constant dense<0.000000e+00> : vector<32x16xf32>
    %30 = tpu.matmul %28, %27, %cst_16 {dimension_numbers = #tpu.dot_dimension_numbers<[1], [0], [0], [1], [0, 0, 1, 1], [], []>} : vector<32x8xf32>, vector<8x16xf32>, vector<32x16xf32> -> vector<32x16xf32>
    %31 = arith.addf %23, %30 : vector<32x16xf32>
    %cst_17 = arith.constant dense<0.000000e+00> : vector<32x16xf32>
    %32 = tpu.matmul %29, %27, %cst_17 {dimension_numbers = #tpu.dot_dimension_numbers<[1], [0], [0], [1], [0, 0, 1, 1], [], []>} : vector<32x8xf32>, vector<8x16xf32>, vector<32x16xf32> -> vector<32x16xf32>
    %33 = arith.addf %25, %32 : vector<32x16xf32>
    %c2 = arith.constant 2 : index
    %c0_18 = arith.constant 0 : index
    %c0_19 = arith.constant 0 : index
    %34 = vector.load %arg4[%c2, %c0_18, %c0_19] : memref<25x8x16xf32, #tpu.memory_space<vmem>>, vector<1x8x16xf32>
    %35 = vector.shape_cast %34 : vector<1x8x16xf32> to vector<8x16xf32>
    %36 = vector.extract_strided_slice %15 {offsets = [32, 0], sizes = [32, 8], strides = [1, 1]} : vector<576x8xf32> to vector<32x8xf32>
    %37 = vector.extract_strided_slice %15 {offsets = [128, 0], sizes = [32, 8], strides = [1, 1]} : vector<576x8xf32> to vector<32x8xf32>
    %cst_20 = arith.constant dense<0.000000e+00> : vector<32x16xf32>
    %38 = tpu.matmul %36, %35, %cst_20 {dimension_numbers = #tpu.dot_dimension_numbers<[1], [0], [0], [1], [0, 0, 1, 1], [], []>} : vector<32x8xf32>, vector<8x16xf32>, vector<32x16xf32> -> vector<32x16xf32>
    %39 = arith.addf %31, %38 : vector<32x16xf32>
    %cst_21 = arith.constant dense<0.000000e+00> : vector<32x16xf32>
    %40 = tpu.matmul %37, %35, %cst_21 {dimension_numbers = #tpu.dot_dimension_numbers<[1], [0], [0], [1], [0, 0, 1, 1], [], []>} : vector<32x8xf32>, vector<8x16xf32>, vector<32x16xf32> -> vector<32x16xf32>
    %41 = arith.addf %33, %40 : vector<32x16xf32>
    %c3 = arith.constant 3 : index
    %c0_22 = arith.constant 0 : index
    %c0_23 = arith.constant 0 : index
    %42 = vector.load %arg4[%c3, %c0_22, %c0_23] : memref<25x8x16xf32, #tpu.memory_space<vmem>>, vector<1x8x16xf32>
    %43 = vector.shape_cast %42 : vector<1x8x16xf32> to vector<8x16xf32>
    %44 = vector.extract_strided_slice %15 {offsets = [48, 0], sizes = [32, 8], strides = [1, 1]} : vector<576x8xf32> to vector<32x8xf32>
    %45 = vector.extract_strided_slice %15 {offsets = [144, 0], sizes = [32, 8], strides = [1, 1]} : vector<576x8xf32> to vector<32x8xf32>
    %cst_24 = arith.constant dense<0.000000e+00> : vector<32x16xf32>
    %46 = tpu.matmul %44, %43, %cst_24 {dimension_numbers = #tpu.dot_dimension_numbers<[1], [0], [0], [1], [0, 0, 1, 1], [], []>} : vector<32x8xf32>, vector<8x16xf32>, vector<32x16xf32> -> vector<32x16xf32>
    %47 = arith.addf %39, %46 : vector<32x16xf32>
    %cst_25 = arith.constant dense<0.000000e+00> : vector<32x16xf32>
    %48 = tpu.matmul %45, %43, %cst_25 {dimension_numbers = #tpu.dot_dimension_numbers<[1], [0], [0], [1], [0, 0, 1, 1], [], []>} : vector<32x8xf32>, vector<8x16xf32>, vector<32x16xf32> -> vector<32x16xf32>
    %49 = arith.addf %41, %48 : vector<32x16xf32>
    %c4 = arith.constant 4 : index
    %c0_26 = arith.constant 0 : index
    %c0_27 = arith.constant 0 : index
    %50 = vector.load %arg4[%c4, %c0_26, %c0_27] : memref<25x8x16xf32, #tpu.memory_space<vmem>>, vector<1x8x16xf32>
    %51 = vector.shape_cast %50 : vector<1x8x16xf32> to vector<8x16xf32>
    %52 = vector.extract_strided_slice %15 {offsets = [64, 0], sizes = [32, 8], strides = [1, 1]} : vector<576x8xf32> to vector<32x8xf32>
    %53 = vector.extract_strided_slice %15 {offsets = [160, 0], sizes = [32, 8], strides = [1, 1]} : vector<576x8xf32> to vector<32x8xf32>
    %cst_28 = arith.constant dense<0.000000e+00> : vector<32x16xf32>
    %54 = tpu.matmul %52, %51, %cst_28 {dimension_numbers = #tpu.dot_dimension_numbers<[1], [0], [0], [1], [0, 0, 1, 1], [], []>} : vector<32x8xf32>, vector<8x16xf32>, vector<32x16xf32> -> vector<32x16xf32>
    %55 = arith.addf %47, %54 : vector<32x16xf32>
    %cst_29 = arith.constant dense<0.000000e+00> : vector<32x16xf32>
    %56 = tpu.matmul %53, %51, %cst_29 {dimension_numbers = #tpu.dot_dimension_numbers<[1], [0], [0], [1], [0, 0, 1, 1], [], []>} : vector<32x8xf32>, vector<8x16xf32>, vector<32x16xf32> -> vector<32x16xf32>
    %57 = arith.addf %49, %56 : vector<32x16xf32>
    %c5 = arith.constant 5 : index
    %c0_30 = arith.constant 0 : index
    %c0_31 = arith.constant 0 : index
    %58 = vector.load %arg4[%c5, %c0_30, %c0_31] : memref<25x8x16xf32, #tpu.memory_space<vmem>>, vector<1x8x16xf32>
    %59 = vector.shape_cast %58 : vector<1x8x16xf32> to vector<8x16xf32>
    %60 = vector.extract_strided_slice %15 {offsets = [96, 0], sizes = [32, 8], strides = [1, 1]} : vector<576x8xf32> to vector<32x8xf32>
    %61 = vector.extract_strided_slice %15 {offsets = [192, 0], sizes = [32, 8], strides = [1, 1]} : vector<576x8xf32> to vector<32x8xf32>
    %cst_32 = arith.constant dense<0.000000e+00> : vector<32x16xf32>
    %62 = tpu.matmul %60, %59, %cst_32 {dimension_numbers = #tpu.dot_dimension_numbers<[1], [0], [0], [1], [0, 0, 1, 1], [], []>} : vector<32x8xf32>, vector<8x16xf32>, vector<32x16xf32> -> vector<32x16xf32>
    %63 = arith.addf %55, %62 : vector<32x16xf32>
    %cst_33 = arith.constant dense<0.000000e+00> : vector<32x16xf32>
    %64 = tpu.matmul %61, %59, %cst_33 {dimension_numbers = #tpu.dot_dimension_numbers<[1], [0], [0], [1], [0, 0, 1, 1], [], []>} : vector<32x8xf32>, vector<8x16xf32>, vector<32x16xf32> -> vector<32x16xf32>
    %65 = arith.addf %57, %64 : vector<32x16xf32>
    %c6 = arith.constant 6 : index
    %c0_34 = arith.constant 0 : index
    %c0_35 = arith.constant 0 : index
    %66 = vector.load %arg4[%c6, %c0_34, %c0_35] : memref<25x8x16xf32, #tpu.memory_space<vmem>>, vector<1x8x16xf32>
    %67 = vector.shape_cast %66 : vector<1x8x16xf32> to vector<8x16xf32>
    %68 = vector.extract_strided_slice %15 {offsets = [112, 0], sizes = [32, 8], strides = [1, 1]} : vector<576x8xf32> to vector<32x8xf32>
    %69 = vector.extract_strided_slice %15 {offsets = [208, 0], sizes = [32, 8], strides = [1, 1]} : vector<576x8xf32> to vector<32x8xf32>
    %cst_36 = arith.constant dense<0.000000e+00> : vector<32x16xf32>
    %70 = tpu.matmul %68, %67, %cst_36 {dimension_numbers = #tpu.dot_dimension_numbers<[1], [0], [0], [1], [0, 0, 1, 1], [], []>} : vector<32x8xf32>, vector<8x16xf32>, vector<32x16xf32> -> vector<32x16xf32>
    %71 = arith.addf %63, %70 : vector<32x16xf32>
    %cst_37 = arith.constant dense<0.000000e+00> : vector<32x16xf32>
    %72 = tpu.matmul %69, %67, %cst_37 {dimension_numbers = #tpu.dot_dimension_numbers<[1], [0], [0], [1], [0, 0, 1, 1], [], []>} : vector<32x8xf32>, vector<8x16xf32>, vector<32x16xf32> -> vector<32x16xf32>
    %73 = arith.addf %65, %72 : vector<32x16xf32>
    %c7 = arith.constant 7 : index
    %c0_38 = arith.constant 0 : index
    %c0_39 = arith.constant 0 : index
    %74 = vector.load %arg4[%c7, %c0_38, %c0_39] : memref<25x8x16xf32, #tpu.memory_space<vmem>>, vector<1x8x16xf32>
    %75 = vector.shape_cast %74 : vector<1x8x16xf32> to vector<8x16xf32>
    %76 = vector.extract_strided_slice %15 {offsets = [128, 0], sizes = [32, 8], strides = [1, 1]} : vector<576x8xf32> to vector<32x8xf32>
    %77 = vector.extract_strided_slice %15 {offsets = [224, 0], sizes = [32, 8], strides = [1, 1]} : vector<576x8xf32> to vector<32x8xf32>
    %cst_40 = arith.constant dense<0.000000e+00> : vector<32x16xf32>
    %78 = tpu.matmul %76, %75, %cst_40 {dimension_numbers = #tpu.dot_dimension_numbers<[1], [0], [0], [1], [0, 0, 1, 1], [], []>} : vector<32x8xf32>, vector<8x16xf32>, vector<32x16xf32> -> vector<32x16xf32>
    %79 = arith.addf %71, %78 : vector<32x16xf32>
    %cst_41 = arith.constant dense<0.000000e+00> : vector<32x16xf32>
    %80 = tpu.matmul %77, %75, %cst_41 {dimension_numbers = #tpu.dot_dimension_numbers<[1], [0], [0], [1], [0, 0, 1, 1], [], []>} : vector<32x8xf32>, vector<8x16xf32>, vector<32x16xf32> -> vector<32x16xf32>
    %81 = arith.addf %73, %80 : vector<32x16xf32>
    %c8 = arith.constant 8 : index
    %c0_42 = arith.constant 0 : index
    %c0_43 = arith.constant 0 : index
    %82 = vector.load %arg4[%c8, %c0_42, %c0_43] : memref<25x8x16xf32, #tpu.memory_space<vmem>>, vector<1x8x16xf32>
    %83 = vector.shape_cast %82 : vector<1x8x16xf32> to vector<8x16xf32>
    %84 = vector.extract_strided_slice %15 {offsets = [144, 0], sizes = [32, 8], strides = [1, 1]} : vector<576x8xf32> to vector<32x8xf32>
    %85 = vector.extract_strided_slice %15 {offsets = [240, 0], sizes = [32, 8], strides = [1, 1]} : vector<576x8xf32> to vector<32x8xf32>
    %cst_44 = arith.constant dense<0.000000e+00> : vector<32x16xf32>
    %86 = tpu.matmul %84, %83, %cst_44 {dimension_numbers = #tpu.dot_dimension_numbers<[1], [0], [0], [1], [0, 0, 1, 1], [], []>} : vector<32x8xf32>, vector<8x16xf32>, vector<32x16xf32> -> vector<32x16xf32>
    %87 = arith.addf %79, %86 : vector<32x16xf32>
    %cst_45 = arith.constant dense<0.000000e+00> : vector<32x16xf32>
    %88 = tpu.matmul %85, %83, %cst_45 {dimension_numbers = #tpu.dot_dimension_numbers<[1], [0], [0], [1], [0, 0, 1, 1], [], []>} : vector<32x8xf32>, vector<8x16xf32>, vector<32x16xf32> -> vector<32x16xf32>
    %89 = arith.addf %81, %88 : vector<32x16xf32>
    %c9 = arith.constant 9 : index
    %c0_46 = arith.constant 0 : index
    %c0_47 = arith.constant 0 : index
    %90 = vector.load %arg4[%c9, %c0_46, %c0_47] : memref<25x8x16xf32, #tpu.memory_space<vmem>>, vector<1x8x16xf32>
    %91 = vector.shape_cast %90 : vector<1x8x16xf32> to vector<8x16xf32>
    %92 = vector.extract_strided_slice %15 {offsets = [160, 0], sizes = [32, 8], strides = [1, 1]} : vector<576x8xf32> to vector<32x8xf32>
    %93 = vector.extract_strided_slice %15 {offsets = [256, 0], sizes = [32, 8], strides = [1, 1]} : vector<576x8xf32> to vector<32x8xf32>
    %cst_48 = arith.constant dense<0.000000e+00> : vector<32x16xf32>
    %94 = tpu.matmul %92, %91, %cst_48 {dimension_numbers = #tpu.dot_dimension_numbers<[1], [0], [0], [1], [0, 0, 1, 1], [], []>} : vector<32x8xf32>, vector<8x16xf32>, vector<32x16xf32> -> vector<32x16xf32>
    %95 = arith.addf %87, %94 : vector<32x16xf32>
    %cst_49 = arith.constant dense<0.000000e+00> : vector<32x16xf32>
    %96 = tpu.matmul %93, %91, %cst_49 {dimension_numbers = #tpu.dot_dimension_numbers<[1], [0], [0], [1], [0, 0, 1, 1], [], []>} : vector<32x8xf32>, vector<8x16xf32>, vector<32x16xf32> -> vector<32x16xf32>
    %97 = arith.addf %89, %96 : vector<32x16xf32>
    %c10 = arith.constant 10 : index
    %c0_50 = arith.constant 0 : index
    %c0_51 = arith.constant 0 : index
    %98 = vector.load %arg4[%c10, %c0_50, %c0_51] : memref<25x8x16xf32, #tpu.memory_space<vmem>>, vector<1x8x16xf32>
    %99 = vector.shape_cast %98 : vector<1x8x16xf32> to vector<8x16xf32>
    %100 = vector.extract_strided_slice %15 {offsets = [192, 0], sizes = [32, 8], strides = [1, 1]} : vector<576x8xf32> to vector<32x8xf32>
    %101 = vector.extract_strided_slice %15 {offsets = [288, 0], sizes = [32, 8], strides = [1, 1]} : vector<576x8xf32> to vector<32x8xf32>
    %cst_52 = arith.constant dense<0.000000e+00> : vector<32x16xf32>
    %102 = tpu.matmul %100, %99, %cst_52 {dimension_numbers = #tpu.dot_dimension_numbers<[1], [0], [0], [1], [0, 0, 1, 1], [], []>} : vector<32x8xf32>, vector<8x16xf32>, vector<32x16xf32> -> vector<32x16xf32>
    %103 = arith.addf %95, %102 : vector<32x16xf32>
    %cst_53 = arith.constant dense<0.000000e+00> : vector<32x16xf32>
    %104 = tpu.matmul %101, %99, %cst_53 {dimension_numbers = #tpu.dot_dimension_numbers<[1], [0], [0], [1], [0, 0, 1, 1], [], []>} : vector<32x8xf32>, vector<8x16xf32>, vector<32x16xf32> -> vector<32x16xf32>
    %105 = arith.addf %97, %104 : vector<32x16xf32>
    %c11 = arith.constant 11 : index
    %c0_54 = arith.constant 0 : index
    %c0_55 = arith.constant 0 : index
    %106 = vector.load %arg4[%c11, %c0_54, %c0_55] : memref<25x8x16xf32, #tpu.memory_space<vmem>>, vector<1x8x16xf32>
    %107 = vector.shape_cast %106 : vector<1x8x16xf32> to vector<8x16xf32>
    %108 = vector.extract_strided_slice %15 {offsets = [208, 0], sizes = [32, 8], strides = [1, 1]} : vector<576x8xf32> to vector<32x8xf32>
    %109 = vector.extract_strided_slice %15 {offsets = [304, 0], sizes = [32, 8], strides = [1, 1]} : vector<576x8xf32> to vector<32x8xf32>
    %cst_56 = arith.constant dense<0.000000e+00> : vector<32x16xf32>
    %110 = tpu.matmul %108, %107, %cst_56 {dimension_numbers = #tpu.dot_dimension_numbers<[1], [0], [0], [1], [0, 0, 1, 1], [], []>} : vector<32x8xf32>, vector<8x16xf32>, vector<32x16xf32> -> vector<32x16xf32>
    %111 = arith.addf %103, %110 : vector<32x16xf32>
    %cst_57 = arith.constant dense<0.000000e+00> : vector<32x16xf32>
    %112 = tpu.matmul %109, %107, %cst_57 {dimension_numbers = #tpu.dot_dimension_numbers<[1], [0], [0], [1], [0, 0, 1, 1], [], []>} : vector<32x8xf32>, vector<8x16xf32>, vector<32x16xf32> -> vector<32x16xf32>
    %113 = arith.addf %105, %112 : vector<32x16xf32>
    %c12 = arith.constant 12 : index
    %c0_58 = arith.constant 0 : index
    %c0_59 = arith.constant 0 : index
    %114 = vector.load %arg4[%c12, %c0_58, %c0_59] : memref<25x8x16xf32, #tpu.memory_space<vmem>>, vector<1x8x16xf32>
    %115 = vector.shape_cast %114 : vector<1x8x16xf32> to vector<8x16xf32>
    %116 = vector.extract_strided_slice %15 {offsets = [224, 0], sizes = [32, 8], strides = [1, 1]} : vector<576x8xf32> to vector<32x8xf32>
    %117 = vector.extract_strided_slice %15 {offsets = [320, 0], sizes = [32, 8], strides = [1, 1]} : vector<576x8xf32> to vector<32x8xf32>
    %cst_60 = arith.constant dense<0.000000e+00> : vector<32x16xf32>
    %118 = tpu.matmul %116, %115, %cst_60 {dimension_numbers = #tpu.dot_dimension_numbers<[1], [0], [0], [1], [0, 0, 1, 1], [], []>} : vector<32x8xf32>, vector<8x16xf32>, vector<32x16xf32> -> vector<32x16xf32>
    %119 = arith.addf %111, %118 : vector<32x16xf32>
    %cst_61 = arith.constant dense<0.000000e+00> : vector<32x16xf32>
    %120 = tpu.matmul %117, %115, %cst_61 {dimension_numbers = #tpu.dot_dimension_numbers<[1], [0], [0], [1], [0, 0, 1, 1], [], []>} : vector<32x8xf32>, vector<8x16xf32>, vector<32x16xf32> -> vector<32x16xf32>
    %121 = arith.addf %113, %120 : vector<32x16xf32>
    %c13 = arith.constant 13 : index
    %c0_62 = arith.constant 0 : index
    %c0_63 = arith.constant 0 : index
    %122 = vector.load %arg4[%c13, %c0_62, %c0_63] : memref<25x8x16xf32, #tpu.memory_space<vmem>>, vector<1x8x16xf32>
    %123 = vector.shape_cast %122 : vector<1x8x16xf32> to vector<8x16xf32>
    %124 = vector.extract_strided_slice %15 {offsets = [240, 0], sizes = [32, 8], strides = [1, 1]} : vector<576x8xf32> to vector<32x8xf32>
    %125 = vector.extract_strided_slice %15 {offsets = [336, 0], sizes = [32, 8], strides = [1, 1]} : vector<576x8xf32> to vector<32x8xf32>
    %cst_64 = arith.constant dense<0.000000e+00> : vector<32x16xf32>
    %126 = tpu.matmul %124, %123, %cst_64 {dimension_numbers = #tpu.dot_dimension_numbers<[1], [0], [0], [1], [0, 0, 1, 1], [], []>} : vector<32x8xf32>, vector<8x16xf32>, vector<32x16xf32> -> vector<32x16xf32>
    %127 = arith.addf %119, %126 : vector<32x16xf32>
    %cst_65 = arith.constant dense<0.000000e+00> : vector<32x16xf32>
    %128 = tpu.matmul %125, %123, %cst_65 {dimension_numbers = #tpu.dot_dimension_numbers<[1], [0], [0], [1], [0, 0, 1, 1], [], []>} : vector<32x8xf32>, vector<8x16xf32>, vector<32x16xf32> -> vector<32x16xf32>
    %129 = arith.addf %121, %128 : vector<32x16xf32>
    %c14 = arith.constant 14 : index
    %c0_66 = arith.constant 0 : index
    %c0_67 = arith.constant 0 : index
    %130 = vector.load %arg4[%c14, %c0_66, %c0_67] : memref<25x8x16xf32, #tpu.memory_space<vmem>>, vector<1x8x16xf32>
    %131 = vector.shape_cast %130 : vector<1x8x16xf32> to vector<8x16xf32>
    %132 = vector.extract_strided_slice %15 {offsets = [256, 0], sizes = [32, 8], strides = [1, 1]} : vector<576x8xf32> to vector<32x8xf32>
    %133 = vector.extract_strided_slice %15 {offsets = [352, 0], sizes = [32, 8], strides = [1, 1]} : vector<576x8xf32> to vector<32x8xf32>
    %cst_68 = arith.constant dense<0.000000e+00> : vector<32x16xf32>
    %134 = tpu.matmul %132, %131, %cst_68 {dimension_numbers = #tpu.dot_dimension_numbers<[1], [0], [0], [1], [0, 0, 1, 1], [], []>} : vector<32x8xf32>, vector<8x16xf32>, vector<32x16xf32> -> vector<32x16xf32>
    %135 = arith.addf %127, %134 : vector<32x16xf32>
    %cst_69 = arith.constant dense<0.000000e+00> : vector<32x16xf32>
    %136 = tpu.matmul %133, %131, %cst_69 {dimension_numbers = #tpu.dot_dimension_numbers<[1], [0], [0], [1], [0, 0, 1, 1], [], []>} : vector<32x8xf32>, vector<8x16xf32>, vector<32x16xf32> -> vector<32x16xf32>
    %137 = arith.addf %129, %136 : vector<32x16xf32>
    %c15 = arith.constant 15 : index
    %c0_70 = arith.constant 0 : index
    %c0_71 = arith.constant 0 : index
    %138 = vector.load %arg4[%c15, %c0_70, %c0_71] : memref<25x8x16xf32, #tpu.memory_space<vmem>>, vector<1x8x16xf32>
    %139 = vector.shape_cast %138 : vector<1x8x16xf32> to vector<8x16xf32>
    %140 = vector.extract_strided_slice %15 {offsets = [288, 0], sizes = [32, 8], strides = [1, 1]} : vector<576x8xf32> to vector<32x8xf32>
    %141 = vector.extract_strided_slice %15 {offsets = [384, 0], sizes = [32, 8], strides = [1, 1]} : vector<576x8xf32> to vector<32x8xf32>
    %cst_72 = arith.constant dense<0.000000e+00> : vector<32x16xf32>
    %142 = tpu.matmul %140, %139, %cst_72 {dimension_numbers = #tpu.dot_dimension_numbers<[1], [0], [0], [1], [0, 0, 1, 1], [], []>} : vector<32x8xf32>, vector<8x16xf32>, vector<32x16xf32> -> vector<32x16xf32>
    %143 = arith.addf %135, %142 : vector<32x16xf32>
    %cst_73 = arith.constant dense<0.000000e+00> : vector<32x16xf32>
    %144 = tpu.matmul %141, %139, %cst_73 {dimension_numbers = #tpu.dot_dimension_numbers<[1], [0], [0], [1], [0, 0, 1, 1], [], []>} : vector<32x8xf32>, vector<8x16xf32>, vector<32x16xf32> -> vector<32x16xf32>
    %145 = arith.addf %137, %144 : vector<32x16xf32>
    %c16 = arith.constant 16 : index
    %c0_74 = arith.constant 0 : index
    %c0_75 = arith.constant 0 : index
    %146 = vector.load %arg4[%c16, %c0_74, %c0_75] : memref<25x8x16xf32, #tpu.memory_space<vmem>>, vector<1x8x16xf32>
    %147 = vector.shape_cast %146 : vector<1x8x16xf32> to vector<8x16xf32>
    %148 = vector.extract_strided_slice %15 {offsets = [304, 0], sizes = [32, 8], strides = [1, 1]} : vector<576x8xf32> to vector<32x8xf32>
    %149 = vector.extract_strided_slice %15 {offsets = [400, 0], sizes = [32, 8], strides = [1, 1]} : vector<576x8xf32> to vector<32x8xf32>
    %cst_76 = arith.constant dense<0.000000e+00> : vector<32x16xf32>
    %150 = tpu.matmul %148, %147, %cst_76 {dimension_numbers = #tpu.dot_dimension_numbers<[1], [0], [0], [1], [0, 0, 1, 1], [], []>} : vector<32x8xf32>, vector<8x16xf32>, vector<32x16xf32> -> vector<32x16xf32>
    %151 = arith.addf %143, %150 : vector<32x16xf32>
    %cst_77 = arith.constant dense<0.000000e+00> : vector<32x16xf32>
    %152 = tpu.matmul %149, %147, %cst_77 {dimension_numbers = #tpu.dot_dimension_numbers<[1], [0], [0], [1], [0, 0, 1, 1], [], []>} : vector<32x8xf32>, vector<8x16xf32>, vector<32x16xf32> -> vector<32x16xf32>
    %153 = arith.addf %145, %152 : vector<32x16xf32>
    %c17 = arith.constant 17 : index
    %c0_78 = arith.constant 0 : index
    %c0_79 = arith.constant 0 : index
    %154 = vector.load %arg4[%c17, %c0_78, %c0_79] : memref<25x8x16xf32, #tpu.memory_space<vmem>>, vector<1x8x16xf32>
    %155 = vector.shape_cast %154 : vector<1x8x16xf32> to vector<8x16xf32>
    %156 = vector.extract_strided_slice %15 {offsets = [320, 0], sizes = [32, 8], strides = [1, 1]} : vector<576x8xf32> to vector<32x8xf32>
    %157 = vector.extract_strided_slice %15 {offsets = [416, 0], sizes = [32, 8], strides = [1, 1]} : vector<576x8xf32> to vector<32x8xf32>
    %cst_80 = arith.constant dense<0.000000e+00> : vector<32x16xf32>
    %158 = tpu.matmul %156, %155, %cst_80 {dimension_numbers = #tpu.dot_dimension_numbers<[1], [0], [0], [1], [0, 0, 1, 1], [], []>} : vector<32x8xf32>, vector<8x16xf32>, vector<32x16xf32> -> vector<32x16xf32>
    %159 = arith.addf %151, %158 : vector<32x16xf32>
    %cst_81 = arith.constant dense<0.000000e+00> : vector<32x16xf32>
    %160 = tpu.matmul %157, %155, %cst_81 {dimension_numbers = #tpu.dot_dimension_numbers<[1], [0], [0], [1], [0, 0, 1, 1], [], []>} : vector<32x8xf32>, vector<8x16xf32>, vector<32x16xf32> -> vector<32x16xf32>
    %161 = arith.addf %153, %160 : vector<32x16xf32>
    %c18 = arith.constant 18 : index
    %c0_82 = arith.constant 0 : index
    %c0_83 = arith.constant 0 : index
    %162 = vector.load %arg4[%c18, %c0_82, %c0_83] : memref<25x8x16xf32, #tpu.memory_space<vmem>>, vector<1x8x16xf32>
    %163 = vector.shape_cast %162 : vector<1x8x16xf32> to vector<8x16xf32>
    %164 = vector.extract_strided_slice %15 {offsets = [336, 0], sizes = [32, 8], strides = [1, 1]} : vector<576x8xf32> to vector<32x8xf32>
    %165 = vector.extract_strided_slice %15 {offsets = [432, 0], sizes = [32, 8], strides = [1, 1]} : vector<576x8xf32> to vector<32x8xf32>
    %cst_84 = arith.constant dense<0.000000e+00> : vector<32x16xf32>
    %166 = tpu.matmul %164, %163, %cst_84 {dimension_numbers = #tpu.dot_dimension_numbers<[1], [0], [0], [1], [0, 0, 1, 1], [], []>} : vector<32x8xf32>, vector<8x16xf32>, vector<32x16xf32> -> vector<32x16xf32>
    %167 = arith.addf %159, %166 : vector<32x16xf32>
    %cst_85 = arith.constant dense<0.000000e+00> : vector<32x16xf32>
    %168 = tpu.matmul %165, %163, %cst_85 {dimension_numbers = #tpu.dot_dimension_numbers<[1], [0], [0], [1], [0, 0, 1, 1], [], []>} : vector<32x8xf32>, vector<8x16xf32>, vector<32x16xf32> -> vector<32x16xf32>
    %169 = arith.addf %161, %168 : vector<32x16xf32>
    %c19 = arith.constant 19 : index
    %c0_86 = arith.constant 0 : index
    %c0_87 = arith.constant 0 : index
    %170 = vector.load %arg4[%c19, %c0_86, %c0_87] : memref<25x8x16xf32, #tpu.memory_space<vmem>>, vector<1x8x16xf32>
    %171 = vector.shape_cast %170 : vector<1x8x16xf32> to vector<8x16xf32>
    %172 = vector.extract_strided_slice %15 {offsets = [352, 0], sizes = [32, 8], strides = [1, 1]} : vector<576x8xf32> to vector<32x8xf32>
    %173 = vector.extract_strided_slice %15 {offsets = [448, 0], sizes = [32, 8], strides = [1, 1]} : vector<576x8xf32> to vector<32x8xf32>
    %cst_88 = arith.constant dense<0.000000e+00> : vector<32x16xf32>
    %174 = tpu.matmul %172, %171, %cst_88 {dimension_numbers = #tpu.dot_dimension_numbers<[1], [0], [0], [1], [0, 0, 1, 1], [], []>} : vector<32x8xf32>, vector<8x16xf32>, vector<32x16xf32> -> vector<32x16xf32>
    %175 = arith.addf %167, %174 : vector<32x16xf32>
    %cst_89 = arith.constant dense<0.000000e+00> : vector<32x16xf32>
    %176 = tpu.matmul %173, %171, %cst_89 {dimension_numbers = #tpu.dot_dimension_numbers<[1], [0], [0], [1], [0, 0, 1, 1], [], []>} : vector<32x8xf32>, vector<8x16xf32>, vector<32x16xf32> -> vector<32x16xf32>
    %177 = arith.addf %169, %176 : vector<32x16xf32>
    %c20 = arith.constant 20 : index
    %c0_90 = arith.constant 0 : index
    %c0_91 = arith.constant 0 : index
    %178 = vector.load %arg4[%c20, %c0_90, %c0_91] : memref<25x8x16xf32, #tpu.memory_space<vmem>>, vector<1x8x16xf32>
    %179 = vector.shape_cast %178 : vector<1x8x16xf32> to vector<8x16xf32>
    %180 = vector.extract_strided_slice %15 {offsets = [384, 0], sizes = [32, 8], strides = [1, 1]} : vector<576x8xf32> to vector<32x8xf32>
    %181 = vector.extract_strided_slice %15 {offsets = [480, 0], sizes = [32, 8], strides = [1, 1]} : vector<576x8xf32> to vector<32x8xf32>
    %cst_92 = arith.constant dense<0.000000e+00> : vector<32x16xf32>
    %182 = tpu.matmul %180, %179, %cst_92 {dimension_numbers = #tpu.dot_dimension_numbers<[1], [0], [0], [1], [0, 0, 1, 1], [], []>} : vector<32x8xf32>, vector<8x16xf32>, vector<32x16xf32> -> vector<32x16xf32>
    %183 = arith.addf %175, %182 : vector<32x16xf32>
    %cst_93 = arith.constant dense<0.000000e+00> : vector<32x16xf32>
    %184 = tpu.matmul %181, %179, %cst_93 {dimension_numbers = #tpu.dot_dimension_numbers<[1], [0], [0], [1], [0, 0, 1, 1], [], []>} : vector<32x8xf32>, vector<8x16xf32>, vector<32x16xf32> -> vector<32x16xf32>
    %185 = arith.addf %177, %184 : vector<32x16xf32>
    %c21 = arith.constant 21 : index
    %c0_94 = arith.constant 0 : index
    %c0_95 = arith.constant 0 : index
    %186 = vector.load %arg4[%c21, %c0_94, %c0_95] : memref<25x8x16xf32, #tpu.memory_space<vmem>>, vector<1x8x16xf32>
    %187 = vector.shape_cast %186 : vector<1x8x16xf32> to vector<8x16xf32>
    %188 = vector.extract_strided_slice %15 {offsets = [400, 0], sizes = [32, 8], strides = [1, 1]} : vector<576x8xf32> to vector<32x8xf32>
    %189 = vector.extract_strided_slice %15 {offsets = [496, 0], sizes = [32, 8], strides = [1, 1]} : vector<576x8xf32> to vector<32x8xf32>
    %cst_96 = arith.constant dense<0.000000e+00> : vector<32x16xf32>
    %190 = tpu.matmul %188, %187, %cst_96 {dimension_numbers = #tpu.dot_dimension_numbers<[1], [0], [0], [1], [0, 0, 1, 1], [], []>} : vector<32x8xf32>, vector<8x16xf32>, vector<32x16xf32> -> vector<32x16xf32>
    %191 = arith.addf %183, %190 : vector<32x16xf32>
    %cst_97 = arith.constant dense<0.000000e+00> : vector<32x16xf32>
    %192 = tpu.matmul %189, %187, %cst_97 {dimension_numbers = #tpu.dot_dimension_numbers<[1], [0], [0], [1], [0, 0, 1, 1], [], []>} : vector<32x8xf32>, vector<8x16xf32>, vector<32x16xf32> -> vector<32x16xf32>
    %193 = arith.addf %185, %192 : vector<32x16xf32>
    %c22 = arith.constant 22 : index
    %c0_98 = arith.constant 0 : index
    %c0_99 = arith.constant 0 : index
    %194 = vector.load %arg4[%c22, %c0_98, %c0_99] : memref<25x8x16xf32, #tpu.memory_space<vmem>>, vector<1x8x16xf32>
    %195 = vector.shape_cast %194 : vector<1x8x16xf32> to vector<8x16xf32>
    %196 = vector.extract_strided_slice %15 {offsets = [416, 0], sizes = [32, 8], strides = [1, 1]} : vector<576x8xf32> to vector<32x8xf32>
    %197 = vector.extract_strided_slice %15 {offsets = [512, 0], sizes = [32, 8], strides = [1, 1]} : vector<576x8xf32> to vector<32x8xf32>
    %cst_100 = arith.constant dense<0.000000e+00> : vector<32x16xf32>
    %198 = tpu.matmul %196, %195, %cst_100 {dimension_numbers = #tpu.dot_dimension_numbers<[1], [0], [0], [1], [0, 0, 1, 1], [], []>} : vector<32x8xf32>, vector<8x16xf32>, vector<32x16xf32> -> vector<32x16xf32>
    %199 = arith.addf %191, %198 : vector<32x16xf32>
    %cst_101 = arith.constant dense<0.000000e+00> : vector<32x16xf32>
    %200 = tpu.matmul %197, %195, %cst_101 {dimension_numbers = #tpu.dot_dimension_numbers<[1], [0], [0], [1], [0, 0, 1, 1], [], []>} : vector<32x8xf32>, vector<8x16xf32>, vector<32x16xf32> -> vector<32x16xf32>
    %201 = arith.addf %193, %200 : vector<32x16xf32>
    %c23 = arith.constant 23 : index
    %c0_102 = arith.constant 0 : index
    %c0_103 = arith.constant 0 : index
    %202 = vector.load %arg4[%c23, %c0_102, %c0_103] : memref<25x8x16xf32, #tpu.memory_space<vmem>>, vector<1x8x16xf32>
    %203 = vector.shape_cast %202 : vector<1x8x16xf32> to vector<8x16xf32>
    %204 = vector.extract_strided_slice %15 {offsets = [432, 0], sizes = [32, 8], strides = [1, 1]} : vector<576x8xf32> to vector<32x8xf32>
    %205 = vector.extract_strided_slice %15 {offsets = [528, 0], sizes = [32, 8], strides = [1, 1]} : vector<576x8xf32> to vector<32x8xf32>
    %cst_104 = arith.constant dense<0.000000e+00> : vector<32x16xf32>
    %206 = tpu.matmul %204, %203, %cst_104 {dimension_numbers = #tpu.dot_dimension_numbers<[1], [0], [0], [1], [0, 0, 1, 1], [], []>} : vector<32x8xf32>, vector<8x16xf32>, vector<32x16xf32> -> vector<32x16xf32>
    %207 = arith.addf %199, %206 : vector<32x16xf32>
    %cst_105 = arith.constant dense<0.000000e+00> : vector<32x16xf32>
    %208 = tpu.matmul %205, %203, %cst_105 {dimension_numbers = #tpu.dot_dimension_numbers<[1], [0], [0], [1], [0, 0, 1, 1], [], []>} : vector<32x8xf32>, vector<8x16xf32>, vector<32x16xf32> -> vector<32x16xf32>
    %209 = arith.addf %201, %208 : vector<32x16xf32>
    %c24 = arith.constant 24 : index
    %c0_106 = arith.constant 0 : index
    %c0_107 = arith.constant 0 : index
    %210 = vector.load %arg4[%c24, %c0_106, %c0_107] : memref<25x8x16xf32, #tpu.memory_space<vmem>>, vector<1x8x16xf32>
    %211 = vector.shape_cast %210 : vector<1x8x16xf32> to vector<8x16xf32>
    %212 = vector.extract_strided_slice %15 {offsets = [448, 0], sizes = [32, 8], strides = [1, 1]} : vector<576x8xf32> to vector<32x8xf32>
    %213 = vector.extract_strided_slice %15 {offsets = [544, 0], sizes = [32, 8], strides = [1, 1]} : vector<576x8xf32> to vector<32x8xf32>
    %cst_108 = arith.constant dense<0.000000e+00> : vector<32x16xf32>
    %214 = tpu.matmul %212, %211, %cst_108 {dimension_numbers = #tpu.dot_dimension_numbers<[1], [0], [0], [1], [0, 0, 1, 1], [], []>} : vector<32x8xf32>, vector<8x16xf32>, vector<32x16xf32> -> vector<32x16xf32>
    %215 = arith.addf %207, %214 : vector<32x16xf32>
    %cst_109 = arith.constant dense<0.000000e+00> : vector<32x16xf32>
    %216 = tpu.matmul %213, %211, %cst_109 {dimension_numbers = #tpu.dot_dimension_numbers<[1], [0], [0], [1], [0, 0, 1, 1], [], []>} : vector<32x8xf32>, vector<8x16xf32>, vector<32x16xf32> -> vector<32x16xf32>
    %217 = arith.addf %209, %216 : vector<32x16xf32>
    %c0_110 = arith.constant 0 : index
    %c0_111 = arith.constant 0 : index
    %218 = vector.load %arg5[%c0_110, %c0_111] : memref<1x16xf32, #tpu.memory_space<vmem>>, vector<1x16xf32>
    %219 = vector.broadcast %218 : vector<1x16xf32> to vector<32x16xf32>
    %220 = arith.addf %215, %219 : vector<32x16xf32>
    %cst_112 = arith.constant 0.000000e+00 : f32
    %221 = vector.broadcast %cst_112 : f32 to vector<32x16xf32>
    %222 = arith.maximumf %220, %221 : vector<32x16xf32>
    %c0_113 = arith.constant 0 : index
    %c0_114 = arith.constant 0 : index
    %223 = vector.load %arg5[%c0_113, %c0_114] : memref<1x16xf32, #tpu.memory_space<vmem>>, vector<1x16xf32>
    %224 = vector.broadcast %223 : vector<1x16xf32> to vector<32x16xf32>
    %225 = arith.addf %217, %224 : vector<32x16xf32>
    %cst_115 = arith.constant 0.000000e+00 : f32
    %226 = vector.broadcast %cst_115 : f32 to vector<32x16xf32>
    %227 = arith.maximumf %225, %226 : vector<32x16xf32>
    %228 = vector.extract_strided_slice %222 {offsets = [0, 0], sizes = [16, 16], strides = [1, 1]} : vector<32x16xf32> to vector<16x16xf32>
    %229 = vector.extract_strided_slice %222 {offsets = [16, 0], sizes = [16, 16], strides = [1, 1]} : vector<32x16xf32> to vector<16x16xf32>
    %230 = arith.maximumf %228, %229 : vector<16x16xf32>
    %231 = vector.extract_strided_slice %227 {offsets = [0, 0], sizes = [16, 16], strides = [1, 1]} : vector<32x16xf32> to vector<16x16xf32>
    %232 = vector.extract_strided_slice %227 {offsets = [16, 0], sizes = [16, 16], strides = [1, 1]} : vector<32x16xf32> to vector<16x16xf32>
    %233 = arith.maximumf %231, %232 : vector<16x16xf32>
    %234 = arith.maximumf %230, %233 : vector<16x16xf32>
    %cst_116 = arith.constant 0.000000e+00 : f32
    %235 = vector.broadcast %cst_116 : f32 to vector<1x128xf32>
    %236 = vector.extract_strided_slice %234 {offsets = [0, 0], sizes = [1, 16], strides = [1, 1]} : vector<16x16xf32> to vector<1x16xf32>
    %c0_117 = arith.constant 0 : index
    %c0_118 = arith.constant 0 : index
    %c0_119 = arith.constant 0 : index
    %237 = vector.load %arg6[%c0_117, %c0_118, %c0_119] : memref<16x16x128xf32, #tpu.memory_space<vmem>>, vector<1x16x128xf32>
    %238 = vector.shape_cast %237 : vector<1x16x128xf32> to vector<16x128xf32>
    %cst_120 = arith.constant dense<0.000000e+00> : vector<1x128xf32>
    %239 = tpu.matmul %236, %238, %cst_120 {dimension_numbers = #tpu.dot_dimension_numbers<[1], [0], [0], [1], [0, 0, 1, 1], [], []>} : vector<1x16xf32>, vector<16x128xf32>, vector<1x128xf32> -> vector<1x128xf32>
    %240 = arith.addf %235, %239 : vector<1x128xf32>
    %241 = vector.extract_strided_slice %234 {offsets = [1, 0], sizes = [1, 16], strides = [1, 1]} : vector<16x16xf32> to vector<1x16xf32>
    %c1_121 = arith.constant 1 : index
    %c0_122 = arith.constant 0 : index
    %c0_123 = arith.constant 0 : index
    %242 = vector.load %arg6[%c1_121, %c0_122, %c0_123] : memref<16x16x128xf32, #tpu.memory_space<vmem>>, vector<1x16x128xf32>
    %243 = vector.shape_cast %242 : vector<1x16x128xf32> to vector<16x128xf32>
    %cst_124 = arith.constant dense<0.000000e+00> : vector<1x128xf32>
    %244 = tpu.matmul %241, %243, %cst_124 {dimension_numbers = #tpu.dot_dimension_numbers<[1], [0], [0], [1], [0, 0, 1, 1], [], []>} : vector<1x16xf32>, vector<16x128xf32>, vector<1x128xf32> -> vector<1x128xf32>
    %245 = arith.addf %240, %244 : vector<1x128xf32>
    %246 = vector.extract_strided_slice %234 {offsets = [2, 0], sizes = [1, 16], strides = [1, 1]} : vector<16x16xf32> to vector<1x16xf32>
    %c2_125 = arith.constant 2 : index
    %c0_126 = arith.constant 0 : index
    %c0_127 = arith.constant 0 : index
    %247 = vector.load %arg6[%c2_125, %c0_126, %c0_127] : memref<16x16x128xf32, #tpu.memory_space<vmem>>, vector<1x16x128xf32>
    %248 = vector.shape_cast %247 : vector<1x16x128xf32> to vector<16x128xf32>
    %cst_128 = arith.constant dense<0.000000e+00> : vector<1x128xf32>
    %249 = tpu.matmul %246, %248, %cst_128 {dimension_numbers = #tpu.dot_dimension_numbers<[1], [0], [0], [1], [0, 0, 1, 1], [], []>} : vector<1x16xf32>, vector<16x128xf32>, vector<1x128xf32> -> vector<1x128xf32>
    %250 = arith.addf %245, %249 : vector<1x128xf32>
    %251 = vector.extract_strided_slice %234 {offsets = [3, 0], sizes = [1, 16], strides = [1, 1]} : vector<16x16xf32> to vector<1x16xf32>
    %c3_129 = arith.constant 3 : index
    %c0_130 = arith.constant 0 : index
    %c0_131 = arith.constant 0 : index
    %252 = vector.load %arg6[%c3_129, %c0_130, %c0_131] : memref<16x16x128xf32, #tpu.memory_space<vmem>>, vector<1x16x128xf32>
    %253 = vector.shape_cast %252 : vector<1x16x128xf32> to vector<16x128xf32>
    %cst_132 = arith.constant dense<0.000000e+00> : vector<1x128xf32>
    %254 = tpu.matmul %251, %253, %cst_132 {dimension_numbers = #tpu.dot_dimension_numbers<[1], [0], [0], [1], [0, 0, 1, 1], [], []>} : vector<1x16xf32>, vector<16x128xf32>, vector<1x128xf32> -> vector<1x128xf32>
    %255 = arith.addf %250, %254 : vector<1x128xf32>
    %256 = vector.extract_strided_slice %234 {offsets = [4, 0], sizes = [1, 16], strides = [1, 1]} : vector<16x16xf32> to vector<1x16xf32>
    %c4_133 = arith.constant 4 : index
    %c0_134 = arith.constant 0 : index
    %c0_135 = arith.constant 0 : index
    %257 = vector.load %arg6[%c4_133, %c0_134, %c0_135] : memref<16x16x128xf32, #tpu.memory_space<vmem>>, vector<1x16x128xf32>
    %258 = vector.shape_cast %257 : vector<1x16x128xf32> to vector<16x128xf32>
    %cst_136 = arith.constant dense<0.000000e+00> : vector<1x128xf32>
    %259 = tpu.matmul %256, %258, %cst_136 {dimension_numbers = #tpu.dot_dimension_numbers<[1], [0], [0], [1], [0, 0, 1, 1], [], []>} : vector<1x16xf32>, vector<16x128xf32>, vector<1x128xf32> -> vector<1x128xf32>
    %260 = arith.addf %255, %259 : vector<1x128xf32>
    %261 = vector.extract_strided_slice %234 {offsets = [5, 0], sizes = [1, 16], strides = [1, 1]} : vector<16x16xf32> to vector<1x16xf32>
    %c5_137 = arith.constant 5 : index
    %c0_138 = arith.constant 0 : index
    %c0_139 = arith.constant 0 : index
    %262 = vector.load %arg6[%c5_137, %c0_138, %c0_139] : memref<16x16x128xf32, #tpu.memory_space<vmem>>, vector<1x16x128xf32>
    %263 = vector.shape_cast %262 : vector<1x16x128xf32> to vector<16x128xf32>
    %cst_140 = arith.constant dense<0.000000e+00> : vector<1x128xf32>
    %264 = tpu.matmul %261, %263, %cst_140 {dimension_numbers = #tpu.dot_dimension_numbers<[1], [0], [0], [1], [0, 0, 1, 1], [], []>} : vector<1x16xf32>, vector<16x128xf32>, vector<1x128xf32> -> vector<1x128xf32>
    %265 = arith.addf %260, %264 : vector<1x128xf32>
    %266 = vector.extract_strided_slice %234 {offsets = [6, 0], sizes = [1, 16], strides = [1, 1]} : vector<16x16xf32> to vector<1x16xf32>
    %c6_141 = arith.constant 6 : index
    %c0_142 = arith.constant 0 : index
    %c0_143 = arith.constant 0 : index
    %267 = vector.load %arg6[%c6_141, %c0_142, %c0_143] : memref<16x16x128xf32, #tpu.memory_space<vmem>>, vector<1x16x128xf32>
    %268 = vector.shape_cast %267 : vector<1x16x128xf32> to vector<16x128xf32>
    %cst_144 = arith.constant dense<0.000000e+00> : vector<1x128xf32>
    %269 = tpu.matmul %266, %268, %cst_144 {dimension_numbers = #tpu.dot_dimension_numbers<[1], [0], [0], [1], [0, 0, 1, 1], [], []>} : vector<1x16xf32>, vector<16x128xf32>, vector<1x128xf32> -> vector<1x128xf32>
    %270 = arith.addf %265, %269 : vector<1x128xf32>
    %271 = vector.extract_strided_slice %234 {offsets = [7, 0], sizes = [1, 16], strides = [1, 1]} : vector<16x16xf32> to vector<1x16xf32>
    %c7_145 = arith.constant 7 : index
    %c0_146 = arith.constant 0 : index
    %c0_147 = arith.constant 0 : index
    %272 = vector.load %arg6[%c7_145, %c0_146, %c0_147] : memref<16x16x128xf32, #tpu.memory_space<vmem>>, vector<1x16x128xf32>
    %273 = vector.shape_cast %272 : vector<1x16x128xf32> to vector<16x128xf32>
    %cst_148 = arith.constant dense<0.000000e+00> : vector<1x128xf32>
    %274 = tpu.matmul %271, %273, %cst_148 {dimension_numbers = #tpu.dot_dimension_numbers<[1], [0], [0], [1], [0, 0, 1, 1], [], []>} : vector<1x16xf32>, vector<16x128xf32>, vector<1x128xf32> -> vector<1x128xf32>
    %275 = arith.addf %270, %274 : vector<1x128xf32>
    %276 = vector.extract_strided_slice %234 {offsets = [8, 0], sizes = [1, 16], strides = [1, 1]} : vector<16x16xf32> to vector<1x16xf32>
    %c8_149 = arith.constant 8 : index
    %c0_150 = arith.constant 0 : index
    %c0_151 = arith.constant 0 : index
    %277 = vector.load %arg6[%c8_149, %c0_150, %c0_151] : memref<16x16x128xf32, #tpu.memory_space<vmem>>, vector<1x16x128xf32>
    %278 = vector.shape_cast %277 : vector<1x16x128xf32> to vector<16x128xf32>
    %cst_152 = arith.constant dense<0.000000e+00> : vector<1x128xf32>
    %279 = tpu.matmul %276, %278, %cst_152 {dimension_numbers = #tpu.dot_dimension_numbers<[1], [0], [0], [1], [0, 0, 1, 1], [], []>} : vector<1x16xf32>, vector<16x128xf32>, vector<1x128xf32> -> vector<1x128xf32>
    %280 = arith.addf %275, %279 : vector<1x128xf32>
    %281 = vector.extract_strided_slice %234 {offsets = [9, 0], sizes = [1, 16], strides = [1, 1]} : vector<16x16xf32> to vector<1x16xf32>
    %c9_153 = arith.constant 9 : index
    %c0_154 = arith.constant 0 : index
    %c0_155 = arith.constant 0 : index
    %282 = vector.load %arg6[%c9_153, %c0_154, %c0_155] : memref<16x16x128xf32, #tpu.memory_space<vmem>>, vector<1x16x128xf32>
    %283 = vector.shape_cast %282 : vector<1x16x128xf32> to vector<16x128xf32>
    %cst_156 = arith.constant dense<0.000000e+00> : vector<1x128xf32>
    %284 = tpu.matmul %281, %283, %cst_156 {dimension_numbers = #tpu.dot_dimension_numbers<[1], [0], [0], [1], [0, 0, 1, 1], [], []>} : vector<1x16xf32>, vector<16x128xf32>, vector<1x128xf32> -> vector<1x128xf32>
    %285 = arith.addf %280, %284 : vector<1x128xf32>
    %286 = vector.extract_strided_slice %234 {offsets = [10, 0], sizes = [1, 16], strides = [1, 1]} : vector<16x16xf32> to vector<1x16xf32>
    %c10_157 = arith.constant 10 : index
    %c0_158 = arith.constant 0 : index
    %c0_159 = arith.constant 0 : index
    %287 = vector.load %arg6[%c10_157, %c0_158, %c0_159] : memref<16x16x128xf32, #tpu.memory_space<vmem>>, vector<1x16x128xf32>
    %288 = vector.shape_cast %287 : vector<1x16x128xf32> to vector<16x128xf32>
    %cst_160 = arith.constant dense<0.000000e+00> : vector<1x128xf32>
    %289 = tpu.matmul %286, %288, %cst_160 {dimension_numbers = #tpu.dot_dimension_numbers<[1], [0], [0], [1], [0, 0, 1, 1], [], []>} : vector<1x16xf32>, vector<16x128xf32>, vector<1x128xf32> -> vector<1x128xf32>
    %290 = arith.addf %285, %289 : vector<1x128xf32>
    %291 = vector.extract_strided_slice %234 {offsets = [11, 0], sizes = [1, 16], strides = [1, 1]} : vector<16x16xf32> to vector<1x16xf32>
    %c11_161 = arith.constant 11 : index
    %c0_162 = arith.constant 0 : index
    %c0_163 = arith.constant 0 : index
    %292 = vector.load %arg6[%c11_161, %c0_162, %c0_163] : memref<16x16x128xf32, #tpu.memory_space<vmem>>, vector<1x16x128xf32>
    %293 = vector.shape_cast %292 : vector<1x16x128xf32> to vector<16x128xf32>
    %cst_164 = arith.constant dense<0.000000e+00> : vector<1x128xf32>
    %294 = tpu.matmul %291, %293, %cst_164 {dimension_numbers = #tpu.dot_dimension_numbers<[1], [0], [0], [1], [0, 0, 1, 1], [], []>} : vector<1x16xf32>, vector<16x128xf32>, vector<1x128xf32> -> vector<1x128xf32>
    %295 = arith.addf %290, %294 : vector<1x128xf32>
    %296 = vector.extract_strided_slice %234 {offsets = [12, 0], sizes = [1, 16], strides = [1, 1]} : vector<16x16xf32> to vector<1x16xf32>
    %c12_165 = arith.constant 12 : index
    %c0_166 = arith.constant 0 : index
    %c0_167 = arith.constant 0 : index
    %297 = vector.load %arg6[%c12_165, %c0_166, %c0_167] : memref<16x16x128xf32, #tpu.memory_space<vmem>>, vector<1x16x128xf32>
    %298 = vector.shape_cast %297 : vector<1x16x128xf32> to vector<16x128xf32>
    %cst_168 = arith.constant dense<0.000000e+00> : vector<1x128xf32>
    %299 = tpu.matmul %296, %298, %cst_168 {dimension_numbers = #tpu.dot_dimension_numbers<[1], [0], [0], [1], [0, 0, 1, 1], [], []>} : vector<1x16xf32>, vector<16x128xf32>, vector<1x128xf32> -> vector<1x128xf32>
    %300 = arith.addf %295, %299 : vector<1x128xf32>
    %301 = vector.extract_strided_slice %234 {offsets = [13, 0], sizes = [1, 16], strides = [1, 1]} : vector<16x16xf32> to vector<1x16xf32>
    %c13_169 = arith.constant 13 : index
    %c0_170 = arith.constant 0 : index
    %c0_171 = arith.constant 0 : index
    %302 = vector.load %arg6[%c13_169, %c0_170, %c0_171] : memref<16x16x128xf32, #tpu.memory_space<vmem>>, vector<1x16x128xf32>
    %303 = vector.shape_cast %302 : vector<1x16x128xf32> to vector<16x128xf32>
    %cst_172 = arith.constant dense<0.000000e+00> : vector<1x128xf32>
    %304 = tpu.matmul %301, %303, %cst_172 {dimension_numbers = #tpu.dot_dimension_numbers<[1], [0], [0], [1], [0, 0, 1, 1], [], []>} : vector<1x16xf32>, vector<16x128xf32>, vector<1x128xf32> -> vector<1x128xf32>
    %305 = arith.addf %300, %304 : vector<1x128xf32>
    %306 = vector.extract_strided_slice %234 {offsets = [14, 0], sizes = [1, 16], strides = [1, 1]} : vector<16x16xf32> to vector<1x16xf32>
    %c14_173 = arith.constant 14 : index
    %c0_174 = arith.constant 0 : index
    %c0_175 = arith.constant 0 : index
    %307 = vector.load %arg6[%c14_173, %c0_174, %c0_175] : memref<16x16x128xf32, #tpu.memory_space<vmem>>, vector<1x16x128xf32>
    %308 = vector.shape_cast %307 : vector<1x16x128xf32> to vector<16x128xf32>
    %cst_176 = arith.constant dense<0.000000e+00> : vector<1x128xf32>
    %309 = tpu.matmul %306, %308, %cst_176 {dimension_numbers = #tpu.dot_dimension_numbers<[1], [0], [0], [1], [0, 0, 1, 1], [], []>} : vector<1x16xf32>, vector<16x128xf32>, vector<1x128xf32> -> vector<1x128xf32>
    %310 = arith.addf %305, %309 : vector<1x128xf32>
    %311 = vector.extract_strided_slice %234 {offsets = [15, 0], sizes = [1, 16], strides = [1, 1]} : vector<16x16xf32> to vector<1x16xf32>
    %c15_177 = arith.constant 15 : index
    %c0_178 = arith.constant 0 : index
    %c0_179 = arith.constant 0 : index
    %312 = vector.load %arg6[%c15_177, %c0_178, %c0_179] : memref<16x16x128xf32, #tpu.memory_space<vmem>>, vector<1x16x128xf32>
    %313 = vector.shape_cast %312 : vector<1x16x128xf32> to vector<16x128xf32>
    %cst_180 = arith.constant dense<0.000000e+00> : vector<1x128xf32>
    %314 = tpu.matmul %311, %313, %cst_180 {dimension_numbers = #tpu.dot_dimension_numbers<[1], [0], [0], [1], [0, 0, 1, 1], [], []>} : vector<1x16xf32>, vector<16x128xf32>, vector<1x128xf32> -> vector<1x128xf32>
    %315 = arith.addf %310, %314 : vector<1x128xf32>
    %c0_181 = arith.constant 0 : index
    %c0_182 = arith.constant 0 : index
    %316 = vector.load %arg7[%c0_181, %c0_182] : memref<1x128xf32, #tpu.memory_space<vmem>>, vector<1x128xf32>
    %317 = arith.addf %315, %316 : vector<1x128xf32>
    %cst_183 = arith.constant 0.000000e+00 : f32
    %318 = vector.broadcast %cst_183 : f32 to vector<1x128xf32>
    %319 = arith.maximumf %317, %318 : vector<1x128xf32>
    %c0_184 = arith.constant 0 : index
    %c0_185 = arith.constant 0 : index
    %320 = vector.load %arg8[%c0_184, %c0_185] : memref<128x64xf32, #tpu.memory_space<vmem>>, vector<128x64xf32>
    %cst_186 = arith.constant dense<0.000000e+00> : vector<1x64xf32>
    %321 = tpu.matmul %319, %320, %cst_186 {dimension_numbers = #tpu.dot_dimension_numbers<[1], [0], [0], [1], [0, 0, 1, 1], [], []>} : vector<1x128xf32>, vector<128x64xf32>, vector<1x64xf32> -> vector<1x64xf32>
    %c0_187 = arith.constant 0 : index
    %c0_188 = arith.constant 0 : index
    %322 = vector.load %arg9[%c0_187, %c0_188] : memref<1x64xf32, #tpu.memory_space<vmem>>, vector<1x64xf32>
    %323 = arith.addf %321, %322 : vector<1x64xf32>
    %cst_189 = arith.constant 0.000000e+00 : f32
    %324 = vector.broadcast %cst_189 : f32 to vector<1x64xf32>
    %325 = arith.maximumf %323, %324 : vector<1x64xf32>
    %c0_190 = arith.constant 0 : index
    %c0_191 = arith.constant 0 : index
    %326 = vector.load %arg10[%c0_190, %c0_191] : memref<64x128xf32, #tpu.memory_space<vmem>>, vector<64x128xf32>
    %cst_192 = arith.constant dense<0.000000e+00> : vector<1x128xf32>
    %327 = tpu.matmul %325, %326, %cst_192 {dimension_numbers = #tpu.dot_dimension_numbers<[1], [0], [0], [1], [0, 0, 1, 1], [], []>} : vector<1x64xf32>, vector<64x128xf32>, vector<1x128xf32> -> vector<1x128xf32>
    %c0_193 = arith.constant 0 : index
    %c0_194 = arith.constant 0 : index
    %328 = vector.load %arg11[%c0_193, %c0_194] : memref<1x128xf32, #tpu.memory_space<vmem>>, vector<1x128xf32>
    %329 = arith.addf %327, %328 : vector<1x128xf32>
    %c0_195 = arith.constant 0 : index
    %c0_196 = arith.constant 0 : index
    %c0_197 = arith.constant 0 : index
    %330 = vector.load %arg12[%c0_195, %c0_196, %c0_197] : memref<1x1x128xf32, #tpu.memory_space<vmem>>, vector<1x1x128xf32>
    %331 = vector.shape_cast %330 : vector<1x1x128xf32> to vector<1x128xf32>
    %332 = vector.shape_cast %329 : vector<1x128xf32> to vector<1x1x128xf32>
    tpu.vector_store %arg12[%c0_195, %c0_196, %c0_197], %332 {strides = array<i32>} : memref<1x1x128xf32, #tpu.memory_space<vmem>>, vector<1x1x128xf32>,
    return
  }
  func.func @transform_0(%arg0: i32) -> (i32, i32, i32) {
    %c0_i32 = arith.constant 0 : i32
    %c0_i32_0 = arith.constant 0 : i32
    %c0_i32_1 = arith.constant 0 : i32
    return %arg0, %c0_i32, %c0_i32_0 : i32, i32, i32
  }
  func.func @transform_1(%arg0: i32) -> (i32, i32) {
    %c0_i32 = arith.constant 0 : i32
    %c0_i32_0 = arith.constant 0 : i32
    %c0_i32_1 = arith.constant 0 : i32
    return %c0_i32, %c0_i32_0 : i32, i32
  }
  func.func @transform_2(%arg0: i32) -> (i32, i32) {
    %c0_i32 = arith.constant 0 : i32
    %c0_i32_0 = arith.constant 0 : i32
    %c0_i32_1 = arith.constant 0 : i32
    return %c0_i32, %c0_i32_0 : i32, i32
  }
  func.func @transform_3(%arg0: i32) -> (i32, i32, i32) {
    %c0_i32 = arith.constant 0 : i32
    %c0_i32_0 = arith.constant 0 : i32
    %c0_i32_1 = arith.constant 0 : i32
    %c0_i32_2 = arith.constant 0 : i32
    return %c0_i32, %c0_i32_0, %c0_i32_1 : i32, i32, i32
  }
  func.func @transform_4(%arg0: i32) -> (i32, i32) {
    %c0_i32 = arith.constant 0 : i32
    %c0_i32_0 = arith.constant 0 : i32
    %c0_i32_1 = arith.constant 0 : i32
    return %c0_i32, %c0_i32_0 : i32, i32
  }
  func.func @transform_5(%arg0: i32) -> (i32, i32, i32) {
    %c0_i32 = arith.constant 0 : i32
    %c0_i32_0 = arith.constant 0 : i32
    %c0_i32_1 = arith.constant 0 : i32
    %c0_i32_2 = arith.constant 0 : i32
    return %c0_i32, %c0_i32_0, %c0_i32_1 : i32, i32, i32
  }
  func.func @transform_6(%arg0: i32) -> (i32, i32) {
    %c0_i32 = arith.constant 0 : i32
    %c0_i32_0 = arith.constant 0 : i32
    %c0_i32_1 = arith.constant 0 : i32
    return %c0_i32, %c0_i32_0 : i32, i32
  }
  func.func @transform_7(%arg0: i32) -> (i32, i32) {
    %c0_i32 = arith.constant 0 : i32
    %c0_i32_0 = arith.constant 0 : i32
    %c0_i32_1 = arith.constant 0 : i32
    return %c0_i32, %c0_i32_0 : i32, i32
  }
  func.func @transform_8(%arg0: i32) -> (i32, i32) {
    %c0_i32 = arith.constant 0 : i32
    %c0_i32_0 = arith.constant 0 : i32
    %c0_i32_1 = arith.constant 0 : i32
    return %c0_i32, %c0_i32_0 : i32, i32
  }
  func.func @transform_9(%arg0: i32) -> (i32, i32) {
    %c0_i32 = arith.constant 0 : i32
    %c0_i32_0 = arith.constant 0 : i32
    %c0_i32_1 = arith.constant 0 : i32
    return %c0_i32, %c0_i32_0 : i32, i32
  }
  func.func @transform_10(%arg0: i32) -> (i32, i32) {
    %c0_i32 = arith.constant 0 : i32
    %c0_i32_0 = arith.constant 0 : i32
    %c0_i32_1 = arith.constant 0 : i32
    return %c0_i32, %c0_i32_0 : i32, i32
  }
  func.func @transform_11(%arg0: i32) -> (i32, i32, i32) {
    %c0_i32 = arith.constant 0 : i32
    %c0_i32_0 = arith.constant 0 : i32
    %c0_i32_1 = arith.constant 0 : i32
    return %arg0, %c0_i32, %c0_i32_0 : i32, i32, i32
  }
}

</mosaic_0001>

<bundles_post_ra>
// kernel: cnn_forward.1
= control target key start
LH: loop header
LB: loop body
LE: loop exit
PB: predicated region body
PF: predicated region fallthrough
CT: control target
= control target key end

     0   :  { %s14716_s0 = inlined_call_operand.vmem [shape: f32[2,2304,25], index: 0, kind: input, shape index: {}]   ;;  %s14717_s1 = inlined_call_operand.vmem [shape: f32[25,8], index: 1, kind: input, shape index: {}]   ;;  %s14718_s2 = inlined_call_operand.vmem [shape: f32[1,8], index: 2, kind: input, shape index: {}]   ;;  %s14719_s3 = inlined_call_operand.vmem [shape: f32[25,8,16], index: 3, kind: input, shape index: {}]   ;;  %s14720_s4 = inlined_call_operand.vmem [shape: f32[1,16], index: 4, kind: input, shape index: {}]   ;;  %s14721_s5 = inlined_call_operand.vmem [shape: f32[16,16,128], index: 5, kind: input, shape index: {}]   ;;  %s14722_s6 = inlined_call_operand.vmem [shape: f32[1,128], index: 6, kind: input, shape index: {}]   ;;  %s14723_s7 = inlined_call_operand.vmem [shape: f32[128,64], index: 7, kind: input, shape index: {}]   ;;  %s14724_s8 = inlined_call_operand.vmem [shape: f32[1,64], index: 8, kind: input, shape index: {}]   ;;  %s14725_s9 = inlined_call_operand.vmem [shape: f32[64,128], index: 9, kind: input, shape index: {}]   ;;  %s14726_s10 = inlined_call_operand.vmem [shape: f32[1,128], index: 10, kind: input, shape index: {}]   ;;  %s14727_s11 = inlined_call_operand.hbm [shape: f32[2,1,128], index: 11, kind: output, shape index: {}]  }
   0x1   :  { %14747 = sst [smem:[#allocation116_spill]] %s14716_s0 }
   0x2   :  { %16 = vsyncpa [#allocation3], 0 }
   0x3   :  { %18 = vsyncpa [#allocation3 + $0x1], 0  ;;  %s12132_s17 = smov 0   ;;  %s12134_s18 = smov 0  }
   0x4   :  { %s12136_s19 = smov 0   ;;  %s12138_s20 = smov 0  }
   0x5 LB: > { %s12153_s21 = sadd.s32 4294967295, %s12067_s20   ;;  %s9763_s22 = sadd.s32 4294967294, %s12067_s20   ;;  %s12067_s20 = sphi %s12138_s20, %s15030_s20   ;;  %s12063_s19 = sphi %s12136_s19, %s15029_s19   ;;  %s12059_s18 = sphi %s12134_s18, %s15028_s18   ;;  %s12055_s17 = sphi %s12132_s17, %s15027_s17  }
   0x6   : > { %s12157_s23 = sadd.s32 1, %s12067_s20   ;;  %s267_s24 = sadd.s32 1, %s12063_s19 }
   0x7   : > { %s264_s25 = ssub.s32 %s12067_s20, %s12157_s23  ;;  %p277_p0 = scmp.ne.s32.totalorder %s12063_s19, %s12059_s18 }
   0x8   : > { %p265_p1 = scmp.eq.s32.totalorder %s264_s25, 0  ;;  %p278_p2 = scmp.eq.s32.totalorder %s12153_s21, 1 }
   0x9   : > { %p283_p3 = scmp.ne.s32.totalorder %s12059_s18, %s12055_s17  ;;  %p284_p4 = scmp.eq.s32.totalorder %s9763_s22, 1 }
   0xa   : > { %s12168_s26 = scalar_select %p265_p1, %s12063_s19, %s267_s24  }
   0xb   : > { %p12170_p5 = por %p278_p2, %p277_p0  ;;  %p12174_p6 = por %p284_p4, %p283_p3 }
   0xc   : > { %p9766_p7 = scmp.ge.s32.totalorder %s12067_s20, 1  ;;  %p340_p8 = scmp.lt.s32.totalorder %s12067_s20, 3 }
   0xe   : > { %p341_p9 = pnand %p9766_p7, %p340_p8 }
  0x10   : > { %344 = sbr.rel (%p341_p9) target bundleno = 1946 (0x79a), region = 64 }
  0x15   : > { %v675_v0 = vld [vmem:[%s14717_s1 + $0x18] sm:$0x1]  ;;  %vm1548_vm0 = vcmask 1040384   ;;  %v674_v1 = vld [vmem:[%s14717_s1 + $0x10] sm:$0xff]  ;;  %p379_p10 = scmp.lt.s32.totalorder %s12153_s21, 1  ;;  %v673_v2 = vld [vmem:[%s14717_s1 + $0x8] sm:$0xff] }
  0x16   : > { %10949 = vmatprep.subr.msk.mxu0 %vm1548_vm0, %v675_v0  ;;  %11955 = vmatprep.subr.msk.mxu1 %vm1548_vm0, %v675_v0  ;;  %v672_v3 = vld [vmem:[%s14717_s1] sm:$0xff]  ;;  %vm683_vm1 = vcmask 203776   ;;  %s14750_s0 = sld [smem:[#allocation116_spill]]  ;;  %vm3564_vm2 = vcmask 64512   ;;  %vm12070_vm3 = vmmov 0   ;;  %vm8297_vm4 = vcmask 130048  }
  0x17   : > { %10950 = vmatpush3.msk.msra.mxu0 %vm1548_vm0, %v675_v0  ;;  %s380_s16 = scalar_select %p379_p10, %s12153_s21, 1  ;;  %11959 = vmatpush3.msk.msra.mxu1 %vm1548_vm0, %v675_v0  ;;  %vm9620_vm5 = vcmask 523264  }
  0x18   : > { %10951 = vmatprep.subr.mxu0 %v674_v1  ;;  %11956 = vmatprep.subr.mxu1 %v674_v1  ;;  %s377_s22 = sand.u32 1, %s12059_s18   ;;  %s10330_s29 = sshll.u32 %s12153_s21, 4 }
  0x19   : > { %10952 = vmatpush3.msra.mxu0 %v674_v1  ;;  %s11963_s25 = smul.u32 2304, %s380_s16  ;;  %11960 = vmatpush3.msra.mxu1 %v674_v1  ;;  %s378_s30 = scalar_lea.vmem [#allocation2], %s377_s22 }
  0x1a   : > { %10953 = vmatprep.subr.mxu0 %v673_v2  ;;  %11957 = vmatprep.subr.mxu1 %v673_v2  ;;  %s14681_s15 = scalar_lea.hbm %s14727_s11, %s10330_s29  ;;  %s9696_s16 = scalar_lea.sflag [#allocation3], %s377_s22 }
  0x1b   : > { %10954 = vmatpush3.msra.mxu0 %v673_v2  ;;  %11961 = vmatpush3.msra.mxu1 %v673_v2  ;;  %s12071_s24 = smov [#allocation2]  }
  0x1c   : > { %s12197_s12 = scalar_lea.vmem %s14750_s0, %s11963_s25  ;;  %10955 = vmatprep.subr.mxu0 %v672_v3  ;;  %11958 = vmatprep.subr.mxu1 %v672_v3  ;;  %s12011_s21 = sshll.u32 %s12071_s24, 4  ;;  %s12012_s21 = int_to_ptr.vmem [resolvable:$false] %s12011_s21 }
  0x1d   : > { %v384_v4 = vld [vmem:[%s12197_s12] sm:$0xff]  ;;  %v385_v5 = vld [vmem:[%s12197_s12 + $0x8] sm:$0xff]  ;;  %v386_v6 = vld [vmem:[%s12197_s12 + $0x10] sm:$0xff]  ;;  %10956 = vmatpush3.msra.mxu0 %v672_v3  ;;  %11962 = vmatpush3.msra.mxu1 %v672_v3  ;;  %s12013_s25 = scalar_lea.vmem %s12012_s21, 32 }
  0x1e   : > { %10957 = vmatprep.mubr.msk.f32.mxu0 %vm683_vm1, %v384_v4  ;;  %v387_v7 = vld [vmem:[%s12197_s12 + $0x18] sm:$0xff]  ;;  %v388_v8 = vld [vmem:[%s12197_s12 + $0x20] sm:$0xff]  ;;  %v389_v9 = vld [vmem:[%s12197_s12 + $0x28] sm:$0xff] }
  0x1f   : > { %10958 = vmatmul.mubr.msk.f32.vlgmr.msra.gmra.mxu0 %vm683_vm1, %v385_v5  ;;  %v390_v10 = vld [vmem:[%s12197_s12 + $0x30] sm:$0xff]  ;;  %v391_v11 = vld [vmem:[%s12197_s12 + $0x38] sm:$0xff]  ;;  %v392_v12 = vld [vmem:[%s12197_s12 + $0x40] sm:$0xff] }
  0x20   : > { %10960 = vmatprep.mubr.msk.f32.mxu0 %vm683_vm1, %v386_v6  ;;  %v393_v13 = vld [vmem:[%s12197_s12 + $0x48] sm:$0xff]  ;;  %v394_v14 = vld [vmem:[%s12197_s12 + $0x50] sm:$0xff]  ;;  %v395_v15 = vld [vmem:[%s12197_s12 + $0x58] sm:$0xff] }
  0x21   : > { %v396_v16 = vld [vmem:[%s12197_s12 + $0x60] sm:$0xff]  ;;  %v397_v17 = vld [vmem:[%s12197_s12 + $0x68] sm:$0xff]  ;;  %v398_v18 = vld [vmem:[%s12197_s12 + $0x70] sm:$0xff] }
  0x22   : > { %v399_v19 = vld [vmem:[%s12197_s12 + $0x78] sm:$0xff]  ;;  %v400_v20 = vld [vmem:[%s12197_s12 + $0x80] sm:$0xff]  ;;  %v401_v21 = vld [vmem:[%s12197_s12 + $0x88] sm:$0xff] }
  0x23   : > { %10961 = vmatmul.mubr.msk.f32.gmra.mxu0 %vm683_vm1, %v387_v7  ;;  %v402_v22 = vld [vmem:[%s12197_s12 + $0x90] sm:$0xff]  ;;  %v403_v23 = vld [vmem:[%s12197_s12 + $0x98] sm:$0xff]  ;;  %v404_v24 = vld [vmem:[%s12197_s12 + $0xa0] sm:$0xff] }
  0x24   : > { %10963 = vmatprep.mubr.msk.f32.mxu0 %vm683_vm1, %v388_v8  ;;  %v405_v25 = vld [vmem:[%s12197_s12 + $0xa8] sm:$0xff]  ;;  %v406_v26 = vld [vmem:[%s12197_s12 + $0xb0] sm:$0xff]  ;;  %v407_v27 = vld [vmem:[%s12197_s12 + $0xb8] sm:$0xff] }
  0x25   : > { %v408_v28 = vld [vmem:[%s12197_s12 + $0xc0] sm:$0xff]  ;;  %v409_v29 = vld [vmem:[%s12197_s12 + $0xc8] sm:$0xff]  ;;  %v410_v30 = vld [vmem:[%s12197_s12 + $0xd0] sm:$0xff] }
  0x26   : > { %v411_v31 = vld [vmem:[%s12197_s12 + $0xd8] sm:$0xff]  ;;  %v412_v32 = vld [vmem:[%s12197_s12 + $0xe0] sm:$0xff]  ;;  %v413_v33 = vld [vmem:[%s12197_s12 + $0xe8] sm:$0xff] }
  0x27   : > { %10964 = vmatmul.mubr.msk.f32.gmra.mxu0 %vm683_vm1, %v389_v9  ;;  %v414_v34 = vld [vmem:[%s12197_s12 + $0xf0] sm:$0xff]  ;;  %v415_v35 = vld [vmem:[%s12197_s12 + $0xf8] sm:$0xff]  ;;  %v416_v36 = vld [vmem:[%s12197_s12 + $0x100] sm:$0xff] }
  0x28   : > { %10966 = vmatprep.mubr.msk.f32.mxu0 %vm683_vm1, %v390_v10  ;;  %v417_v37 = vld [vmem:[%s12197_s12 + $0x108] sm:$0xff]  ;;  %v418_v38 = vld [vmem:[%s12197_s12 + $0x110] sm:$0xff]  ;;  %v419_v39 = vld [vmem:[%s12197_s12 + $0x118] sm:$0xff] }
  0x29   : > { %v420_v40 = vld [vmem:[%s12197_s12 + $0x120] sm:$0xff]  ;;  %v421_v41 = vld [vmem:[%s12197_s12 + $0x128] sm:$0xff]  ;;  %v422_v42 = vld [vmem:[%s12197_s12 + $0x130] sm:$0xff] }
  0x2a   : > { %v423_v43 = vld [vmem:[%s12197_s12 + $0x138] sm:$0xff]  ;;  %v424_v44 = vld [vmem:[%s12197_s12 + $0x140] sm:$0xff]  ;;  %v425_v45 = vld [vmem:[%s12197_s12 + $0x148] sm:$0xff] }
  0x2b   : > { %10967 = vmatmul.mubr.msk.f32.gmra.mxu0 %vm683_vm1, %v391_v11  ;;  %v426_v46 = vld [vmem:[%s12197_s12 + $0x150] sm:$0xff]  ;;  %v427_v47 = vld [vmem:[%s12197_s12 + $0x158] sm:$0xff]  ;;  %v428_v48 = vld [vmem:[%s12197_s12 + $0x160] sm:$0xff] }
  0x2c   : > { %10969 = vmatprep.mubr.msk.f32.mxu0 %vm683_vm1, %v392_v12  ;;  %v429_v49 = vld [vmem:[%s12197_s12 + $0x168] sm:$0xff]  ;;  %v430_v50 = vld [vmem:[%s12197_s12 + $0x170] sm:$0xff]  ;;  %v431_v51 = vld [vmem:[%s12197_s12 + $0x178] sm:$0xff] }
  0x2d   : > { %v432_v52 = vld [vmem:[%s12197_s12 + $0x180] sm:$0xff]  ;;  %v433_v53 = vld [vmem:[%s12197_s12 + $0x188] sm:$0xff]  ;;  %v434_v54 = vld [vmem:[%s12197_s12 + $0x190] sm:$0xff] }
  0x2e   : > { %v435_v55 = vld [vmem:[%s12197_s12 + $0x198] sm:$0xff]  ;;  %v436_v56 = vld [vmem:[%s12197_s12 + $0x1a0] sm:$0xff]  ;;  %v437_v57 = vld [vmem:[%s12197_s12 + $0x1a8] sm:$0xff] }
  0x2f   : > { %10970 = vmatmul.mubr.msk.f32.gmra.mxu0 %vm683_vm1, %v393_v13  ;;  %v438_v58 = vld [vmem:[%s12197_s12 + $0x1b0] sm:$0xff]  ;;  %v439_v59 = vld [vmem:[%s12197_s12 + $0x1b8] sm:$0xff]  ;;  %v440_v60 = vld [vmem:[%s12197_s12 + $0x1c0] sm:$0xff] }
  0x30   : > { %10972 = vmatprep.mubr.msk.f32.mxu0 %vm683_vm1, %v394_v14  ;;  %v441_v61 = vld [vmem:[%s12197_s12 + $0x1c8] sm:$0xff]  ;;  %v442_v62 = vld [vmem:[%s12197_s12 + $0x1d0] sm:$0xff]  ;;  %v443_v63 = vld [vmem:[%s12197_s12 + $0x1d8] sm:$0xff] }
  0x31   : > { %v444_v0 = vld [vmem:[%s12197_s12 + $0x1e0] sm:$0xff]  ;;  %v445_v1 = vld [vmem:[%s12197_s12 + $0x1e8] sm:$0xff]  ;;  %v446_v2 = vld [vmem:[%s12197_s12 + $0x1f0] sm:$0xff] }
  0x32   : > { %v447_v3 = vld [vmem:[%s12197_s12 + $0x1f8] sm:$0xff]  ;;  %v448_v4 = vld [vmem:[%s12197_s12 + $0x200] sm:$0xff]  ;;  %v449_v5 = vld [vmem:[%s12197_s12 + $0x208] sm:$0xff] }
  0x33   : > { %10973 = vmatmul.mubr.msk.f32.gmra.mxu0 %vm683_vm1, %v395_v15  ;;  %v450_v6 = vld [vmem:[%s12197_s12 + $0x210] sm:$0xff]  ;;  %v451_v7 = vld [vmem:[%s12197_s12 + $0x218] sm:$0xff]  ;;  %v452_v8 = vld [vmem:[%s12197_s12 + $0x220] sm:$0xff] }
  0x34   : > { %10975 = vmatprep.mubr.msk.f32.mxu0 %vm683_vm1, %v396_v16  ;;  %v453_v9 = vld [vmem:[%s12197_s12 + $0x228] sm:$0xff]  ;;  %v454_v10 = vld [vmem:[%s12197_s12 + $0x230] sm:$0xff]  ;;  %v455_v11 = vld [vmem:[%s12197_s12 + $0x238] sm:$0xff] }
  0x35   : > { %v456_v12 = vld [vmem:[%s12197_s12 + $0x240] sm:$0xff]  ;;  %v457_v13 = vld [vmem:[%s12197_s12 + $0x248] sm:$0xff]  ;;  %v458_v14 = vld [vmem:[%s12197_s12 + $0x250] sm:$0xff] }
  0x36   : > { %v459_v15 = vld [vmem:[%s12197_s12 + $0x258] sm:$0xff]  ;;  %v460_v16 = vld [vmem:[%s12197_s12 + $0x260] sm:$0xff] }
  0x37   : > { %10976 = vmatmul.mubr.msk.f32.gmra.mxu0 %vm683_vm1, %v397_v17  ;;  %v461_v17 = vld [vmem:[%s12197_s12 + $0x268] sm:$0xff] }
  0x38   : > { %10978 = vmatprep.mubr.msk.f32.mxu0 %vm683_vm1, %v398_v18  ;;  %v462_v18 = vld [vmem:[%s12197_s12 + $0x270] sm:$0xff] }
  0x3b   : > { %10979 = vmatmul.mubr.msk.f32.gmra.mxu0 %vm683_vm1, %v399_v19  ;;  %v463_v19 = vld [vmem:[%s12197_s12 + $0x278] sm:$0xff] }
  0x3c   : > { %10981 = vmatprep.mubr.msk.f32.mxu0 %vm683_vm1, %v400_v20  ;;  %v464_v20 = vld [vmem:[%s12197_s12 + $0x280] sm:$0xff] }
  0x3f   : > { %10982 = vmatmul.mubr.msk.f32.gmra.mxu0 %vm683_vm1, %v401_v21  ;;  %v465_v21 = vld [vmem:[%s12197_s12 + $0x288] sm:$0xff] }
  0x40   : > { %10984 = vmatprep.mubr.msk.f32.mxu0 %vm683_vm1, %v402_v22  ;;  %v466_v22 = vld [vmem:[%s12197_s12 + $0x290] sm:$0xff] }
  0x43   : > { %10985 = vmatmul.mubr.msk.f32.gmra.mxu0 %vm683_vm1, %v403_v23  ;;  %v467_v23 = vld [vmem:[%s12197_s12 + $0x298] sm:$0xff] }
  0x44   : > { %10987 = vmatprep.mubr.msk.f32.mxu0 %vm683_vm1, %v404_v24  ;;  %v468_v24 = vld [vmem:[%s12197_s12 + $0x2a0] sm:$0xff] }
  0x47   : > { %10988 = vmatmul.mubr.msk.f32.gmra.mxu0 %vm683_vm1, %v405_v25  ;;  %v469_v25 = vld [vmem:[%s12197_s12 + $0x2a8] sm:$0xff] }
  0x48   : > { %10990 = vmatprep.mubr.msk.f32.mxu0 %vm683_vm1, %v406_v26  ;;  %v470_v26 = vld [vmem:[%s12197_s12 + $0x2b0] sm:$0xff] }
  0x4b   : > { %10991 = vmatmul.mubr.msk.f32.gmra.mxu0 %vm683_vm1, %v407_v27  ;;  %v471_v27 = vld [vmem:[%s12197_s12 + $0x2b8] sm:$0xff] }
  0x4c   : > { %10993 = vmatprep.mubr.msk.f32.mxu0 %vm683_vm1, %v408_v28  ;;  %v472_v28 = vld [vmem:[%s12197_s12 + $0x2c0] sm:$0xff] }
  0x4f   : > { %10994 = vmatmul.mubr.msk.f32.gmra.mxu0 %vm683_vm1, %v409_v29  ;;  %v473_v29 = vld [vmem:[%s12197_s12 + $0x2c8] sm:$0xff] }
  0x50   : > { %10996 = vmatprep.mubr.msk.f32.mxu0 %vm683_vm1, %v410_v30  ;;  %v474_v30 = vld [vmem:[%s12197_s12 + $0x2d0] sm:$0xff] }
  0x53   : > { %10997 = vmatmul.mubr.msk.f32.gmra.mxu0 %vm683_vm1, %v411_v31  ;;  %v475_v31 = vld [vmem:[%s12197_s12 + $0x2d8] sm:$0xff] }
  0x54   : > { %10999 = vmatprep.mubr.msk.f32.mxu0 %vm683_vm1, %v412_v32  ;;  %v476_v32 = vld [vmem:[%s12197_s12 + $0x2e0] sm:$0xff] }
  0x57   : > { %11000 = vmatmul.mubr.msk.f32.gmra.mxu0 %vm683_vm1, %v413_v33  ;;  %v477_v33 = vld [vmem:[%s12197_s12 + $0x2e8] sm:$0xff] }
  0x58   : > { %11002 = vmatprep.mubr.msk.f32.mxu0 %vm683_vm1, %v414_v34  ;;  %v478_v34 = vld [vmem:[%s12197_s12 + $0x2f0] sm:$0xff] }
  0x5b   : > { %11003 = vmatmul.mubr.msk.f32.gmra.mxu0 %vm683_vm1, %v415_v35  ;;  %v479_v35 = vld [vmem:[%s12197_s12 + $0x2f8] sm:$0xff] }
  0x5c   : > { %11005 = vmatprep.mubr.msk.f32.mxu0 %vm683_vm1, %v416_v36  ;;  %v480_v36 = vld [vmem:[%s12197_s12 + $0x300] sm:$0xff] }
  0x5f   : > { %11006 = vmatmul.mubr.msk.f32.gmra.mxu0 %vm683_vm1, %v417_v37  ;;  %v481_v37 = vld [vmem:[%s12197_s12 + $0x308] sm:$0xff] }
  0x60   : > { %11008 = vmatprep.mubr.msk.f32.mxu0 %vm683_vm1, %v418_v38  ;;  %v482_v38 = vld [vmem:[%s12197_s12 + $0x310] sm:$0xff] }
  0x63   : > { %11009 = vmatmul.mubr.msk.f32.gmra.mxu0 %vm683_vm1, %v419_v39 }
  0x64   : > { %11011 = vmatprep.mubr.msk.f32.mxu0 %vm683_vm1, %v420_v40  ;;  %v483_v40 = vld [vmem:[%s12197_s12 + $0x318] sm:$0xff] }
  0x67   : > { %11012 = vmatmul.mubr.msk.f32.gmra.mxu0 %vm683_vm1, %v421_v41 }
  0x68   : > { %11014 = vmatprep.mubr.msk.f32.mxu0 %vm683_vm1, %v422_v42  ;;  %v484_v42 = vld [vmem:[%s12197_s12 + $0x320] sm:$0xff] }
  0x6b   : > { %11015 = vmatmul.mubr.msk.f32.gmra.mxu0 %vm683_vm1, %v423_v43 }
  0x6c   : > { %11017 = vmatprep.mubr.msk.f32.mxu0 %vm683_vm1, %v424_v44  ;;  %v485_v44 = vld [vmem:[%s12197_s12 + $0x328] sm:$0xff] }
  0x6f   : > { %11018 = vmatmul.mubr.msk.f32.gmra.mxu0 %vm683_vm1, %v425_v45 }
  0x70   : > { %11020 = vmatprep.mubr.msk.f32.mxu0 %vm683_vm1, %v426_v46  ;;  %v486_v46 = vld [vmem:[%s12197_s12 + $0x330] sm:$0xff] }
  0x73   : > { %11021 = vmatmul.mubr.msk.f32.gmra.mxu0 %vm683_vm1, %v427_v47 }
  0x74   : > { %11023 = vmatprep.mubr.msk.f32.mxu0 %vm683_vm1, %v428_v48  ;;  %v487_v48 = vld [vmem:[%s12197_s12 + $0x338] sm:$0xff] }
  0x77   : > { %11024 = vmatmul.mubr.msk.f32.gmra.mxu0 %vm683_vm1, %v429_v49 }
  0x78   : > { %11026 = vmatprep.mubr.msk.f32.mxu0 %vm683_vm1, %v430_v50  ;;  %v488_v50 = vld [vmem:[%s12197_s12 + $0x340] sm:$0xff] }
  0x7b   : > { %11027 = vmatmul.mubr.msk.f32.gmra.mxu0 %vm683_vm1, %v431_v51 }
  0x7c   : > { %11029 = vmatprep.mubr.msk.f32.mxu0 %vm683_vm1, %v432_v52  ;;  %v489_v52 = vld [vmem:[%s12197_s12 + $0x348] sm:$0xff] }
  0x7f   : > { %11030 = vmatmul.mubr.msk.f32.gmra.mxu0 %vm683_vm1, %v433_v53 }
  0x80   : > { %11032 = vmatprep.mubr.msk.f32.mxu0 %vm683_vm1, %v434_v54  ;;  %v490_v54 = vld [vmem:[%s12197_s12 + $0x350] sm:$0xff] }
  0x83   : > { %11033 = vmatmul.mubr.msk.f32.gmra.mxu0 %vm683_vm1, %v435_v55 }
  0x84   : > { %11035 = vmatprep.mubr.msk.f32.mxu0 %vm683_vm1, %v436_v56  ;;  %v491_v56 = vld [vmem:[%s12197_s12 + $0x358] sm:$0xff] }
  0x87   : > { %11036 = vmatmul.mubr.msk.f32.gmra.mxu0 %vm683_vm1, %v437_v57 }
  0x88   : > { %11038 = vmatprep.mubr.msk.f32.mxu0 %vm683_vm1, %v438_v58  ;;  %v492_v58 = vld [vmem:[%s12197_s12 + $0x360] sm:$0xff] }
  0x8b   : > { %11039 = vmatmul.mubr.msk.f32.gmra.mxu0 %vm683_vm1, %v439_v59 }
  0x8c   : > { %11041 = vmatprep.mubr.msk.f32.mxu0 %vm683_vm1, %v440_v60  ;;  %v493_v60 = vld [vmem:[%s12197_s12 + $0x368] sm:$0xff] }
  0x8f   : > { %11042 = vmatmul.mubr.msk.f32.gmra.mxu0 %vm683_vm1, %v441_v61 }
  0x90   : > { %11044 = vmatprep.mubr.msk.f32.mxu0 %vm683_vm1, %v442_v62  ;;  %v494_v62 = vld [vmem:[%s12197_s12 + $0x370] sm:$0xff] }
  0x93   : > { %11045 = vmatmul.mubr.msk.f32.gmra.mxu0 %vm683_vm1, %v443_v63 }
  0x94   : > { %11047 = vmatprep.mubr.msk.f32.mxu0 %vm683_vm1, %v444_v0  ;;  %v495_v0 = vld [vmem:[%s12197_s12 + $0x378] sm:$0xff] }
  0x97   : > { %11048 = vmatmul.mubr.msk.f32.gmra.mxu0 %vm683_vm1, %v445_v1 }
  0x98   : > { %11050 = vmatprep.mubr.msk.f32.mxu0 %vm683_vm1, %v446_v2  ;;  %v496_v2 = vld [vmem:[%s12197_s12 + $0x380] sm:$0xff] }
  0x9b   : > { %11051 = vmatmul.mubr.msk.f32.gmra.mxu0 %vm683_vm1, %v447_v3 }
  0x9c   : > { %11053 = vmatprep.mubr.msk.f32.mxu0 %vm683_vm1, %v448_v4  ;;  %v497_v4 = vld [vmem:[%s12197_s12 + $0x388] sm:$0xff] }
  0x9f   : > { %11054 = vmatmul.mubr.msk.f32.gmra.mxu0 %vm683_vm1, %v449_v5 }
  0xa0   : > { %11056 = vmatprep.mubr.msk.f32.mxu0 %vm683_vm1, %v450_v6  ;;  %v498_v6 = vld [vmem:[%s12197_s12 + $0x390] sm:$0xff] }
  0xa3   : > { %11057 = vmatmul.mubr.msk.f32.gmra.mxu0 %vm683_vm1, %v451_v7 }
  0xa4   : > { %11059 = vmatprep.mubr.msk.f32.mxu0 %vm683_vm1, %v452_v8  ;;  %v499_v8 = vld [vmem:[%s12197_s12 + $0x398] sm:$0xff] }
  0xa7   : > { %11060 = vmatmul.mubr.msk.f32.gmra.mxu0 %vm683_vm1, %v453_v9 }
  0xa8   : > { %11062 = vmatprep.mubr.msk.f32.mxu0 %vm683_vm1, %v454_v10  ;;  %v500_v10 = vld [vmem:[%s12197_s12 + $0x3a0] sm:$0xff] }
  0xab   : > { %11063 = vmatmul.mubr.msk.f32.gmra.mxu0 %vm683_vm1, %v455_v11 }
  0xac   : > { %11065 = vmatprep.mubr.msk.f32.mxu0 %vm683_vm1, %v456_v12  ;;  %v501_v12 = vld [vmem:[%s12197_s12 + $0x3a8] sm:$0xff] }
  0xaf   : > { %11066 = vmatmul.mubr.msk.f32.gmra.mxu0 %vm683_vm1, %v457_v13 }
  0xb0   : > { %11068 = vmatprep.mubr.msk.f32.mxu0 %vm683_vm1, %v458_v14  ;;  %v502_v14 = vld [vmem:[%s12197_s12 + $0x3b0] sm:$0xff] }
  0xb3   : > { %11069 = vmatmul.mubr.msk.f32.gmra.mxu0 %vm683_vm1, %v459_v15 }
  0xb4   : > { %11071 = vmatprep.mubr.msk.f32.mxu0 %vm683_vm1, %v460_v16  ;;  %v503_v16 = vld [vmem:[%s12197_s12 + $0x3b8] sm:$0xff] }
  0xb7   : > { %11072 = vmatmul.mubr.msk.f32.gmra.mxu0 %vm683_vm1, %v461_v17 }
  0xb8   : > { %11074 = vmatprep.mubr.msk.f32.mxu0 %vm683_vm1, %v462_v18  ;;  %v504_v18 = vld [vmem:[%s12197_s12 + $0x3c0] sm:$0xff] }
  0xbb   : > { %11075 = vmatmul.mubr.msk.f32.gmra.mxu0 %vm683_vm1, %v463_v19 }
  0xbc   : > { %11077 = vmatprep.mubr.msk.f32.mxu0 %vm683_vm1, %v464_v20  ;;  %v505_v20 = vld [vmem:[%s12197_s12 + $0x3c8] sm:$0xff] }
  0xbf   : > { %11078 = vmatmul.mubr.msk.f32.gmra.mxu0 %vm683_vm1, %v465_v21 }
  0xc0   : > { %11080 = vmatprep.mubr.msk.f32.mxu0 %vm683_vm1, %v466_v22  ;;  %v506_v22 = vld [vmem:[%s12197_s12 + $0x3d0] sm:$0xff] }
  0xc3   : > { %11081 = vmatmul.mubr.msk.f32.gmra.mxu0 %vm683_vm1, %v467_v23 }
  0xc4   : > { %11083 = vmatprep.mubr.msk.f32.mxu0 %vm683_vm1, %v468_v24  ;;  %v507_v24 = vld [vmem:[%s12197_s12 + $0x3d8] sm:$0xff] }
  0xc7   : > { %11084 = vmatmul.mubr.msk.f32.gmra.mxu0 %vm683_vm1, %v469_v25 }
  0xc8   : > { %11086 = vmatprep.mubr.msk.f32.mxu0 %vm683_vm1, %v470_v26  ;;  %v508_v26 = vld [vmem:[%s12197_s12 + $0x3e0] sm:$0xff] }
  0xcb   : > { %11087 = vmatmul.mubr.msk.f32.gmra.mxu0 %vm683_vm1, %v471_v27 }
  0xcc   : > { %11089 = vmatprep.mubr.msk.f32.mxu0 %vm683_vm1, %v472_v28  ;;  %v509_v28 = vld [vmem:[%s12197_s12 + $0x3e8] sm:$0xff] }
  0xcf   : > { %11090 = vmatmul.mubr.msk.f32.gmra.mxu0 %vm683_vm1, %v473_v29 }
  0xd0   : > { %11092 = vmatprep.mubr.msk.f32.mxu0 %vm683_vm1, %v474_v30  ;;  %v510_v30 = vld [vmem:[%s12197_s12 + $0x3f0] sm:$0xff] }
  0xd3   : > { %11093 = vmatmul.mubr.msk.f32.gmra.mxu0 %vm683_vm1, %v475_v31 }
  0xd4   : > { %11095 = vmatprep.mubr.msk.f32.mxu0 %vm683_vm1, %v476_v32  ;;  %v511_v32 = vld [vmem:[%s12197_s12 + $0x3f8] sm:$0xff] }
  0xd7   : > { %11096 = vmatmul.mubr.msk.f32.gmra.mxu0 %vm683_vm1, %v477_v33 }
  0xd8   : > { %11098 = vmatprep.mubr.msk.f32.mxu0 %vm683_vm1, %v478_v34  ;;  %v512_v34 = vld [vmem:[%s12197_s12 + $0x400] sm:$0xff] }
  0xdb   : > { %11099 = vmatmul.mubr.msk.f32.gmra.mxu0 %vm683_vm1, %v479_v35 }
  0xdc   : > { %11101 = vmatprep.mubr.msk.f32.mxu0 %vm683_vm1, %v480_v36  ;;  %v513_v36 = vld [vmem:[%s12197_s12 + $0x408] sm:$0xff] }
  0xdf   : > { %v12395_v39 = vpop.f32.mrf.mxu0  ;;  %11102 = vmatmul.mubr.msk.f32.gmra.mxu0 %vm683_vm1, %v481_v37 }
  0xe0   : > { %11104 = vmatprep.mubr.msk.f32.mxu0 %vm683_vm1, %v482_v38  ;;  %v514_v38 = vld [vmem:[%s12197_s12 + $0x410] sm:$0xff] }
  0xe1   : > { %v12400_v41 = vpop.f32.mrf.mxu0 }
  0xe3   : > { %v12403_v43 = vpop.f32.mrf.mxu0  ;;  %11105 = vmatmul.mubr.msk.f32.gmra.mxu0 %vm683_vm1, %v483_v40 }
  0xe4   : > { %11107 = vmatprep.mubr.msk.f32.mxu0 %vm683_vm1, %v484_v42  ;;  %v515_v42 = vld [vmem:[%s12197_s12 + $0x418] sm:$0xff] }
  0xe5   : > { %v12408_v45 = vpop.f32.mrf.mxu0 }
  0xe7   : > { %v12411_v47 = vpop.f32.mrf.mxu0  ;;  %11108 = vmatmul.mubr.msk.f32.gmra.mxu0 %vm683_vm1, %v485_v44 }
  0xe8   : > { %11110 = vmatprep.mubr.msk.f32.mxu0 %vm683_vm1, %v486_v46  ;;  %v516_v46 = vld [vmem:[%s12197_s12 + $0x420] sm:$0xff] }
  0xe9   : > { %v12416_v49 = vpop.f32.mrf.mxu0 }
  0xeb   : > { %v12419_v51 = vpop.f32.mrf.mxu0  ;;  %11111 = vmatmul.mubr.msk.f32.gmra.mxu0 %vm683_vm1, %v487_v48 }
  0xec   : > { %11113 = vmatprep.mubr.msk.f32.mxu0 %vm683_vm1, %v488_v50  ;;  %v517_v50 = vld [vmem:[%s12197_s12 + $0x428] sm:$0xff] }
  0xed   : > { %v12424_v53 = vpop.f32.mrf.mxu0 }
  0xef   : > { %v12427_v55 = vpop.f32.mrf.mxu0  ;;  %11114 = vmatmul.mubr.msk.f32.gmra.mxu0 %vm683_vm1, %v489_v52 }
  0xf0   : > { %11116 = vmatprep.mubr.msk.f32.mxu0 %vm683_vm1, %v490_v54  ;;  %v518_v54 = vld [vmem:[%s12197_s12 + $0x430] sm:$0xff] }
  0xf1   : > { %v12432_v57 = vpop.f32.mrf.mxu0 }
  0xf3   : > { %v12435_v59 = vpop.f32.mrf.mxu0  ;;  %11117 = vmatmul.mubr.msk.f32.gmra.mxu0 %vm683_vm1, %v491_v56 }
  0xf4   : > { %11119 = vmatprep.mubr.msk.f32.mxu0 %vm683_vm1, %v492_v58  ;;  %v519_v58 = vld [vmem:[%s12197_s12 + $0x438] sm:$0xff] }
  0xf5   : > { %v12440_v61 = vpop.f32.mrf.mxu0 }
  0xf7   : > { %v12443_v63 = vpop.f32.mrf.mxu0  ;;  %11120 = vmatmul.mubr.msk.f32.gmra.mxu0 %vm683_vm1, %v493_v60 }
  0xf8   : > { %11122 = vmatprep.mubr.msk.f32.mxu0 %vm683_vm1, %v494_v62  ;;  %v520_v62 = vld [vmem:[%s12197_s12 + $0x440] sm:$0xff] }
  0xf9   : > { %v12448_v1 = vpop.f32.mrf.mxu0 }
  0xfb   : > { %v12451_v3 = vpop.f32.mrf.mxu0  ;;  %11123 = vmatmul.mubr.msk.f32.gmra.mxu0 %vm683_vm1, %v495_v0 }
  0xfc   : > { %11125 = vmatprep.mubr.msk.f32.mxu0 %vm683_vm1, %v496_v2  ;;  %v521_v2 = vld [vmem:[%s12197_s12 + $0x448] sm:$0xff] }
  0xfd   : > { %v12456_v5 = vpop.f32.mrf.mxu0 }
  0xff   : > { %v12459_v7 = vpop.f32.mrf.mxu0  ;;  %11126 = vmatmul.mubr.msk.f32.gmra.mxu0 %vm683_vm1, %v497_v4 }
 0x100   : > { %11128 = vmatprep.mubr.msk.f32.mxu0 %vm683_vm1, %v498_v6  ;;  %v522_v6 = vld [vmem:[%s12197_s12 + $0x450] sm:$0xff] }
 0x101   : > { %v12464_v9 = vpop.f32.mrf.mxu0 }
 0x103   : > { %v12467_v11 = vpop.f32.mrf.mxu0  ;;  %11129 = vmatmul.mubr.msk.f32.gmra.mxu0 %vm683_vm1, %v499_v8  ;;  %v656_v8 = vld [vmem:[%s12197_s12 + $0x880] sm:$0xff] }
 0x104   : > { %11131 = vmatprep.mubr.msk.f32.mxu0 %vm683_vm1, %v500_v10  ;;  %11365 = vmatprep.mubr.msk.f32.mxu1 %vm683_vm1, %v656_v8  ;;  %v657_v10 = vld [vmem:[%s12197_s12 + $0x888] sm:$0xff]  ;;  %v664_v8 = vld [vmem:[%s12197_s12 + $0x8c0] sm:$0xff] }
 0x105   : > { %v12472_v13 = vpop.f32.mrf.mxu0  ;;  %11366 = vmatmul.mubr.msk.f32.vlgmr.msra.gmra.mxu1 %vm683_vm1, %v657_v10  ;;  %v665_v10 = vld [vmem:[%s12197_s12 + $0x8c8] sm:$0xff] }
 0x107   : > { %v12475_v15 = vpop.f32.mrf.mxu0  ;;  %11132 = vmatmul.mubr.msk.f32.gmra.mxu0 %vm683_vm1, %v501_v12 }
 0x108   : > { %11134 = vmatprep.mubr.msk.f32.mxu0 %vm683_vm1, %v502_v14  ;;  %v523_v14 = vld [vmem:[%s12197_s12 + $0x458] sm:$0xff] }
 0x109   : > { %v12480_v17 = vpop.f32.mrf.mxu0 }
 0x10b   : > { %v12483_v19 = vpop.f32.mrf.mxu0  ;;  %11135 = vmatmul.mubr.msk.f32.gmra.mxu0 %vm683_vm1, %v503_v16 }
 0x10c   : > { %11137 = vmatprep.mubr.msk.f32.mxu0 %vm683_vm1, %v504_v18  ;;  %v524_v18 = vld [vmem:[%s12197_s12 + $0x460] sm:$0xff] }
 0x10d   : > { %v12488_v21 = vpop.f32.mrf.mxu0 }
 0x10f   : > { %v12491_v23 = vpop.f32.mrf.mxu0  ;;  %11138 = vmatmul.mubr.msk.f32.gmra.mxu0 %vm683_vm1, %v505_v20  ;;  %v658_v20 = vld [vmem:[%s12197_s12 + $0x890] sm:$0xff] }
 0x110   : > { %11140 = vmatprep.mubr.msk.f32.mxu0 %vm683_vm1, %v506_v22  ;;  %11368 = vmatprep.mubr.msk.f32.mxu1 %vm683_vm1, %v658_v20  ;;  %v659_v22 = vld [vmem:[%s12197_s12 + $0x898] sm:$0xff] }
 0x111   : > { %v12496_v25 = vpop.f32.mrf.mxu0  ;;  %11369 = vmatmul.mubr.msk.f32.gmra.mxu1 %vm683_vm1, %v659_v22  ;;  %v532_v22 = vld [vmem:[%s12197_s12 + $0x4a0] sm:$0xff] }
 0x113   : > { %v12499_v27 = vpop.f32.mrf.mxu0  ;;  %11141 = vmatmul.mubr.msk.f32.gmra.mxu0 %vm683_vm1, %v507_v24 }
 0x114   : > { %11143 = vmatprep.mubr.msk.f32.mxu0 %vm683_vm1, %v508_v26  ;;  %v525_v26 = vld [vmem:[%s12197_s12 + $0x468] sm:$0xff] }
 0x115   : > { %v12504_v29 = vpop.f32.mrf.mxu0 }
 0x117   : > { %v12507_v31 = vpop.f32.mrf.mxu0  ;;  %11144 = vmatmul.mubr.msk.f32.gmra.mxu0 %vm683_vm1, %v509_v28 }
 0x118   : > { %11146 = vmatprep.mubr.msk.f32.mxu0 %vm683_vm1, %v510_v30  ;;  %v526_v30 = vld [vmem:[%s12197_s12 + $0x470] sm:$0xff] }
 0x119   : > { %v12512_v33 = vpop.f32.mrf.mxu0 }
 0x11b   : > { %v12515_v35 = vpop.f32.mrf.mxu0  ;;  %11147 = vmatmul.mubr.msk.f32.gmra.mxu0 %vm683_vm1, %v511_v32  ;;  %v660_v32 = vld [vmem:[%s12197_s12 + $0x8a0] sm:$0xff] }
 0x11c   : > { %11149 = vmatprep.mubr.msk.f32.mxu0 %vm683_vm1, %v512_v34  ;;  %11371 = vmatprep.mubr.msk.f32.mxu1 %vm683_vm1, %v660_v32  ;;  %v661_v34 = vld [vmem:[%s12197_s12 + $0x8a8] sm:$0xff] }
 0x11d   : > { %v12520_v37 = vpop.f32.mrf.mxu0  ;;  %11372 = vmatmul.mubr.msk.f32.gmra.mxu1 %vm683_vm1, %v661_v34  ;;  %v533_v34 = vld [vmem:[%s12197_s12 + $0x4a8] sm:$0xff] }
 0x11f   : > { %v12523_v40 = vpop.f32.mrf.mxu0  ;;  %11150 = vmatmul.mubr.msk.f32.gmra.mxu0 %vm683_vm1, %v513_v36 }
 0x120   : > { %11152 = vmatprep.mubr.msk.f32.mxu0 %vm683_vm1, %v514_v38  ;;  %v527_v38 = vld [vmem:[%s12197_s12 + $0x478] sm:$0xff] }
 0x121   : > { %v12528_v44 = vpop.f32.mrf.mxu0 }
 0x123   : > { %v12531_v48 = vpop.f32.mrf.mxu0  ;;  %11153 = vmatmul.mubr.msk.f32.gmra.mxu0 %vm683_vm1, %v515_v42 }
 0x124   : > { %11155 = vmatprep.mubr.msk.f32.mxu0 %vm683_vm1, %v516_v46  ;;  %v528_v46 = vld [vmem:[%s12197_s12 + $0x480] sm:$0xff] }
 0x125   : > { %v12536_v52 = vpop.f32.mrf.mxu0 }
 0x127   : > { %v12539_v56 = vpop.f32.mrf.mxu0  ;;  %11156 = vmatmul.mubr.msk.f32.gmra.mxu0 %vm683_vm1, %v517_v50  ;;  %v662_v50 = vld [vmem:[%s12197_s12 + $0x8b0] sm:$0xff] }
 0x128   : > { %11158 = vmatprep.mubr.msk.f32.mxu0 %vm683_vm1, %v518_v54  ;;  %11374 = vmatprep.mubr.msk.f32.mxu1 %vm683_vm1, %v662_v50  ;;  %v663_v54 = vld [vmem:[%s12197_s12 + $0x8b8] sm:$0xff]  ;;  %v668_v50 = vld [vmem:[%s12197_s12 + $0x8e0] sm:$0xff] }
 0x129   : > { %v12544_v60 = vpop.f32.mrf.mxu0  ;;  %11375 = vmatmul.mubr.msk.f32.gmra.mxu1 %vm683_vm1, %v663_v54  ;;  %v669_v54 = vld [vmem:[%s12197_s12 + $0x8e8] sm:$0xff] }
 0x12a   : > { %11377 = vmatprep.mubr.msk.f32.mxu1 %vm683_vm1, %v664_v8 }
 0x12b   : > { %v12547_v0 = vpop.f32.mrf.mxu0  ;;  %11159 = vmatmul.mubr.msk.f32.gmra.mxu0 %vm683_vm1, %v519_v58 }
 0x12c   : > { %11161 = vmatprep.mubr.msk.f32.mxu0 %vm683_vm1, %v520_v62  ;;  %v529_v62 = vld [vmem:[%s12197_s12 + $0x488] sm:$0xff] }
 0x12d   : > { %v12552_v4 = vpop.f32.mrf.mxu0  ;;  %11378 = vmatmul.mubr.msk.f32.gmra.mxu1 %vm683_vm1, %v665_v10  ;;  %v536_v10 = vld [vmem:[%s12197_s12 + $0x4c0] sm:$0xff] }
 0x12f   : > { %v12558_v12 = vpop.f32.mrf.mxu0  ;;  %11162 = vmatmul.mubr.msk.f32.gmra.mxu0 %vm683_vm1, %v521_v2 }
 0x130   : > { %11164 = vmatprep.mubr.msk.f32.mxu0 %vm683_vm1, %v522_v6  ;;  %v530_v6 = vld [vmem:[%s12197_s12 + $0x490] sm:$0xff] }
 0x131   : > { %v12564_v16 = vpop.f32.mrf.mxu0 }
 0x133   : > { %v12570_v24 = vpop.f32.mrf.mxu0  ;;  %11165 = vmatmul.mubr.msk.f32.gmra.mxu0 %vm683_vm1, %v523_v14 }
 0x134   : > { %11167 = vmatprep.mubr.msk.f32.mxu0 %vm683_vm1, %v524_v18  ;;  %v531_v18 = vld [vmem:[%s12197_s12 + $0x498] sm:$0xff] }
 0x135   : > { %v12576_v28 = vpop.f32.mrf.mxu0 }
 0x137   : > { %v12582_v36 = vpop.f32.mrf.mxu0  ;;  %11168 = vmatmul.mubr.msk.f32.gmra.mxu0 %vm683_vm1, %v525_v26  ;;  %v666_v26 = vld [vmem:[%s12197_s12 + $0x8d0] sm:$0xff] }
 0x138   : > { %11170 = vmatprep.mubr.msk.f32.mxu0 %vm683_vm1, %v526_v30  ;;  %11380 = vmatprep.mubr.msk.f32.mxu1 %vm683_vm1, %v666_v26  ;;  %v667_v30 = vld [vmem:[%s12197_s12 + $0x8d8] sm:$0xff] }
 0x139   : > { %v12588_v42 = vpop.f32.mrf.mxu0  ;;  %11381 = vmatmul.mubr.msk.f32.gmra.mxu1 %vm683_vm1, %v667_v30  ;;  %v537_v30 = vld [vmem:[%s12197_s12 + $0x4c8] sm:$0xff] }
 0x13a   : > { %11383 = vmatprep.mubr.msk.f32.mxu1 %vm683_vm1, %v668_v50 }
 0x13b   : > { %v12594_v58 = vpop.f32.mrf.mxu0  ;;  %11171 = vmatmul.mubr.msk.f32.gmra.mxu0 %vm683_vm1, %v527_v38 }
 0x13c   : > { %11173 = vmatprep.mubr.msk.f32.mxu0 %vm683_vm1, %v528_v46  ;;  %v534_v46 = vld [vmem:[%s12197_s12 + $0x4b0] sm:$0xff] }
 0x13d   : > { %v12600_v2 = vpop.f32.mrf.mxu0  ;;  %11384 = vmatmul.mubr.msk.f32.gmra.mxu1 %vm683_vm1, %v669_v54  ;;  %v539_v54 = vld [vmem:[%s12197_s12 + $0x4d8] sm:$0xff] }
 0x13f   : > { %v12606_v14 = vpop.f32.mrf.mxu0  ;;  %11174 = vmatmul.mubr.msk.f32.gmra.mxu0 %vm683_vm1, %v529_v62 }
 0x140   : > { %14751 = vst [vmem:[#allocation5_spill] sm:$0xff] %v12606_v14  ;;  %11176 = vmatprep.mubr.msk.f32.mxu0 %vm683_vm1, %v530_v6  ;;  %v535_v6 = vld [vmem:[%s12197_s12 + $0x4b8] sm:$0xff] }
 0x141   : > { %v12612_v20 = vpop.f32.mrf.mxu0 }
 0x142   : > { %14752 = vst [vmem:[#allocation6_spill] sm:$0xff] %v12612_v20 }
 0x143   : > { %v12618_v32 = vpop.f32.mrf.mxu0  ;;  %11177 = vmatmul.mubr.msk.f32.gmra.mxu0 %vm683_vm1, %v531_v18  ;;  %v670_v18 = vld [vmem:[%s12197_s12 + $0x8f0] sm:$0xff] }
 0x144   : > { %14753 = vst [vmem:[#allocation7_spill] sm:$0xff] %v12618_v32  ;;  %11179 = vmatprep.mubr.msk.f32.mxu0 %vm683_vm1, %v532_v22  ;;  %11386 = vmatprep.mubr.msk.f32.mxu1 %vm683_vm1, %v670_v18  ;;  %v671_v22 = vld [vmem:[%s12197_s12 + $0x8f8] sm:$0xff] }
 0x145   : > { %v12624_v38 = vpop.f32.mrf.mxu0  ;;  %11387 = vmatmul.mubr.msk.f32.gmra.mxu1 %vm683_vm1, %v671_v22 }
 0x146   : > { %14754 = vst [vmem:[#allocation8_spill] sm:$0xff] %v12624_v38 }
 0x147   : > { %v12630_v62 = vpop.f32.mrf.mxu0  ;;  %11180 = vmatmul.mubr.msk.f32.gmra.mxu0 %vm683_vm1, %v533_v34 }
 0x148   : > { %14755 = vst [vmem:[#allocation9_spill] sm:$0xff] %v12630_v62  ;;  %11182 = vmatprep.mubr.msk.f32.mxu0 %vm683_vm1, %v534_v46  ;;  %v538_v46 = vld [vmem:[%s12197_s12 + $0x4d0] sm:$0xff] }
 0x149   : > { %v12636_v8 = vpop.f32.mrf.mxu0 }
 0x14a   : > { %14756 = vst [vmem:[#allocation10_spill] sm:$0xff] %v12636_v8 }
 0x14b   : > { %v12642_v26 = vpop.f32.mrf.mxu0  ;;  %11183 = vmatmul.mubr.msk.f32.gmra.mxu0 %vm683_vm1, %v535_v6  ;;  %v540_v6 = vld [vmem:[%s12197_s12 + $0x4e0] sm:$0xff] }
 0x14c   : > { %14757 = vst [vmem:[#allocation11_spill] sm:$0xff] %v12642_v26  ;;  %11185 = vmatprep.mubr.msk.f32.mxu0 %vm683_vm1, %v536_v10  ;;  %v541_v10 = vld [vmem:[%s12197_s12 + $0x4e8] sm:$0xff] }
 0x14d   : > { %v12648_v34 = vpop.f32.mrf.mxu0 }
 0x14e   : > { %14758 = vst [vmem:[#allocation12_spill] sm:$0xff] %v12648_v34 }
 0x14f   : > { %v12651_v50 = vpop.f32.mrf.mxu0  ;;  %11186 = vmatmul.mubr.msk.f32.gmra.mxu0 %vm683_vm1, %v537_v30 }
 0x150   : > { %14759 = vst [vmem:[#allocation13_spill] sm:$0xff] %v12651_v50  ;;  %11188 = vmatprep.mubr.msk.f32.mxu0 %vm683_vm1, %v538_v46  ;;  %v542_v50 = vld [vmem:[%s12197_s12 + $0x4f0] sm:$0xff]  ;;  %v543_v46 = vld [vmem:[%s12197_s12 + $0x4f8] sm:$0xff] }
 0x151   : > { %v12656_v18 = vpop.f32.mrf.mxu0 }
 0x152   : > { %14760 = vst [vmem:[#allocation14_spill] sm:$0xff] %v12656_v18 }
 0x153   : > { %v12659_v22 = vpop.f32.mrf.mxu0  ;;  %11189 = vmatmul.mubr.msk.f32.gmra.mxu0 %vm683_vm1, %v539_v54 }
 0x154   : > { %14761 = vst [vmem:[#allocation15_spill] sm:$0xff] %v12659_v22  ;;  %11191 = vmatprep.mubr.msk.f32.mxu0 %vm683_vm1, %v540_v6  ;;  %v544_v22 = vld [vmem:[%s12197_s12 + $0x500] sm:$0xff]  ;;  %v545_v6 = vld [vmem:[%s12197_s12 + $0x508] sm:$0xff] }
 0x155   : > { %v12664_v34 = vpop.f32.mrf.mxu0 }
 0x156   : > { %14762 = vst [vmem:[#allocation16_spill] sm:$0xff] %v12664_v34 }
 0x157   : > { %v12667_v30 = vpop.f32.mrf.mxu0  ;;  %11192 = vmatmul.mubr.msk.f32.gmra.mxu0 %vm683_vm1, %v541_v10 }
 0x158   : > { %14763 = vst [vmem:[#allocation17_spill] sm:$0xff] %v12667_v30  ;;  %11194 = vmatprep.mubr.msk.f32.mxu0 %vm683_vm1, %v542_v50  ;;  %v546_v30 = vld [vmem:[%s12197_s12 + $0x510] sm:$0xff]  ;;  %v547_v50 = vld [vmem:[%s12197_s12 + $0x518] sm:$0xff] }
 0x159   : > { %v12672_v18 = vpop.f32.mrf.mxu0 }
 0x15a   : > { %14764 = vst [vmem:[#allocation18_spill] sm:$0xff] %v12672_v18 }
 0x15b   : > { %v12675_v54 = vpop.f32.mrf.mxu0  ;;  %11195 = vmatmul.mubr.msk.f32.gmra.mxu0 %vm683_vm1, %v543_v46 }
 0x15c   : > { %14765 = vst [vmem:[#allocation19_spill] sm:$0xff] %v12675_v54  ;;  %11197 = vmatprep.mubr.msk.f32.mxu0 %vm683_vm1, %v544_v22  ;;  %v548_v54 = vld [vmem:[%s12197_s12 + $0x520] sm:$0xff]  ;;  %v549_v22 = vld [vmem:[%s12197_s12 + $0x528] sm:$0xff] }
 0x15d   : > { %v12680_v34 = vpop.f32.mrf.mxu0 }
 0x15e   : > { %14766 = vst [vmem:[#allocation20_spill] sm:$0xff] %v12680_v34 }
 0x15f   : > { %v12683_v10 = vpop.f32.mrf.mxu0  ;;  %11198 = vmatmul.mubr.msk.f32.gmra.mxu0 %vm683_vm1, %v545_v6 }
 0x160   : > { %14767 = vst [vmem:[#allocation21_spill] sm:$0xff] %v12683_v10  ;;  %11200 = vmatprep.mubr.msk.f32.mxu0 %vm683_vm1, %v546_v30  ;;  %v550_v10 = vld [vmem:[%s12197_s12 + $0x530] sm:$0xff]  ;;  %v551_v30 = vld [vmem:[%s12197_s12 + $0x538] sm:$0xff] }
 0x161   : > { %v12688_v18 = vpop.f32.mrf.mxu0 }
 0x162   : > { %14768 = vst [vmem:[#allocation22_spill] sm:$0xff] %v12688_v18 }
 0x163   : > { %v12691_v46 = vpop.f32.mrf.mxu0  ;;  %11201 = vmatmul.mubr.msk.f32.gmra.mxu0 %vm683_vm1, %v547_v50 }
 0x164   : > { %14769 = vst [vmem:[#allocation23_spill] sm:$0xff] %v12691_v46  ;;  %11203 = vmatprep.mubr.msk.f32.mxu0 %vm683_vm1, %v548_v54  ;;  %v552_v46 = vld [vmem:[%s12197_s12 + $0x540] sm:$0xff] }
 0x165   : > { %v12696_v34 = vpop.f32.mrf.mxu0  ;;  %v12710_v54 = vld [vmem:[%s14718_s2] ss:$0 sm:$0xff] }
 0x166   : > { %14770 = vst [vmem:[#allocation24_spill] sm:$0xff] %v12696_v34  ;;  %v1619_v34 = vadd.f32 %v12710_v54, %v12400_v41  ;;  %v1634_v62 = vadd.f32 %v12403_v43, %v12710_v54  ;;  %v1644_v43 = vadd.f32 %v12411_v47, %v12710_v54 }
 0x167   : > { %v12699_v6 = vpop.f32.mrf.mxu0  ;;  %11204 = vmatmul.mubr.msk.f32.gmra.mxu0 %vm683_vm1, %v549_v22  ;;  %v553_v22 = vld [vmem:[%s12197_s12 + $0x548] sm:$0xff] }
 0x168   : > { %14771 = vst [vmem:[#allocation25_spill] sm:$0xff] %v12699_v6  ;;  %11206 = vmatprep.mubr.msk.f32.mxu0 %vm683_vm1, %v550_v10  ;;  %v554_v10 = vld [vmem:[%s12197_s12 + $0x550] sm:$0xff]  ;;  %v3057_v41 = vmax.f32 %v1619_v34, 0.0 }
 0x169   : > { %v12704_v18 = vpop.f32.mrf.mxu0  ;;  %v558_v34 = vld [vmem:[%s12197_s12 + $0x570] sm:$0xff] }
 0x16a   : > { %14772 = vst [vmem:[#allocation26_spill] sm:$0xff] %v12704_v18  ;;  %v1624_v18 = vadd.f32 %v12395_v39, %v12710_v54 }
 0x16b   : > { %v12712_v50 = vpop.f32.mrf.mxu0  ;;  %11207 = vmatmul.mubr.msk.f32.gmra.mxu0 %vm683_vm1, %v551_v30  ;;  %v555_v30 = vld [vmem:[%s12197_s12 + $0x558] sm:$0xff] }
 0x16c   : > { %14773 = vst [vmem:[#allocation27_spill] sm:$0xff] %v12712_v50  ;;  %11209 = vmatprep.mubr.msk.f32.mxu0 %vm683_vm1, %v552_v46  ;;  %v556_v50 = vld [vmem:[%s12197_s12 + $0x560] sm:$0xff] }
 0x16d   : > { %v12717_v6 = vpop.f32.mrf.mxu0 }
 0x16e   : > { %14774 = vst [vmem:[#allocation28_spill] sm:$0xff] %v12717_v6  ;;  %v3058_v6 = vmax.f32 %v1624_v18, 0.0  ;;  %v557_v18 = vld [vmem:[%s12197_s12 + $0x568] sm:$0xff] }
 0x16f   : > { %v11067_v26 = vpop.f32.mrf.mxu0  ;;  %11210 = vmatmul.mubr.msk.f32.gmra.mxu0 %vm683_vm1, %v553_v22 }
 0x170   : > { %v1984_v8 = vadd.f32 %v11067_v26, %v12710_v54  ;;  %11212 = vmatprep.mubr.msk.f32.mxu0 %vm683_vm1, %v554_v10  ;;  %v1629_v26 = vadd.f32 %v12710_v54, %v12408_v45 }
 0x171   : > { %v1978_v46 = vpop.f32.mrf.mxu0 }
 0x172   : > { %v3130_v39 = vmax.f32 %v1984_v8, 0.0  ;;  %v1979_v38 = vadd.f32 %v12710_v54, %v1978_v46  ;;  %v3060_v46 = vmax.f32 %v1634_v62, 0.0  ;;  %v559_v62 = vld [vmem:[%s12197_s12 + $0x578] sm:$0xff] }
 0x173   : > { %v11070_v32 = vpop.f32.mrf.mxu0  ;;  %11213 = vmatmul.mubr.msk.f32.gmra.mxu0 %vm683_vm1, %v555_v30 }
 0x174   : > { %v12735_v22 = vmax.f32 %v3058_v6, %v3130_v39  ;;  %v3129_v10 = vmax.f32 %v1979_v38, 0.0  ;;  %v1994_v20 = vadd.f32 %v11070_v32, %v12710_v54  ;;  %11215 = vmatprep.mubr.msk.f32.mxu0 %vm683_vm1, %v556_v50  ;;  %v1639_v38 = vadd.f32 %v12710_v54, %v12416_v49 }
 0x175   : > { %v1988_v8 = vpop.f32.mrf.mxu0  ;;  %v3059_v6 = vmax.f32 %v1629_v26, 0.0  ;;  %v1654_v49 = vadd.f32 %v12419_v51, %v12710_v54  ;;  %v561_v51 = vld [vmem:[%s12197_s12 + $0x588] sm:$0xff] }
 0x176   : > { %v12743_v30 = vmax.f32 %v3057_v41, %v3129_v10  ;;  %v3132_v14 = vmax.f32 %v1994_v20, 0.0  ;;  %v1989_v45 = vadd.f32 %v12710_v54, %v1988_v8  ;;  %v3062_v41 = vmax.f32 %v1644_v43, 0.0  ;;  %v560_v10 = vld [vmem:[%s12197_s12 + $0x580] sm:$0xff] }
 0x177   : > { %v11073_v32 = vpop.f32.mrf.mxu0  ;;  %11216 = vmatmul.mubr.msk.f32.gmra.mxu0 %vm683_vm1, %v557_v18  ;;  %v3061_v26 = vmax.f32 %v1639_v38, 0.0  ;;  %v562_v38 = vld [vmem:[%s12197_s12 + $0x590] sm:$0xff] }
 0x178   : > { %v12749_v50 = vmax.f32 %v3060_v46, %v3132_v14  ;;  %v3131_v39 = vmax.f32 %v1989_v45, 0.0  ;;  %v2004_v47 = vadd.f32 %v11073_v32, %v12710_v54  ;;  %11218 = vmatprep.mubr.msk.f32.mxu0 %vm683_vm1, %v558_v34  ;;  %v1649_v34 = vadd.f32 %v12710_v54, %v12424_v53 }
 0x179   : > { %v1998_v20 = vpop.f32.mrf.mxu0 }
 0x17a   : > { %v12757_v8 = vmax.f32 %v3059_v6, %v3131_v39  ;;  %v3134_v18 = vmax.f32 %v2004_v47, 0.0  ;;  %v1999_v14 = vadd.f32 %v12710_v54, %v1998_v20  ;;  %v1664_v6 = vadd.f32 %v12427_v55, %v12710_v54 }
 0x17b   : > { %v11076_v46 = vpop.f32.mrf.mxu0  ;;  %11219 = vmatmul.mubr.msk.f32.gmra.mxu0 %vm683_vm1, %v559_v62  ;;  %v3064_v47 = vmax.f32 %v1654_v49, 0.0  ;;  %v563_v49 = vld [vmem:[%s12197_s12 + $0x598] sm:$0xff] }
 0x17c   : > { %v12763_v45 = vmax.f32 %v3062_v41, %v3134_v18  ;;  %v3133_v43 = vmax.f32 %v1999_v14, 0.0  ;;  %v2014_v32 = vadd.f32 %v11076_v46, %v12710_v54  ;;  %11221 = vmatprep.mubr.msk.f32.mxu0 %vm683_vm1, %v560_v10  ;;  %v1659_v41 = vadd.f32 %v12710_v54, %v12432_v57 }
 0x17d   : > { %v2008_v39 = vpop.f32.mrf.mxu0  ;;  %v3063_v10 = vmax.f32 %v1649_v34, 0.0  ;;  %v1674_v57 = vadd.f32 %v12435_v59, %v12710_v54  ;;  %v565_v59 = vld [vmem:[%s12197_s12 + $0x5a8] sm:$0xff] }
 0x17e   : > { %v12771_v62 = vmax.f32 %v3061_v26, %v3133_v43  ;;  %v3136_v20 = vmax.f32 %v2014_v32, 0.0  ;;  %v2009_v53 = vadd.f32 %v12710_v54, %v2008_v39  ;;  %v3066_v26 = vmax.f32 %v1664_v6, 0.0  ;;  %v564_v32 = vld [vmem:[%s12197_s12 + $0x5a0] sm:$0xff] }
 0x17f   : > { %v11079_v18 = vpop.f32.mrf.mxu0  ;;  %11222 = vmatmul.mubr.msk.f32.gmra.mxu0 %vm683_vm1, %v561_v51 }
 0x180   : > { %v12777_v14 = vmax.f32 %v3064_v47, %v3136_v20  ;;  %v3135_v46 = vmax.f32 %v2009_v53, 0.0  ;;  %v2024_v55 = vadd.f32 %v11079_v18, %v12710_v54  ;;  %11224 = vmatprep.mubr.msk.f32.mxu0 %vm683_vm1, %v562_v38  ;;  %v3065_v47 = vmax.f32 %v1659_v41, 0.0  ;;  %v566_v41 = vld [vmem:[%s12197_s12 + $0x5b0] sm:$0xff] }
 0x181   : > { %v2018_v43 = vpop.f32.mrf.mxu0  ;;  %v1669_v38 = vadd.f32 %v12710_v54, %v12440_v61 }
 0x182   : > { %14775 = vst [vmem:[#allocation29_spill] sm:$0xff] %v12777_v14  ;;  %v12785_v39 = vmax.f32 %v3063_v10, %v3135_v46  ;;  %v3138_v51 = vmax.f32 %v2024_v55, 0.0  ;;  %v2019_v34 = vadd.f32 %v12710_v54, %v2018_v43  ;;  %v1684_v10 = vadd.f32 %v12443_v63, %v12710_v54 }
 0x183   : > { %v11082_v20 = vpop.f32.mrf.mxu0  ;;  %11225 = vmatmul.mubr.msk.f32.gmra.mxu0 %vm683_vm1, %v563_v49  ;;  %v3068_v55 = vmax.f32 %v1674_v57, 0.0  ;;  %v567_v57 = vld [vmem:[%s12197_s12 + $0x5b8] sm:$0xff] }
 0x184   : > { %14776 = vst [vmem:[#allocation30_spill] sm:$0xff] %v12785_v39  ;;  %v12791_v53 = vmax.f32 %v3066_v26, %v3138_v51  ;;  %v3137_v6 = vmax.f32 %v2019_v34, 0.0  ;;  %v2034_v18 = vadd.f32 %v11082_v20, %v12710_v54  ;;  %11227 = vmatprep.mubr.msk.f32.mxu0 %vm683_vm1, %v564_v32  ;;  %v1679_v26 = vadd.f32 %v12710_v54, %v12448_v1 }
 0x185   : > { %v2028_v46 = vpop.f32.mrf.mxu0  ;;  %v3067_v32 = vmax.f32 %v1669_v38, 0.0  ;;  %v1694_v1 = vadd.f32 %v12451_v3, %v12710_v54  ;;  %v569_v3 = vld [vmem:[%s12197_s12 + $0x5c8] sm:$0xff] }
 0x186   : > { %14777 = vst [vmem:[#allocation31_spill] sm:$0xff] %v12791_v53  ;;  %v12799_v49 = vmax.f32 %v3065_v47, %v3137_v6  ;;  %v3140_v43 = vmax.f32 %v2034_v18, 0.0  ;;  %v2029_v61 = vadd.f32 %v12710_v54, %v2028_v46  ;;  %v3070_v47 = vmax.f32 %v1684_v10, 0.0  ;;  %v568_v18 = vld [vmem:[%s12197_s12 + $0x5c0] sm:$0xff] }
 0x187   : > { %v11085_v51 = vpop.f32.mrf.mxu0  ;;  %11228 = vmatmul.mubr.msk.f32.gmra.mxu0 %vm683_vm1, %v565_v59 }
 0x188   : > { %14778 = vst [vmem:[#allocation32_spill] sm:$0xff] %v12799_v49  ;;  %v12805_v34 = vmax.f32 %v3068_v55, %v3140_v43  ;;  %v3139_v20 = vmax.f32 %v2029_v61, 0.0  ;;  %v2044_v63 = vadd.f32 %v11085_v51, %v12710_v54  ;;  %11230 = vmatprep.mubr.msk.f32.mxu0 %vm683_vm1, %v566_v41  ;;  %v3069_v55 = vmax.f32 %v1679_v26, 0.0  ;;  %v570_v26 = vld [vmem:[%s12197_s12 + $0x5d0] sm:$0xff] }
 0x189   : > { %v2038_v6 = vpop.f32.mrf.mxu0  ;;  %v1689_v41 = vadd.f32 %v12710_v54, %v12456_v5 }
 0x18a   : > { %14779 = vst [vmem:[#allocation33_spill] sm:$0xff] %v12805_v34  ;;  %v12813_v46 = vmax.f32 %v3067_v32, %v3139_v20  ;;  %v3142_v59 = vmax.f32 %v2044_v63, 0.0  ;;  %v2039_v38 = vadd.f32 %v12710_v54, %v2038_v6  ;;  %v1704_v32 = vadd.f32 %v12459_v7, %v12710_v54 }
 0x18b   : > { %v11088_v43 = vpop.f32.mrf.mxu0  ;;  %11231 = vmatmul.mubr.msk.f32.gmra.mxu0 %vm683_vm1, %v567_v57  ;;  %v3072_v63 = vmax.f32 %v1694_v1, 0.0  ;;  %v571_v1 = vld [vmem:[%s12197_s12 + $0x5d8] sm:$0xff] }
 0x18c   : > { %14780 = vst [vmem:[#allocation34_spill] sm:$0xff] %v12813_v46  ;;  %v12819_v61 = vmax.f32 %v3070_v47, %v3142_v59  ;;  %v3141_v10 = vmax.f32 %v2039_v38, 0.0  ;;  %v2054_v51 = vadd.f32 %v11088_v43, %v12710_v54  ;;  %11233 = vmatprep.mubr.msk.f32.mxu0 %vm683_vm1, %v568_v18  ;;  %v1699_v47 = vadd.f32 %v12710_v54, %v12464_v9 }
 0x18d   : > { %v2048_v20 = vpop.f32.mrf.mxu0  ;;  %v3071_v18 = vmax.f32 %v1689_v41, 0.0  ;;  %v1714_v9 = vadd.f32 %v12467_v11, %v12710_v54  ;;  %v573_v11 = vld [vmem:[%s12197_s12 + $0x5e8] sm:$0xff] }
 0x18e   : > { %14781 = vst [vmem:[#allocation35_spill] sm:$0xff] %v12819_v61  ;;  %v12827_v57 = vmax.f32 %v3069_v55, %v3141_v10  ;;  %v3144_v6 = vmax.f32 %v2054_v51, 0.0  ;;  %v2049_v5 = vadd.f32 %v12710_v54, %v2048_v20  ;;  %v3074_v55 = vmax.f32 %v1704_v32, 0.0  ;;  %v572_v51 = vld [vmem:[%s12197_s12 + $0x5e0] sm:$0xff] }
 0x18f   : > { %v11091_v59 = vpop.f32.mrf.mxu0  ;;  %11234 = vmatmul.mubr.msk.f32.gmra.mxu0 %vm683_vm1, %v569_v3 }
 0x190   : > { %14782 = vst [vmem:[#allocation36_spill] sm:$0xff] %v12827_v57  ;;  %v12833_v38 = vmax.f32 %v3072_v63, %v3144_v6  ;;  %v3143_v43 = vmax.f32 %v2049_v5, 0.0  ;;  %v2064_v7 = vadd.f32 %v11091_v59, %v12710_v54  ;;  %11236 = vmatprep.mubr.msk.f32.mxu0 %vm683_vm1, %v570_v26  ;;  %v3073_v63 = vmax.f32 %v1699_v47, 0.0  ;;  %v574_v47 = vld [vmem:[%s12197_s12 + $0x5f0] sm:$0xff] }
 0x191   : > { %v2058_v10 = vpop.f32.mrf.mxu0  ;;  %v1709_v26 = vadd.f32 %v12710_v54, %v12472_v13 }
 0x192   : > { %14783 = vst [vmem:[#allocation37_spill] sm:$0xff] %v12833_v38  ;;  %v12841_v20 = vmax.f32 %v3071_v18, %v3143_v43  ;;  %v3146_v3 = vmax.f32 %v2064_v7, 0.0  ;;  %v2059_v41 = vadd.f32 %v12710_v54, %v2058_v10  ;;  %v1724_v18 = vadd.f32 %v12475_v15, %v12710_v54 }
 0x193   : > { %v11094_v6 = vpop.f32.mrf.mxu0  ;;  %11237 = vmatmul.mubr.msk.f32.gmra.mxu0 %vm683_vm1, %v571_v1  ;;  %v3076_v7 = vmax.f32 %v1714_v9, 0.0  ;;  %v575_v9 = vld [vmem:[%s12197_s12 + $0x5f8] sm:$0xff] }
 0x194   : > { %14784 = vst [vmem:[#allocation38_spill] sm:$0xff] %v12841_v20  ;;  %v12847_v5 = vmax.f32 %v3074_v55, %v3146_v3  ;;  %v3145_v32 = vmax.f32 %v2059_v41, 0.0  ;;  %v2074_v59 = vadd.f32 %v11094_v6, %v12710_v54  ;;  %11239 = vmatprep.mubr.msk.f32.mxu0 %vm683_vm1, %v572_v51  ;;  %v1719_v55 = vadd.f32 %v12710_v54, %v12480_v17 }
 0x195   : > { %v2068_v43 = vpop.f32.mrf.mxu0  ;;  %v3075_v51 = vmax.f32 %v1709_v26, 0.0  ;;  %v1734_v17 = vadd.f32 %v12483_v19, %v12710_v54  ;;  %v577_v19 = vld [vmem:[%s12197_s12 + $0x608] sm:$0xff] }
 0x196   : > { %14785 = vst [vmem:[#allocation39_spill] sm:$0xff] %v12847_v5  ;;  %v12855_v1 = vmax.f32 %v3073_v63, %v3145_v32  ;;  %v3148_v10 = vmax.f32 %v2074_v59, 0.0  ;;  %v2069_v13 = vadd.f32 %v12710_v54, %v2068_v43  ;;  %v3078_v63 = vmax.f32 %v1724_v18, 0.0  ;;  %v576_v59 = vld [vmem:[%s12197_s12 + $0x600] sm:$0xff] }
 0x197   : > { %v11097_v3 = vpop.f32.mrf.mxu0  ;;  %11240 = vmatmul.mubr.msk.f32.gmra.mxu0 %vm683_vm1, %v573_v11 }
 0x198   : > { %14786 = vst [vmem:[#allocation40_spill] sm:$0xff] %v12855_v1  ;;  %v12861_v41 = vmax.f32 %v3076_v7, %v3148_v10  ;;  %v3147_v6 = vmax.f32 %v2069_v13, 0.0  ;;  %v2084_v15 = vadd.f32 %v11097_v3, %v12710_v54  ;;  %11242 = vmatprep.mubr.msk.f32.mxu0 %vm683_vm1, %v574_v47  ;;  %v3077_v7 = vmax.f32 %v1719_v55, 0.0  ;;  %v578_v55 = vld [vmem:[%s12197_s12 + $0x610] sm:$0xff]  ;;  %v649_v1 = vld [vmem:[%s12197_s12 + $0x848] sm:$0xff] }
 0x199   : > { %v2078_v32 = vpop.f32.mrf.mxu0  ;;  %v1729_v47 = vadd.f32 %v12710_v54, %v12488_v21 }
 0x19a   : > { %14787 = vst [vmem:[#allocation41_spill] sm:$0xff] %v12861_v41  ;;  %v12869_v43 = vmax.f32 %v3075_v51, %v3147_v6  ;;  %v3150_v11 = vmax.f32 %v2084_v15, 0.0  ;;  %v2079_v26 = vadd.f32 %v12710_v54, %v2078_v32  ;;  %v1744_v51 = vadd.f32 %v12491_v23, %v12710_v54 }
 0x19b   : > { %v11100_v10 = vpop.f32.mrf.mxu0  ;;  %11243 = vmatmul.mubr.msk.f32.gmra.mxu0 %vm683_vm1, %v575_v9  ;;  %v3080_v15 = vmax.f32 %v1734_v17, 0.0  ;;  %v579_v17 = vld [vmem:[%s12197_s12 + $0x618] sm:$0xff] }
 0x19c   : > { %14788 = vst [vmem:[#allocation42_spill] sm:$0xff] %v12869_v43  ;;  %v12875_v13 = vmax.f32 %v3078_v63, %v3150_v11  ;;  %v3149_v18 = vmax.f32 %v2079_v26, 0.0  ;;  %v2094_v3 = vadd.f32 %v11100_v10, %v12710_v54  ;;  %11245 = vmatprep.mubr.msk.f32.mxu0 %vm683_vm1, %v576_v59  ;;  %v1739_v63 = vadd.f32 %v12710_v54, %v12496_v25  ;;  %v648_v43 = vld [vmem:[%s12197_s12 + $0x840] sm:$0xff] }
 0x19d   : > { %v2088_v6 = vpop.f32.mrf.mxu0  ;;  %v3079_v59 = vmax.f32 %v1729_v47, 0.0  ;;  %v1754_v25 = vadd.f32 %v12499_v27, %v12710_v54  ;;  %v581_v27 = vld [vmem:[%s12197_s12 + $0x628] sm:$0xff] }
 0x19e   : > { %14789 = vst [vmem:[#allocation43_spill] sm:$0xff] %v12875_v13  ;;  %v12883_v9 = vmax.f32 %v3077_v7, %v3149_v18  ;;  %v3152_v32 = vmax.f32 %v2094_v3, 0.0  ;;  %v2089_v21 = vadd.f32 %v12710_v54, %v2088_v6  ;;  %v3082_v7 = vmax.f32 %v1744_v51, 0.0  ;;  %v580_v3 = vld [vmem:[%s12197_s12 + $0x620] sm:$0xff] }
 0x19f   : > { %v11103_v11 = vpop.f32.mrf.mxu0  ;;  %11246 = vmatmul.mubr.msk.f32.gmra.mxu0 %vm683_vm1, %v577_v19 }
 0x1a0   : > { %14790 = vst [vmem:[#allocation44_spill] sm:$0xff] %v12883_v9  ;;  %v12889_v26 = vmax.f32 %v3080_v15, %v3152_v32  ;;  %v3151_v10 = vmax.f32 %v2089_v21, 0.0  ;;  %v2104_v23 = vadd.f32 %v11103_v11, %v12710_v54  ;;  %11248 = vmatprep.mubr.msk.f32.mxu0 %vm683_vm1, %v578_v55  ;;  %v3081_v15 = vmax.f32 %v1739_v63, 0.0  ;;  %v582_v63 = vld [vmem:[%s12197_s12 + $0x630] sm:$0xff] }
 0x1a1   : > { %v2098_v18 = vpop.f32.mrf.mxu0  ;;  %v1749_v55 = vadd.f32 %v12710_v54, %v12504_v29  ;;  %v646_v9 = vld [vmem:[%s12197_s12 + $0x830] sm:$0xff] }
 0x1a2   : > { %14791 = vst [vmem:[#allocation45_spill] sm:$0xff] %v12889_v26  ;;  %v12897_v6 = vmax.f32 %v3079_v59, %v3151_v10  ;;  %v3154_v19 = vmax.f32 %v2104_v23, 0.0  ;;  %v2099_v47 = vadd.f32 %v12710_v54, %v2098_v18  ;;  %v1764_v59 = vadd.f32 %v12507_v31, %v12710_v54  ;;  %v644_v26 = vld [vmem:[%s12197_s12 + $0x820] sm:$0xff] }
 0x1a3   : > { %v11106_v32 = vpop.f32.mrf.mxu0  ;;  %11249 = vmatmul.mubr.msk.f32.gmra.mxu0 %vm683_vm1, %v579_v17  ;;  %v3084_v23 = vmax.f32 %v1754_v25, 0.0  ;;  %v583_v25 = vld [vmem:[%s12197_s12 + $0x638] sm:$0xff] }
 0x1a4   : > { %14792 = vst [vmem:[#allocation46_spill] sm:$0xff] %v12897_v6  ;;  %v12903_v21 = vmax.f32 %v3082_v7, %v3154_v19  ;;  %v3153_v51 = vmax.f32 %v2099_v47, 0.0  ;;  %v2114_v11 = vadd.f32 %v11106_v32, %v12710_v54  ;;  %11251 = vmatprep.mubr.msk.f32.mxu0 %vm683_vm1, %v580_v3  ;;  %v1759_v7 = vadd.f32 %v12710_v54, %v12512_v33 }
 0x1a5   : > { %v2108_v10 = vpop.f32.mrf.mxu0  ;;  %v3083_v3 = vmax.f32 %v1749_v55, 0.0  ;;  %v1774_v33 = vadd.f32 %v12515_v35, %v12710_v54  ;;  %v585_v35 = vld [vmem:[%s12197_s12 + $0x648] sm:$0xff] }
 0x1a6   : > { %14793 = vst [vmem:[#allocation47_spill] sm:$0xff] %v12903_v21  ;;  %v12911_v17 = vmax.f32 %v3081_v15, %v3153_v51  ;;  %v3156_v18 = vmax.f32 %v2114_v11, 0.0  ;;  %v2109_v29 = vadd.f32 %v12710_v54, %v2108_v10  ;;  %v3086_v15 = vmax.f32 %v1764_v59, 0.0  ;;  %v584_v11 = vld [vmem:[%s12197_s12 + $0x640] sm:$0xff]  ;;  %v642_v21 = vld [vmem:[%s12197_s12 + $0x810] sm:$0xff] }
 0x1a7   : > { %v11109_v19 = vpop.f32.mrf.mxu0  ;;  %11252 = vmatmul.mubr.msk.f32.gmra.mxu0 %vm683_vm1, %v581_v27 }
 0x1a8   : > { %14794 = vst [vmem:[#allocation48_spill] sm:$0xff] %v12911_v17  ;;  %v12917_v47 = vmax.f32 %v3084_v23, %v3156_v18  ;;  %v3155_v32 = vmax.f32 %v2109_v29, 0.0  ;;  %v2124_v31 = vadd.f32 %v11109_v19, %v12710_v54  ;;  %11254 = vmatprep.mubr.msk.f32.mxu0 %vm683_vm1, %v582_v63  ;;  %v3085_v23 = vmax.f32 %v1759_v7, 0.0  ;;  %v586_v7 = vld [vmem:[%s12197_s12 + $0x650] sm:$0xff] }
 0x1a9   : > { %v2118_v51 = vpop.f32.mrf.mxu0  ;;  %v1769_v63 = vadd.f32 %v12710_v54, %v12520_v37 }
 0x1aa   : > { %14795 = vst [vmem:[#allocation49_spill] sm:$0xff] %v12917_v47  ;;  %v12925_v10 = vmax.f32 %v3083_v3, %v3155_v32  ;;  %v3158_v27 = vmax.f32 %v2124_v31, 0.0  ;;  %v2119_v55 = vadd.f32 %v12710_v54, %v2118_v51  ;;  %v1784_v3 = vadd.f32 %v12523_v40, %v12710_v54  ;;  %v640_v47 = vld [vmem:[%s12197_s12 + $0x800] sm:$0xff] }
 0x1ab   : > { %v11112_v18 = vpop.f32.mrf.mxu0  ;;  %11255 = vmatmul.mubr.msk.f32.gmra.mxu0 %vm683_vm1, %v583_v25  ;;  %v3088_v31 = vmax.f32 %v1774_v33, 0.0  ;;  %v587_v33 = vld [vmem:[%s12197_s12 + $0x658] sm:$0xff] }
 0x1ac   : > { %14796 = vst [vmem:[#allocation50_spill] sm:$0xff] %v12925_v10  ;;  %v12931_v29 = vmax.f32 %v3086_v15, %v3158_v27  ;;  %v3157_v59 = vmax.f32 %v2119_v55, 0.0  ;;  %v2134_v19 = vadd.f32 %v11112_v18, %v12710_v54  ;;  %11257 = vmatprep.mubr.msk.f32.mxu0 %vm683_vm1, %v584_v11  ;;  %v1779_v15 = vadd.f32 %v12710_v54, %v12528_v44 }
 0x1ad   : > { %v2128_v32 = vpop.f32.mrf.mxu0  ;;  %v3087_v11 = vmax.f32 %v1769_v63, 0.0  ;;  %v1794_v44 = vadd.f32 %v12531_v48, %v12710_v54  ;;  %v589_v48 = vld [vmem:[%s12197_s12 + $0x668] sm:$0xff] }
 0x1ae   : > { %14797 = vst [vmem:[#allocation51_spill] sm:$0xff] %v12931_v29  ;;  %v12939_v25 = vmax.f32 %v3085_v23, %v3157_v59  ;;  %v3160_v51 = vmax.f32 %v2134_v19, 0.0  ;;  %v2129_v37 = vadd.f32 %v12710_v54, %v2128_v32  ;;  %v3090_v23 = vmax.f32 %v1784_v3, 0.0  ;;  %v588_v19 = vld [vmem:[%s12197_s12 + $0x660] sm:$0xff]  ;;  %v638_v29 = vld [vmem:[%s12197_s12 + $0x7f0] sm:$0xff] }
 0x1af   : > { %v11115_v27 = vpop.f32.mrf.mxu0  ;;  %11258 = vmatmul.mubr.msk.f32.gmra.mxu0 %vm683_vm1, %v585_v35 }
 0x1b0   : > { %14798 = vst [vmem:[#allocation52_spill] sm:$0xff] %v12939_v25  ;;  %v12945_v55 = vmax.f32 %v3088_v31, %v3160_v51  ;;  %v3159_v18 = vmax.f32 %v2129_v37, 0.0  ;;  %v2144_v40 = vadd.f32 %v11115_v27, %v12710_v54  ;;  %11260 = vmatprep.mubr.msk.f32.mxu0 %vm683_vm1, %v586_v7  ;;  %v3089_v31 = vmax.f32 %v1779_v15, 0.0  ;;  %v590_v15 = vld [vmem:[%s12197_s12 + $0x670] sm:$0xff] }
 0x1b1   : > { %v2138_v59 = vpop.f32.mrf.mxu0  ;;  %v1789_v7 = vadd.f32 %v12710_v54, %v12536_v52 }
 0x1b2   : > { %14799 = vst [vmem:[#allocation53_spill] sm:$0xff] %v12945_v55  ;;  %v12953_v32 = vmax.f32 %v3087_v11, %v3159_v18  ;;  %v3162_v35 = vmax.f32 %v2144_v40, 0.0  ;;  %v2139_v63 = vadd.f32 %v12710_v54, %v2138_v59  ;;  %v1804_v11 = vadd.f32 %v12539_v56, %v12710_v54  ;;  %v637_v55 = vld [vmem:[%s12197_s12 + $0x7e8] sm:$0xff] }
 0x1b3   : > { %v11118_v51 = vpop.f32.mrf.mxu0  ;;  %11261 = vmatmul.mubr.msk.f32.gmra.mxu0 %vm683_vm1, %v587_v33  ;;  %v3092_v40 = vmax.f32 %v1794_v44, 0.0  ;;  %v591_v44 = vld [vmem:[%s12197_s12 + $0x678] sm:$0xff] }
 0x1b4   : > { %14800 = vst [vmem:[#allocation54_spill] sm:$0xff] %v12953_v32  ;;  %v12959_v37 = vmax.f32 %v3090_v23, %v3162_v35  ;;  %v3161_v3 = vmax.f32 %v2139_v63, 0.0  ;;  %v2154_v27 = vadd.f32 %v11118_v51, %v12710_v54  ;;  %11263 = vmatprep.mubr.msk.f32.mxu0 %vm683_vm1, %v588_v19  ;;  %v1799_v23 = vadd.f32 %v12710_v54, %v12544_v60 }
 0x1b5   : > { %v2148_v18 = vpop.f32.mrf.mxu0  ;;  %v3091_v19 = vmax.f32 %v1789_v7, 0.0  ;;  %v1814_v60 = vadd.f32 %v12547_v0, %v12710_v54  ;;  %v593_v0 = vld [vmem:[%s12197_s12 + $0x688] sm:$0xff] }
 0x1b6   : > { %14801 = vst [vmem:[#allocation55_spill] sm:$0xff] %v12959_v37  ;;  %v12967_v33 = vmax.f32 %v3089_v31, %v3161_v3  ;;  %v3164_v59 = vmax.f32 %v2154_v27, 0.0  ;;  %v2149_v52 = vadd.f32 %v12710_v54, %v2148_v18  ;;  %v3094_v31 = vmax.f32 %v1804_v11, 0.0  ;;  %v592_v27 = vld [vmem:[%s12197_s12 + $0x680] sm:$0xff] }
 0x1b7   : > { %v11121_v35 = vpop.f32.mrf.mxu0  ;;  %11264 = vmatmul.mubr.msk.f32.gmra.mxu0 %vm683_vm1, %v589_v48 }
 0x1b8   : > { %14802 = vst [vmem:[#allocation56_spill] sm:$0xff] %v12967_v33  ;;  %v12973_v63 = vmax.f32 %v3092_v40, %v3164_v59  ;;  %v3163_v51 = vmax.f32 %v2149_v52, 0.0  ;;  %v2164_v56 = vadd.f32 %v11121_v35, %v12710_v54  ;;  %11266 = vmatprep.mubr.msk.f32.mxu0 %vm683_vm1, %v590_v15  ;;  %v3093_v40 = vmax.f32 %v1799_v23, 0.0  ;;  %v594_v23 = vld [vmem:[%s12197_s12 + $0x690] sm:$0xff] }
 0x1b9   : > { %v2158_v3 = vpop.f32.mrf.mxu0  ;;  %v1809_v15 = vadd.f32 %v12710_v54, %v12552_v4 }
 0x1ba   : > { %14803 = vst [vmem:[#allocation57_spill] sm:$0xff] %v12973_v63  ;;  %v12981_v18 = vmax.f32 %v3091_v19, %v3163_v51  ;;  %v3166_v48 = vmax.f32 %v2164_v56, 0.0  ;;  %v2159_v7 = vadd.f32 %v12710_v54, %v2158_v3  ;;  %v1824_v19 = vadd.f32 %v12558_v12, %v12710_v54 }
 0x1bb   : > { %v11124_v59 = vpop.f32.mrf.mxu0  ;;  %11267 = vmatmul.mubr.msk.f32.gmra.mxu0 %vm683_vm1, %v591_v44  ;;  %v3096_v56 = vmax.f32 %v1814_v60, 0.0  ;;  %v595_v60 = vld [vmem:[%s12197_s12 + $0x698] sm:$0xff] }
 0x1bc   : > { %14804 = vst [vmem:[#allocation58_spill] sm:$0xff] %v12981_v18  ;;  %v12987_v52 = vmax.f32 %v3094_v31, %v3166_v48  ;;  %v3165_v11 = vmax.f32 %v2159_v7, 0.0  ;;  %v2174_v35 = vadd.f32 %v11124_v59, %v12710_v54  ;;  %11269 = vmatprep.mubr.msk.f32.mxu0 %vm683_vm1, %v592_v27  ;;  %v1819_v31 = vadd.f32 %v12710_v54, %v12564_v16 }
 0x1bd   : > { %v2168_v51 = vpop.f32.mrf.mxu0  ;;  %v3095_v27 = vmax.f32 %v1809_v15, 0.0  ;;  %v1834_v16 = vadd.f32 %v12570_v24, %v12710_v54  ;;  %v597_v24 = vld [vmem:[%s12197_s12 + $0x6a8] sm:$0xff] }
 0x1be   : > { %14805 = vst [vmem:[#allocation59_spill] sm:$0xff] %v12987_v52  ;;  %v12995_v44 = vmax.f32 %v3093_v40, %v3165_v11  ;;  %v3168_v3 = vmax.f32 %v2174_v35, 0.0  ;;  %v2169_v4 = vadd.f32 %v12710_v54, %v2168_v51  ;;  %v3098_v40 = vmax.f32 %v1824_v19, 0.0  ;;  %v596_v35 = vld [vmem:[%s12197_s12 + $0x6a0] sm:$0xff] }
 0x1bf   : > { %v11127_v48 = vpop.f32.mrf.mxu0  ;;  %11270 = vmatmul.mubr.msk.f32.gmra.mxu0 %vm683_vm1, %v593_v0 }
 0x1c0   : > { %14806 = vst [vmem:[#allocation60_spill] sm:$0xff] %v12995_v44  ;;  %v13001_v7 = vmax.f32 %v3096_v56, %v3168_v3  ;;  %v3167_v59 = vmax.f32 %v2169_v4, 0.0  ;;  %v2184_v12 = vadd.f32 %v11127_v48, %v12710_v54  ;;  %11272 = vmatprep.mubr.msk.f32.mxu0 %vm683_vm1, %v594_v23  ;;  %v3097_v56 = vmax.f32 %v1819_v31, 0.0  ;;  %v598_v31 = vld [vmem:[%s12197_s12 + $0x6b0] sm:$0xff] }
 0x1c1   : > { %v2178_v11 = vpop.f32.mrf.mxu0  ;;  %v1829_v23 = vadd.f32 %v12710_v54, %v12576_v28 }
 0x1c2   : > { %14807 = vst [vmem:[#allocation61_spill] sm:$0xff] %v13001_v7  ;;  %v13009_v51 = vmax.f32 %v3095_v27, %v3167_v59  ;;  %v3170_v0 = vmax.f32 %v2184_v12, 0.0  ;;  %v2179_v15 = vadd.f32 %v12710_v54, %v2178_v11  ;;  %v1844_v27 = vadd.f32 %v12582_v36, %v12710_v54  ;;  %v620_v7 = vld [vmem:[%s12197_s12 + $0x760] sm:$0xff] }
 0x1c3   : > { %v11130_v3 = vpop.f32.mrf.mxu0  ;;  %11273 = vmatmul.mubr.msk.f32.gmra.mxu0 %vm683_vm1, %v595_v60  ;;  %v3100_v12 = vmax.f32 %v1834_v16, 0.0  ;;  %v599_v16 = vld [vmem:[%s12197_s12 + $0x6b8] sm:$0xff] }
 0x1c4   : > { %14808 = vst [vmem:[#allocation62_spill] sm:$0xff] %v13009_v51  ;;  %v13015_v4 = vmax.f32 %v3098_v40, %v3170_v0  ;;  %v3169_v19 = vmax.f32 %v2179_v15, 0.0  ;;  %v2194_v48 = vadd.f32 %v11130_v3, %v12710_v54  ;;  %11275 = vmatprep.mubr.msk.f32.mxu0 %vm683_vm1, %v596_v35  ;;  %v1839_v40 = vadd.f32 %v12710_v54, %v12588_v42 }
 0x1c5   : > { %v2188_v59 = vpop.f32.mrf.mxu0  ;;  %v3099_v35 = vmax.f32 %v1829_v23, 0.0  ;;  %v1854_v42 = vadd.f32 %v12594_v58, %v12710_v54  ;;  %v601_v58 = vld [vmem:[%s12197_s12 + $0x6c8] sm:$0xff] }
 0x1c6   : > { %14809 = vst [vmem:[#allocation63_spill] sm:$0xff] %v13015_v4  ;;  %v13023_v60 = vmax.f32 %v3097_v56, %v3169_v19  ;;  %v3172_v11 = vmax.f32 %v2194_v48, 0.0  ;;  %v2189_v28 = vadd.f32 %v12710_v54, %v2188_v59  ;;  %v3102_v56 = vmax.f32 %v1844_v27, 0.0  ;;  %v600_v48 = vld [vmem:[%s12197_s12 + $0x6c0] sm:$0xff] }
 0x1c7   : > { %v11133_v0 = vpop.f32.mrf.mxu0  ;;  %11276 = vmatmul.mubr.msk.f32.gmra.mxu0 %vm683_vm1, %v597_v24 }
 0x1c8   : > { %14810 = vst [vmem:[#allocation64_spill] sm:$0xff] %v13023_v60  ;;  %v13029_v15 = vmax.f32 %v3100_v12, %v3172_v11  ;;  %v3171_v3 = vmax.f32 %v2189_v28, 0.0  ;;  %v2204_v36 = vadd.f32 %v11133_v0, %v12710_v54  ;;  %11278 = vmatprep.mubr.msk.f32.mxu0 %vm683_vm1, %v598_v31  ;;  %v3101_v12 = vmax.f32 %v1839_v40, 0.0  ;;  %v602_v40 = vld [vmem:[%s12197_s12 + $0x6d0] sm:$0xff] }
 0x1c9   : > { %v2198_v19 = vpop.f32.mrf.mxu0  ;;  %v1849_v31 = vadd.f32 %v12710_v54, %v12600_v2 }
 0x1ca   : > { %14811 = vst [vmem:[#allocation65_spill] sm:$0xff] %v13029_v15  ;;  %v13037_v59 = vmax.f32 %v3099_v35, %v3171_v3  ;;  %v3174_v24 = vmax.f32 %v2204_v36, 0.0  ;;  %v2199_v23 = vadd.f32 %v12710_v54, %v2198_v19  ;;  %v14814_v35 = vld [vmem:[#allocation5_spill] sm:$0xff]  ;;  %v3104_v19 = vmax.f32 %v1854_v42, 0.0  ;;  %v603_v42 = vld [vmem:[%s12197_s12 + $0x6d8] sm:$0xff] }
 0x1cb   : > { %v11136_v11 = vpop.f32.mrf.mxu0  ;;  %11279 = vmatmul.mubr.msk.f32.gmra.mxu0 %vm683_vm1, %v599_v16  ;;  %v1864_v3 = vadd.f32 %v14814_v35, %v12710_v54 }
 0x1cc   : > { %14812 = vst [vmem:[#allocation66_spill] sm:$0xff] %v13037_v59  ;;  %v13043_v28 = vmax.f32 %v3102_v56, %v3174_v24  ;;  %v3173_v27 = vmax.f32 %v2199_v23, 0.0  ;;  %v2214_v0 = vadd.f32 %v11136_v11, %v12710_v54  ;;  %11281 = vmatprep.mubr.msk.f32.mxu0 %vm683_vm1, %v600_v48  ;;  %v14816_v56 = vld [vmem:[#allocation6_spill] sm:$0xff]  ;;  %v3103_v48 = vmax.f32 %v1849_v31, 0.0 }
 0x1cd   : > { %v2208_v36 = vpop.f32.mrf.mxu0  ;;  %v1859_v24 = vadd.f32 %v12710_v54, %v14816_v56 }
 0x1ce   : > { %14813 = vst [vmem:[#allocation67_spill] sm:$0xff] %v13043_v28  ;;  %v13051_v16 = vmax.f32 %v3101_v12, %v3173_v27  ;;  %v3176_v59 = vmax.f32 %v2214_v0, 0.0  ;;  %v2209_v2 = vadd.f32 %v12710_v54, %v2208_v36  ;;  %v3106_v12 = vmax.f32 %v1864_v3, 0.0  ;;  %v604_v0 = vld [vmem:[%s12197_s12 + $0x6e0] sm:$0xff]  ;;  %v14818_v36 = vld [vmem:[#allocation7_spill] sm:$0xff] }
 0x1cf   : > { %v11139_v23 = vpop.f32.mrf.mxu0  ;;  %11282 = vmatmul.mubr.msk.f32.gmra.mxu0 %vm683_vm1, %v601_v58  ;;  %v1874_v56 = vadd.f32 %v14818_v36, %v12710_v54  ;;  %v3105_v31 = vmax.f32 %v1859_v24, 0.0  ;;  %v605_v36 = vld [vmem:[%s12197_s12 + $0x6e8] sm:$0xff]  ;;  %v606_v24 = vld [vmem:[%s12197_s12 + $0x6f0] sm:$0xff] }
 0x1d0   : > { %14815 = vst [vmem:[#allocation5_spill] sm:$0xff] %v13051_v16  ;;  %v13057_v11 = vmax.f32 %v3104_v19, %v3176_v59  ;;  %v3175_v28 = vmax.f32 %v2209_v2, 0.0  ;;  %v2224_v35 = vadd.f32 %v11139_v23, %v12710_v54  ;;  %11284 = vmatprep.mubr.msk.f32.mxu0 %vm683_vm1, %v602_v40  ;;  %v14820_v2 = vld [vmem:[#allocation8_spill] sm:$0xff] }
 0x1d1   : > { %v2218_v27 = vpop.f32.mrf.mxu0  ;;  %v1869_v40 = vadd.f32 %v12710_v54, %v14820_v2 }
 0x1d2   : > { %14817 = vst [vmem:[#allocation6_spill] sm:$0xff] %v13057_v11  ;;  %v13065_v16 = vmax.f32 %v3103_v48, %v3175_v28  ;;  %v3178_v58 = vmax.f32 %v2224_v35, 0.0  ;;  %v2219_v59 = vadd.f32 %v12710_v54, %v2218_v27  ;;  %v14822_v28 = vld [vmem:[#allocation9_spill] sm:$0xff]  ;;  %v3108_v27 = vmax.f32 %v1874_v56, 0.0  ;;  %v607_v56 = vld [vmem:[%s12197_s12 + $0x6f8] sm:$0xff] }
 0x1d3   : > { %v11142_v19 = vpop.f32.mrf.mxu0  ;;  %11285 = vmatmul.mubr.msk.f32.gmra.mxu0 %vm683_vm1, %v603_v42  ;;  %v1884_v48 = vadd.f32 %v14822_v28, %v12710_v54 }
 0x1d4   : > { %14819 = vst [vmem:[#allocation7_spill] sm:$0xff] %v13065_v16  ;;  %v13071_v23 = vmax.f32 %v3106_v12, %v3178_v58  ;;  %v3177_v3 = vmax.f32 %v2219_v59, 0.0  ;;  %v2234_v11 = vadd.f32 %v11142_v19, %v12710_v54  ;;  %11287 = vmatprep.mubr.msk.f32.mxu0 %vm683_vm1, %v604_v0  ;;  %v14824_v58 = vld [vmem:[#allocation10_spill] sm:$0xff]  ;;  %v3107_v0 = vmax.f32 %v1869_v40, 0.0 }
 0x1d5   : > { %v2228_v35 = vpop.f32.mrf.mxu0  ;;  %v1879_v59 = vadd.f32 %v12710_v54, %v14824_v58 }
 0x1d6   : > { %14821 = vst [vmem:[#allocation8_spill] sm:$0xff] %v13071_v23  ;;  %v13079_v42 = vmax.f32 %v3105_v31, %v3177_v3  ;;  %v3180_v16 = vmax.f32 %v2234_v11, 0.0  ;;  %v2229_v12 = vadd.f32 %v12710_v54, %v2228_v35  ;;  %v3110_v31 = vmax.f32 %v1884_v48, 0.0  ;;  %v608_v3 = vld [vmem:[%s12197_s12 + $0x700] sm:$0xff]  ;;  %v14826_v35 = vld [vmem:[#allocation11_spill] sm:$0xff] }
 0x1d7   : > { %v11145_v19 = vpop.f32.mrf.mxu0  ;;  %11288 = vmatmul.mubr.msk.f32.gmra.mxu0 %vm683_vm1, %v605_v36  ;;  %v1894_v58 = vadd.f32 %v14826_v35, %v12710_v54  ;;  %v3109_v40 = vmax.f32 %v1879_v59, 0.0  ;;  %v609_v35 = vld [vmem:[%s12197_s12 + $0x708] sm:$0xff]  ;;  %v610_v59 = vld [vmem:[%s12197_s12 + $0x710] sm:$0xff] }
 0x1d8   : > { %14823 = vst [vmem:[#allocation9_spill] sm:$0xff] %v13079_v42  ;;  %v13085_v2 = vmax.f32 %v3108_v27, %v3180_v16  ;;  %v3179_v23 = vmax.f32 %v2229_v12, 0.0  ;;  %v2244_v28 = vadd.f32 %v11145_v19, %v12710_v54  ;;  %11290 = vmatprep.mubr.msk.f32.mxu0 %vm683_vm1, %v606_v24  ;;  %v14828_v12 = vld [vmem:[#allocation12_spill] sm:$0xff] }
 0x1d9   : > { %v2238_v11 = vpop.f32.mrf.mxu0  ;;  %v1889_v24 = vadd.f32 %v12710_v54, %v14828_v12 }
 0x1da   : > { %14825 = vst [vmem:[#allocation10_spill] sm:$0xff] %v13085_v2  ;;  %v13093_v42 = vmax.f32 %v3107_v0, %v3179_v23  ;;  %v3182_v36 = vmax.f32 %v2244_v28, 0.0  ;;  %v2239_v16 = vadd.f32 %v12710_v54, %v2238_v11  ;;  %v14830_v23 = vld [vmem:[#allocation13_spill] sm:$0xff]  ;;  %v3112_v11 = vmax.f32 %v1894_v58, 0.0  ;;  %v611_v58 = vld [vmem:[%s12197_s12 + $0x718] sm:$0xff] }
 0x1db   : > { %v11148_v27 = vpop.f32.mrf.mxu0  ;;  %11291 = vmatmul.mubr.msk.f32.gmra.mxu0 %vm683_vm1, %v607_v56  ;;  %v1904_v0 = vadd.f32 %v14830_v23, %v12710_v54 }
 0x1dc   : > { %14827 = vst [vmem:[#allocation11_spill] sm:$0xff] %v13093_v42  ;;  %v13099_v19 = vmax.f32 %v3110_v31, %v3182_v36  ;;  %v3181_v48 = vmax.f32 %v2239_v16, 0.0  ;;  %v2254_v2 = vadd.f32 %v11148_v27, %v12710_v54  ;;  %11293 = vmatprep.mubr.msk.f32.mxu0 %vm683_vm1, %v608_v3  ;;  %v14832_v36 = vld [vmem:[#allocation14_spill] sm:$0xff]  ;;  %v3111_v3 = vmax.f32 %v1889_v24, 0.0 }
 0x1dd   : > { %v2248_v28 = vpop.f32.mrf.mxu0  ;;  %v1899_v16 = vadd.f32 %v12710_v54, %v14832_v36 }
 0x1de   : > { %14829 = vst [vmem:[#allocation12_spill] sm:$0xff] %v13099_v19  ;;  %v13107_v56 = vmax.f32 %v3109_v40, %v3181_v48  ;;  %v3184_v42 = vmax.f32 %v2254_v2, 0.0  ;;  %v2249_v31 = vadd.f32 %v12710_v54, %v2248_v28  ;;  %v3114_v40 = vmax.f32 %v1904_v0, 0.0  ;;  %v612_v48 = vld [vmem:[%s12197_s12 + $0x720] sm:$0xff]  ;;  %v14834_v28 = vld [vmem:[#allocation15_spill] sm:$0xff] }
 0x1df   : > { %v11151_v27 = vpop.f32.mrf.mxu0  ;;  %11294 = vmatmul.mubr.msk.f32.gmra.mxu0 %vm683_vm1, %v609_v35  ;;  %v1914_v36 = vadd.f32 %v14834_v28, %v12710_v54  ;;  %v3113_v24 = vmax.f32 %v1899_v16, 0.0  ;;  %v613_v28 = vld [vmem:[%s12197_s12 + $0x728] sm:$0xff]  ;;  %v614_v16 = vld [vmem:[%s12197_s12 + $0x730] sm:$0xff] }
 0x1e0   : > { %14831 = vst [vmem:[#allocation13_spill] sm:$0xff] %v13107_v56  ;;  %v13113_v12 = vmax.f32 %v3112_v11, %v3184_v42  ;;  %v3183_v19 = vmax.f32 %v2249_v31, 0.0  ;;  %v2264_v23 = vadd.f32 %v11151_v27, %v12710_v54  ;;  %11296 = vmatprep.mubr.msk.f32.mxu0 %vm683_vm1, %v610_v59  ;;  %v14836_v31 = vld [vmem:[#allocation16_spill] sm:$0xff] }
 0x1e1   : > { %v2258_v2 = vpop.f32.mrf.mxu0  ;;  %v1909_v59 = vadd.f32 %v12710_v54, %v14836_v31 }
 0x1e2   : > { %14833 = vst [vmem:[#allocation14_spill] sm:$0xff] %v13113_v12  ;;  %v13121_v56 = vmax.f32 %v3111_v3, %v3183_v19  ;;  %v3186_v35 = vmax.f32 %v2264_v23, 0.0  ;;  %v2259_v42 = vadd.f32 %v12710_v54, %v2258_v2  ;;  %v14837_v19 = vld [vmem:[#allocation17_spill] sm:$0xff]  ;;  %v3116_v2 = vmax.f32 %v1914_v36, 0.0  ;;  %v615_v36 = vld [vmem:[%s12197_s12 + $0x738] sm:$0xff] }
 0x1e3   : > { %v11154_v11 = vpop.f32.mrf.mxu0  ;;  %11297 = vmatmul.mubr.msk.f32.gmra.mxu0 %vm683_vm1, %v611_v58  ;;  %v1924_v3 = vadd.f32 %v14837_v19, %v12710_v54 }
 0x1e4   : > { %14835 = vst [vmem:[#allocation15_spill] sm:$0xff] %v13121_v56  ;;  %v13127_v27 = vmax.f32 %v3114_v40, %v3186_v35  ;;  %v3185_v0 = vmax.f32 %v2259_v42, 0.0  ;;  %v2274_v12 = vadd.f32 %v11154_v11, %v12710_v54  ;;  %11299 = vmatprep.mubr.msk.f32.mxu0 %vm683_vm1, %v612_v48  ;;  %v14838_v35 = vld [vmem:[#allocation18_spill] sm:$0xff]  ;;  %v3115_v48 = vmax.f32 %v1909_v59, 0.0 }
 0x1e5   : > { %v2268_v23 = vpop.f32.mrf.mxu0  ;;  %v1919_v42 = vadd.f32 %v12710_v54, %v14838_v35 }
 0x1e6   : > { %v13135_v58 = vmax.f32 %v3113_v24, %v3185_v0  ;;  %v3188_v56 = vmax.f32 %v2274_v12, 0.0  ;;  %v2269_v40 = vadd.f32 %v12710_v54, %v2268_v23  ;;  %v3118_v24 = vmax.f32 %v1924_v3, 0.0  ;;  %v616_v0 = vld [vmem:[%s12197_s12 + $0x740] sm:$0xff]  ;;  %v14839_v23 = vld [vmem:[#allocation19_spill] sm:$0xff] }
 0x1e7   : > { %v11157_v11 = vpop.f32.mrf.mxu0  ;;  %11300 = vmatmul.mubr.msk.f32.gmra.mxu0 %vm683_vm1, %v613_v28  ;;  %v1934_v35 = vadd.f32 %v14839_v23, %v12710_v54  ;;  %v3117_v59 = vmax.f32 %v1919_v42, 0.0  ;;  %v617_v23 = vld [vmem:[%s12197_s12 + $0x748] sm:$0xff]  ;;  %v618_v42 = vld [vmem:[%s12197_s12 + $0x750] sm:$0xff] }
 0x1e8   : > { %v13141_v31 = vmax.f32 %v3116_v2, %v3188_v56  ;;  %v3187_v15 = vmax.f32 %v2269_v40, 0.0  ;;  %v2284_v19 = vadd.f32 %v11157_v11, %v12710_v54  ;;  %11302 = vmatprep.mubr.msk.f32.mxu0 %vm683_vm1, %v614_v16  ;;  %v14840_v40 = vld [vmem:[#allocation20_spill] sm:$0xff] }
 0x1e9   : > { %v2278_v12 = vpop.f32.mrf.mxu0  ;;  %v1929_v16 = vadd.f32 %v12710_v54, %v14840_v40 }
 0x1ea   : > { %v13149_v60 = vmax.f32 %v3115_v48, %v3187_v15  ;;  %v3190_v28 = vmax.f32 %v2284_v19, 0.0  ;;  %v2279_v56 = vadd.f32 %v12710_v54, %v2278_v12  ;;  %v14842_v15 = vld [vmem:[#allocation21_spill] sm:$0xff]  ;;  %v3120_v12 = vmax.f32 %v1934_v35, 0.0 }
 0x1eb   : > { %v11160_v2 = vpop.f32.mrf.mxu0  ;;  %11303 = vmatmul.mubr.msk.f32.gmra.mxu0 %vm683_vm1, %v615_v36  ;;  %v1944_v48 = vadd.f32 %v14842_v15, %v12710_v54 }
 0x1ec   : > { %v13155_v11 = vmax.f32 %v3118_v24, %v3190_v28  ;;  %v3189_v3 = vmax.f32 %v2279_v56, 0.0  ;;  %v2294_v4 = vadd.f32 %v11160_v2, %v12710_v54  ;;  %11305 = vmatprep.mubr.msk.f32.mxu0 %vm683_vm1, %v616_v0  ;;  %v13168_v24 = vld [vmem:[%s14718_s2] ss:$0 sm:$0xff]  ;;  %v14843_v0 = vld [vmem:[#allocation22_spill] sm:$0xff]  ;;  %v3119_v54 = vmax.f32 %v1929_v16, 0.0 }
 0x1ed   : > { %v2288_v19 = vpop.f32.mrf.mxu0  ;;  %v1939_v56 = vadd.f32 %v13168_v24, %v14843_v0 }
 0x1ee   : > { %14841 = vst [vmem:[#allocation16_spill] sm:$0xff] %v13155_v11  ;;  %v13163_v36 = vmax.f32 %v3117_v59, %v3189_v3  ;;  %v3192_v51 = vmax.f32 %v2294_v4, 0.0  ;;  %v2289_v28 = vadd.f32 %v13168_v24, %v2288_v19  ;;  %v619_v4 = vld [vmem:[%s12197_s12 + $0x758] sm:$0xff]  ;;  %v3122_v3 = vmax.f32 %v1944_v48, 0.0 }
 0x1ef   : > { %v11163_v2 = vpop.f32.mrf.mxu0  ;;  %11306 = vmatmul.mubr.msk.f32.gmra.mxu0 %vm683_vm1, %v617_v23  ;;  %v14844_v19 = vld [vmem:[#allocation23_spill] sm:$0xff]  ;;  %v3121_v16 = vmax.f32 %v1939_v56, 0.0 }
 0x1f0   : > { %v13174_v40 = vmax.f32 %v3120_v12, %v3192_v51  ;;  %v3191_v35 = vmax.f32 %v2289_v28, 0.0  ;;  %v2304_v59 = vadd.f32 %v13168_v24, %v11163_v2  ;;  %11308 = vmatprep.mubr.msk.f32.mxu0 %vm683_vm1, %v618_v42  ;;  %v1954_v0 = vadd.f32 %v13168_v24, %v14844_v19  ;;  %v14845_v28 = vld [vmem:[#allocation24_spill] sm:$0xff]  ;;  %v621_v19 = vld [vmem:[%s12197_s12 + $0x768] sm:$0xff]  ;;  %v622_v56 = vld [vmem:[%s12197_s12 + $0x770] sm:$0xff] }
 0x1f1   : > { %v2298_v15 = vpop.f32.mrf.mxu0  ;;  %v1949_v42 = vadd.f32 %v13168_v24, %v14845_v28 }
 0x1f2   : > { %v13182_v44 = vmax.f32 %v3119_v54, %v3191_v35  ;;  %v3194_v23 = vmax.f32 %v2304_v59, 0.0  ;;  %v2299_v51 = vadd.f32 %v13168_v24, %v2298_v15  ;;  %v14846_v54 = vld [vmem:[#allocation25_spill] sm:$0xff]  ;;  %v3124_v15 = vmax.f32 %v1954_v0, 0.0  ;;  %v623_v0 = vld [vmem:[%s12197_s12 + $0x778] sm:$0xff] }
 0x1f3   : > { %v11166_v12 = vpop.f32.mrf.mxu0  ;;  %11309 = vmatmul.mubr.msk.f32.gmra.mxu0 %vm683_vm1, %v619_v4  ;;  %v1964_v35 = vadd.f32 %v13168_v24, %v14846_v54 }
 0x1f4   : > { %v13188_v2 = vmax.f32 %v3122_v3, %v3194_v23  ;;  %v3193_v48 = vmax.f32 %v2299_v51, 0.0  ;;  %v2314_v52 = vadd.f32 %v13168_v24, %v11166_v12  ;;  %11311 = vmatprep.mubr.msk.f32.mxu0 %vm683_vm1, %v620_v7  ;;  %v14847_v23 = vld [vmem:[#allocation26_spill] sm:$0xff]  ;;  %v3123_v7 = vmax.f32 %v1949_v42, 0.0 }
 0x1f5   : > { %v2308_v59 = vpop.f32.mrf.mxu0  ;;  %v1959_v51 = vadd.f32 %v13168_v24, %v14847_v23 }
 0x1f6   : > { %v13196_v4 = vmax.f32 %v3121_v16, %v3193_v48  ;;  %v3196_v18 = vmax.f32 %v2314_v52, 0.0  ;;  %v2309_v3 = vadd.f32 %v13168_v24, %v2308_v59  ;;  %v3126_v16 = vmax.f32 %v1964_v35, 0.0  ;;  %v624_v48 = vld [vmem:[%s12197_s12 + $0x780] sm:$0xff]  ;;  %v14848_v59 = vld [vmem:[#allocation27_spill] sm:$0xff] }
 0x1f7   : > { %v11169_v12 = vpop.f32.mrf.mxu0  ;;  %11312 = vmatmul.mubr.msk.f32.gmra.mxu0 %vm683_vm1, %v621_v19  ;;  %v1974_v23 = vadd.f32 %v13168_v24, %v14848_v59  ;;  %v3125_v42 = vmax.f32 %v1959_v51, 0.0 }
 0x1f8   : > { %v13202_v28 = vmax.f32 %v3124_v15, %v3196_v18  ;;  %v3195_v63 = vmax.f32 %v2309_v3, 0.0  ;;  %v2324_v54 = vadd.f32 %v13168_v24, %v11169_v12  ;;  %11314 = vmatprep.mubr.msk.f32.mxu0 %vm683_vm1, %v622_v56  ;;  %v14849_v3 = vld [vmem:[#allocation28_spill] sm:$0xff] }
 0x1f9   : > { %v2318_v52 = vpop.f32.mrf.mxu0  ;;  %v1969_v56 = vadd.f32 %v13168_v24, %v14849_v3 }
 0x1fa   : > { %v13210_v33 = vmax.f32 %v3123_v7, %v3195_v63  ;;  %v3198_v19 = vmax.f32 %v2324_v54, 0.0  ;;  %v2319_v18 = vadd.f32 %v13168_v24, %v2318_v52  ;;  %v625_v63 = vld [vmem:[%s12197_s12 + $0x788] sm:$0xff]  ;;  %v626_v54 = vld [vmem:[%s12197_s12 + $0x790] sm:$0xff]  ;;  %v3128_v52 = vmax.f32 %v1974_v23, 0.0  ;;  %v627_v23 = vld [vmem:[%s12197_s12 + $0x798] sm:$0xff] }
 0x1fb   : > { %v11172_v15 = vpop.f32.mrf.mxu0  ;;  %11315 = vmatmul.mubr.msk.f32.gmra.mxu0 %vm683_vm1, %v623_v0 }
 0x1fc   : > { %v13216_v12 = vmax.f32 %v3126_v16, %v3198_v19  ;;  %v3197_v35 = vmax.f32 %v2319_v18, 0.0  ;;  %v2334_v37 = vadd.f32 %v13168_v24, %v11172_v15  ;;  %11317 = vmatprep.mubr.msk.f32.mxu0 %vm683_vm1, %v624_v48  ;;  %v3127_v19 = vmax.f32 %v1969_v56, 0.0  ;;  %v628_v15 = vld [vmem:[%s12197_s12 + $0x7a0] sm:$0xff]  ;;  %v629_v56 = vld [vmem:[%s12197_s12 + $0x7a8] sm:$0xff] }
 0x1fd   : > { %v2328_v7 = vpop.f32.mrf.mxu0 }
 0x1fe   : > { %v13222_v51 = vmax.f32 %v3125_v42, %v3197_v35  ;;  %v3200_v0 = vmax.f32 %v2334_v37, 0.0  ;;  %v2329_v59 = vadd.f32 %v13168_v24, %v2328_v7 }
 0x1ff   : > { %v13225_v16 = vpop.f32.mrf.mxu0  ;;  %11318 = vmatmul.mubr.msk.f32.gmra.mxu0 %vm683_vm1, %v625_v63  ;;  %v630_v63 = vld [vmem:[%s12197_s12 + $0x7b0] sm:$0xff] }
 0x200   : > { %v13228_v18 = vmax.f32 %v3128_v52, %v3200_v0  ;;  %v3199_v48 = vmax.f32 %v2329_v59, 0.0  ;;  %11320 = vmatprep.mubr.msk.f32.mxu0 %vm683_vm1, %v626_v54  ;;  %v631_v54 = vld [vmem:[%s12197_s12 + $0x7b8] sm:$0xff]  ;;  %v632_v0 = vld [vmem:[%s12197_s12 + $0x7c0] sm:$0xff] }
 0x201   : > { %v13232_v42 = vpop.f32.mrf.mxu0 }
 0x202   : > { %14850 = vst [vmem:[#allocation17_spill] sm:$0xff] %v13228_v18  ;;  %v13235_v37 = vmax.f32 %v3127_v19, %v3199_v48  ;;  %v633_v19 = vld [vmem:[%s12197_s12 + $0x7c8] sm:$0xff] }
 0x203   : > { %v13237_v3 = vpop.f32.mrf.mxu0  ;;  %11321 = vmatmul.mubr.msk.f32.gmra.mxu0 %vm683_vm1, %v627_v23  ;;  %v13261_v48 = vld [vmem:[%s14719_s3 + $0x8] sm:$0xff] }
 0x204   : > { %14851 = vst [vmem:[#allocation18_spill] sm:$0xff] %v13235_v37  ;;  %11323 = vmatprep.mubr.msk.f32.mxu0 %vm683_vm1, %v628_v15  ;;  %14852 = vst [vmem:[#allocation19_spill] sm:$0xff] %v13261_v48  ;;  %v634_v15 = vld [vmem:[%s12197_s12 + $0x7d0] sm:$0xff]  ;;  %11389 = vmatprep.subr.mxu1 %v13261_v48 }
 0x205   : > { %v13242_v35 = vpop.f32.mrf.mxu0  ;;  %11390 = vmatpush3.msra.mxu1 %v13261_v48 }
 0x207   : > { %v13245_v7 = vpop.f32.mrf.mxu0  ;;  %11324 = vmatmul.mubr.msk.f32.gmra.mxu0 %vm683_vm1, %v629_v56 }
 0x208   : > { %11326 = vmatprep.mubr.msk.f32.mxu0 %vm683_vm1, %v630_v63  ;;  %v635_v63 = vld [vmem:[%s12197_s12 + $0x7d8] sm:$0xff] }
 0x209   : > { %v13250_v52 = vpop.f32.mrf.mxu0 }
 0x20b   : > { %v13253_v59 = vpop.f32.mrf.mxu0  ;;  %11327 = vmatmul.mubr.msk.f32.gmra.mxu0 %vm683_vm1, %v631_v54 }
 0x20c   : > { %11329 = vmatprep.mubr.msk.f32.mxu0 %vm683_vm1, %v632_v0  ;;  %v636_v0 = vld [vmem:[%s12197_s12 + $0x7e0] sm:$0xff] }
 0x20d   : > { %v13263_v23 = vpop.f32.mrf.mxu0 }
 0x20f   : > { %v13268_v56 = vpop.f32.mrf.mxu0  ;;  %11330 = vmatmul.mubr.msk.f32.gmra.mxu0 %vm683_vm1, %v633_v19 }
 0x210   : > { %11332 = vmatprep.mubr.msk.f32.mxu0 %vm683_vm1, %v634_v15  ;;  %v639_v15 = vld [vmem:[%s12197_s12 + $0x7f8] sm:$0xff] }
 0x211   : > { %v13273_v54 = vpop.f32.mrf.mxu0 }
 0x213   : > { %v13276_v32 = vpop.f32.mrf.mxu0  ;;  %11333 = vmatmul.mubr.msk.f32.gmra.mxu0 %vm683_vm1, %v635_v63 }
 0x214   : > { %11335 = vmatprep.mubr.msk.f32.mxu0 %vm683_vm1, %v636_v0  ;;  %v641_v0 = vld [vmem:[%s12197_s12 + $0x808] sm:$0xff] }
 0x215   : > { %v13281_v25 = vpop.f32.mrf.mxu0 }
 0x216   : > { %14853 = vst [vmem:[#allocation20_spill] sm:$0xff] %v13281_v25 }
 0x217   : > { %v13284_v19 = vpop.f32.mrf.mxu0  ;;  %11336 = vmatmul.mubr.msk.f32.gmra.mxu0 %vm683_vm1, %v637_v55 }
 0x218   : > { %14854 = vst [vmem:[#allocation21_spill] sm:$0xff] %v13284_v19  ;;  %11338 = vmatprep.mubr.msk.f32.mxu0 %vm683_vm1, %v638_v29  ;;  %v643_v29 = vld [vmem:[%s12197_s12 + $0x818] sm:$0xff] }
 0x219   : > { %v13289_v10 = vpop.f32.mrf.mxu0 }
 0x21a   : > { %14855 = vst [vmem:[#allocation22_spill] sm:$0xff] %v13289_v10 }
 0x21b   : > { %v13292_v63 = vpop.f32.mrf.mxu0  ;;  %11339 = vmatmul.mubr.msk.f32.gmra.mxu0 %vm683_vm1, %v639_v15 }
 0x21c   : > { %14856 = vst [vmem:[#allocation23_spill] sm:$0xff] %v13292_v63  ;;  %11341 = vmatprep.mubr.msk.f32.mxu0 %vm683_vm1, %v640_v47  ;;  %v645_v47 = vld [vmem:[%s12197_s12 + $0x828] sm:$0xff] }
 0x21d   : > { %v13297_v17 = vpop.f32.mrf.mxu0 }
 0x21e   : > { %14857 = vst [vmem:[#allocation24_spill] sm:$0xff] %v13297_v17 }
 0x21f   : > { %v13300_v55 = vpop.f32.mrf.mxu0  ;;  %11342 = vmatmul.mubr.msk.f32.gmra.mxu0 %vm683_vm1, %v641_v0  ;;  %v13316_v0 = vld [vmem:[%s14719_s3] sm:$0xff] }
 0x220   : > { %14858 = vst [vmem:[#allocation25_spill] sm:$0xff] %v13300_v55  ;;  %11344 = vmatprep.mubr.msk.f32.mxu0 %vm683_vm1, %v642_v21  ;;  %11397 = vmatprep.subr.mxu1 %v13316_v0 }
 0x221   : > { %v13305_v6 = vpop.f32.mrf.mxu0 }
 0x222   : > { %14859 = vst [vmem:[#allocation26_spill] sm:$0xff] %v13305_v6 }
 0x223   : > { %v13308_v15 = vpop.f32.mrf.mxu0  ;;  %11345 = vmatmul.mubr.msk.f32.gmra.mxu0 %vm683_vm1, %v643_v29 }
 0x224   : > { %14860 = vst [vmem:[#allocation27_spill] sm:$0xff] %v13308_v15  ;;  %11347 = vmatprep.mubr.msk.f32.mxu0 %vm683_vm1, %v644_v26  ;;  %v647_v26 = vld [vmem:[%s12197_s12 + $0x838] sm:$0xff] }
 0x225   : > { %v13318_v21 = vpop.f32.mrf.mxu0 }
 0x226   : > { %14861 = vst [vmem:[#allocation28_spill] sm:$0xff] %v13318_v21 }
 0x227   : > { %v13322_v13 = vpop.f32.mrf.mxu0  ;;  %11348 = vmatmul.mubr.msk.f32.gmra.mxu0 %vm683_vm1, %v645_v47 }
 0x228   : > { %14862 = vst [vmem:[#allocation68_spill] sm:$0xff] %v13322_v13  ;;  %11350 = vmatprep.mubr.msk.f32.mxu0 %vm683_vm1, %v646_v9  ;;  %v650_v13 = vld [vmem:[%s12197_s12 + $0x850] sm:$0xff]  ;;  %v651_v9 = vld [vmem:[%s12197_s12 + $0x858] sm:$0xff] }
 0x229   : > { %v13327_v29 = vpop.f32.mrf.mxu0 }
 0x22a   : > { %14863 = vst [vmem:[#allocation69_spill] sm:$0xff] %v13327_v29 }
 0x22b   : > { %v13330_v41 = vpop.f32.mrf.mxu0  ;;  %11351 = vmatmul.mubr.msk.f32.gmra.mxu0 %vm683_vm1, %v647_v26 }
 0x22c   : > { %14864 = vst [vmem:[#allocation70_spill] sm:$0xff] %v13330_v41  ;;  %11353 = vmatprep.mubr.msk.f32.mxu0 %vm683_vm1, %v648_v43  ;;  %v652_v41 = vld [vmem:[%s12197_s12 + $0x860] sm:$0xff]  ;;  %v653_v43 = vld [vmem:[%s12197_s12 + $0x868] sm:$0xff] }
 0x22d   : > { %v13335_v5 = vpop.f32.mrf.mxu0 }
 0x22e   : > { %14865 = vst [vmem:[#allocation71_spill] sm:$0xff] %v13335_v5  ;;  %v654_v5 = vld [vmem:[%s12197_s12 + $0x870] sm:$0xff] }
 0x22f   : > { %v13338_v47 = vpop.f32.mrf.mxu0  ;;  %11354 = vmatmul.mubr.msk.f32.gmra.mxu0 %vm683_vm1, %v649_v1  ;;  %v655_v1 = vld [vmem:[%s12197_s12 + $0x878] sm:$0xff]  ;;  %s9708_s12 = sshll.u32 %s378_s30, 4  ;;  %s9709_s12 = int_to_ptr.vmem [resolvable:$true] %s9708_s12 }
 0x230   : > { %14866 = vst [vmem:[#allocation72_spill] sm:$0xff] %v13338_v47  ;;  %11356 = vmatprep.mubr.msk.f32.mxu0 %vm683_vm1, %v650_v13  ;;  %v11367_v47 = vpop.f32.mrf.mxu1  ;;  %s12007_s0 = scalar_lea.vmem %s9709_s12, 16  ;;  %p12014_p0 = scmp.lt.s32.totalorder %s9709_s12, %s12012_s21 }
 0x231   : > { %v13343_v29 = vpop.f32.mrf.mxu0  ;;  %p12008_p11 = scmp.ne.s32.totalorder %s9709_s12, %s12007_s0  ;;  %p12015_p1 = scmp.lt.s32.totalorder %s12013_s25, %s12007_s0 }
 0x232   : > { %14867 = vst [vmem:[#allocation73_spill] sm:$0xff] %v13343_v29 }
 0x233   : > { %v13346_v20 = vpop.f32.mrf.mxu0  ;;  %11357 = vmatmul.mubr.msk.f32.gmra.mxu0 %vm683_vm1, %v651_v9  ;;  %p12009_p12 = pnand %p12008_p11, %p12170_p5  ;;  %p12016_p2 = por %p12015_p1, %p12014_p0 }
 0x234   : > { %14868 = vst [vmem:[#allocation74_spill] sm:$0xff] %v13346_v20  ;;  %11359 = vmatprep.mubr.msk.f32.mxu0 %vm683_vm1, %v652_v41 }
 0x235   : > { %v13351_v26 = vpop.f32.mrf.mxu0  ;;  %p12010_p13 = pneg %p12009_p12 }
 0x236   : > { %14869 = vst [vmem:[#allocation75_spill] sm:$0xff] %v13351_v26 }
 0x237   : > { %v13354_v21 = vpop.f32.mrf.mxu0  ;;  %11360 = vmatmul.mubr.msk.f32.gmra.mxu0 %vm683_vm1, %v653_v43  ;;  %p12017_p3 = pnand %p12016_p2, %p12010_p13 }
 0x238   : > { %14870 = vst [vmem:[#allocation76_spill] sm:$0xff] %v13354_v21  ;;  %11362 = vmatprep.mubr.msk.f32.mxu0 %vm683_vm1, %v654_v5 }
 0x239   : > { %v13359_v13 = vpop.f32.mrf.mxu0 }
 0x23a   : > { %14871 = vst [vmem:[#allocation77_spill] sm:$0xff] %v13359_v13 }
 0x23b   : > { %v13361_v29 = vpop.f32.mrf.mxu0  ;;  %11363 = vmatmul.mubr.msk.f32.gmra.mxu0 %vm683_vm1, %v655_v1  ;;  %v2978_v1 = vpop.f32.mrf.mxu1 }
 0x23c   : > { %14872 = vst [vmem:[#allocation78_spill] sm:$0xff] %v13361_v29 }
 0x23d   : > { %v13364_v9 = vpop.f32.mrf.mxu0 }
 0x23e   : > { %14873 = vst [vmem:[#allocation79_spill] sm:$0xff] %v13364_v9 }
 0x23f   : > { %v13366_v41 = vpop.f32.mrf.mxu0 }
 0x240   : > { %14874 = vst [vmem:[#allocation80_spill] sm:$0xff] %v13366_v41  ;;  %v11370_v41 = vpop.f32.mrf.mxu1 }
 0x241   : > { %v13368_v20 = vpop.f32.mrf.mxu0 }
 0x242   : > { %14875 = vst [vmem:[#allocation81_spill] sm:$0xff] %v13368_v20 }
 0x243   : > { %v13370_v26 = vpop.f32.mrf.mxu0 }
 0x244   : > { %14876 = vst [vmem:[#allocation82_spill] sm:$0xff] %v13370_v26 }
 0x245   : > { %v13372_v21 = vpop.f32.mrf.mxu0 }
 0x246   : > { %14877 = vst [vmem:[#allocation83_spill] sm:$0xff] %v13372_v21  ;;  %v2988_v21 = vpop.f32.mrf.mxu1 }
 0x247   : > { %v13374_v43 = vpop.f32.mrf.mxu0 }
 0x248   : > { %14878 = vst [vmem:[#allocation84_spill] sm:$0xff] %v13374_v43 }
 0x249   : > { %v13376_v5 = vpop.f32.mrf.mxu0 }
 0x24a   : > { %14879 = vst [vmem:[#allocation85_spill] sm:$0xff] %v13376_v5  ;;  %v11373_v5 = vpop.f32.mrf.mxu1 }
 0x24b   : > { %v13378_v13 = vpop.f32.mrf.mxu0 }
 0x24c   : > { %14880 = vst [vmem:[#allocation86_spill] sm:$0xff] %v13378_v13 }
 0x24d   : > { %v13380_v29 = vpop.f32.mrf.mxu0 }
 0x24e   : > { %14881 = vst [vmem:[#allocation87_spill] sm:$0xff] %v13380_v29  ;;  %v2998_v29 = vpop.f32.mrf.mxu1 }
 0x24f   : > { %v13382_v38 = vpop.f32.mrf.mxu0 }
 0x250   : > { %14882 = vst [vmem:[#allocation88_spill] sm:$0xff] %v13382_v38 }
 0x251   : > { %v13384_v9 = vpop.f32.mrf.mxu0 }
 0x252   : > { %14883 = vst [vmem:[#allocation89_spill] sm:$0xff] %v13384_v9  ;;  %v11376_v9 = vpop.f32.mrf.mxu1 }
 0x253   : > { %v13386_v20 = vpop.f32.mrf.mxu0 }
 0x254   : > { %14884 = vst [vmem:[#allocation90_spill] sm:$0xff] %v13386_v20 }
 0x255   : > { %v13388_v26 = vpop.f32.mrf.mxu0 }
 0x256   : > { %14885 = vst [vmem:[#allocation91_spill] sm:$0xff] %v13388_v26  ;;  %v3008_v26 = vpop.f32.mrf.mxu1 }
 0x257   : > { %v13390_v15 = vpop.f32.mrf.mxu0 }
 0x258   : > { %14886 = vst [vmem:[#allocation92_spill] sm:$0xff] %v13390_v15 }
 0x259   : > { %v13392_v43 = vpop.f32.mrf.mxu0 }
 0x25a   : > { %14887 = vst [vmem:[#allocation93_spill] sm:$0xff] %v13392_v43  ;;  %v11379_v43 = vpop.f32.mrf.mxu1 }
 0x25b   : > { %v13394_v57 = vpop.f32.mrf.mxu0 }
 0x25c   : > { %14888 = vst [vmem:[#allocation94_spill] sm:$0xff] %v13394_v57 }
 0x25d   : > { %v13396_v13 = vpop.f32.mrf.mxu0 }
 0x25e   : > { %14889 = vst [vmem:[#allocation95_spill] sm:$0xff] %v13396_v13  ;;  %v2984_v13 = vadd.f32 %v13168_v24, %v11367_v47 }
 0x25f   : > { %v13398_v6 = vpop.f32.mrf.mxu0 }
 0x260   : > { %14890 = vst [vmem:[#allocation96_spill] sm:$0xff] %v13398_v6  ;;  %v2979_v6 = vadd.f32 %v13168_v24, %v2978_v1  ;;  %v3330_v34 = vmax.f32 %v2984_v13, 0.0 }
 0x261   : > { %v13400_v38 = vpop.f32.mrf.mxu0 }
 0x262   : > { %14891 = vst [vmem:[#allocation97_spill] sm:$0xff] %v13400_v38  ;;  %v3018_v38 = vpop.f32.mrf.mxu1 }
 0x263   : > { %v13402_v61 = vpop.f32.mrf.mxu0 }
 0x264   : > { %14892 = vst [vmem:[#allocation98_spill] sm:$0xff] %v13402_v61  ;;  %v11382_v10 = vpop.f32.mrf.mxu1 }
 0x265   : > { %v13404_v20 = vpop.f32.mrf.mxu0 }
 0x266   : > { %14893 = vst [vmem:[#allocation99_spill] sm:$0xff] %v13404_v20  ;;  %v2994_v20 = vadd.f32 %v13168_v24, %v11370_v41  ;;  %v2999_v41 = vadd.f32 %v13168_v24, %v2998_v29 }
 0x267   : > { %v13406_v55 = vpop.f32.mrf.mxu0 }
 0x268   : > { %14894 = vst [vmem:[#allocation100_spill] sm:$0xff] %v13406_v55  ;;  %v2989_v55 = vadd.f32 %v13168_v24, %v2988_v21  ;;  %v3332_v39 = vmax.f32 %v2994_v20, 0.0 }
 0x269   : > { %v13408_v15 = vpop.f32.mrf.mxu0 }
 0x26a   : > { %14895 = vst [vmem:[#allocation101_spill] sm:$0xff] %v13408_v15  ;;  %v3331_v13 = vmax.f32 %v2989_v55, 0.0 }
 0x26b   : > { %v13410_v46 = vpop.f32.mrf.mxu0 }
 0x26c   : > { %14896 = vst [vmem:[#allocation102_spill] sm:$0xff] %v13410_v46  ;;  %v3329_v46 = vmax.f32 %v2979_v6, 0.0 }
 0x26d   : > { %v13413_v57 = vpop.f32.mrf.mxu0 }
 0x26e   : > { %14897 = vst [vmem:[#allocation103_spill] sm:$0xff] %v13413_v57  ;;  %v3004_v57 = vadd.f32 %v13168_v24, %v11373_v5  ;;  %v3333_v5 = vmax.f32 %v2999_v41, 0.0 }
 0x26f   : > { %v11259_v17 = vpop.f32.mrf.mxu0 }
 0x270   : > { %v2624_v61 = vadd.f32 %v13168_v24, %v11259_v17  ;;  %v3334_v48 = vmax.f32 %v3004_v57, 0.0 }
 0x271   : > { %v2618_v63 = vpop.f32.mrf.mxu0 }
 0x272   : > { %v3258_v15 = vmax.f32 %v2624_v61, 0.0  ;;  %v2619_v49 = vadd.f32 %v13168_v24, %v2618_v63  ;;  %v3028_v63 = vpop.f32.mrf.mxu1 }
 0x273   : > { %v11262_v47 = vpop.f32.mrf.mxu0 }
 0x274   : > { %v3474_v53 = vmax.f32 %v3258_v15, %v3330_v34  ;;  %v3257_v1 = vmax.f32 %v2619_v49, 0.0  ;;  %v2634_v19 = vadd.f32 %v13168_v24, %v11262_v47  ;;  %v3014_v34 = vadd.f32 %v13168_v24, %v11376_v9  ;;  %v11385_v47 = vpop.f32.mrf.mxu1 }
 0x275   : > { %v2628_v17 = vpop.f32.mrf.mxu0 }
 0x276   : > { %v13424_v25 = vmax.f32 %v13127_v27, %v3474_v53  ;;  %v3473_v61 = vmax.f32 %v3257_v1, %v3329_v46  ;;  %v3260_v21 = vmax.f32 %v2634_v19, 0.0  ;;  %v2629_v6 = vadd.f32 %v13168_v24, %v2628_v17 }
 0x277   : > { %v11265_v14 = vpop.f32.mrf.mxu0  ;;  %v3009_v53 = vadd.f32 %v13168_v24, %v3008_v26  ;;  %v3336_v1 = vmax.f32 %v3014_v34, 0.0  ;;  %v3038_v34 = vpop.f32.mrf.mxu1 }
 0x278   : > { %v13429_v49 = vmax.f32 %v13135_v58, %v3473_v61  ;;  %v3476_v20 = vmax.f32 %v3260_v21, %v3332_v39  ;;  %v3259_v15 = vmax.f32 %v2629_v6, 0.0  ;;  %v2644_v55 = vadd.f32 %v13168_v24, %v11265_v14 }
 0x279   : > { %v2638_v29 = vpop.f32.mrf.mxu0  ;;  %v3024_v58 = vadd.f32 %v13168_v24, %v11379_v43 }
 0x27a   : > { %v13434_v46 = vmax.f32 %v13141_v31, %v3476_v20  ;;  %v3475_v27 = vmax.f32 %v3259_v15, %v3331_v13  ;;  %v3262_v19 = vmax.f32 %v2644_v55, 0.0  ;;  %v2639_v57 = vadd.f32 %v13168_v24, %v2638_v29 }
 0x27b   : > { %v11268_v9 = vpop.f32.mrf.mxu0  ;;  %v3335_v31 = vmax.f32 %v3009_v53, 0.0  ;;  %v3019_v13 = vadd.f32 %v13168_v24, %v3018_v38  ;;  %v3338_v20 = vmax.f32 %v3024_v58, 0.0 }
 0x27c   : > { %v13439_v39 = vmax.f32 %v13149_v60, %v3475_v27  ;;  %v13441_v14 = vmax.f32 %v3262_v19, %v3334_v48  ;;  %v3261_v17 = vmax.f32 %v2639_v57, 0.0  ;;  %v2654_v26 = vadd.f32 %v13168_v24, %v11268_v9 }
 0x27d   : > { %v2648_v41 = vpop.f32.mrf.mxu0  ;;  %v3034_v48 = vadd.f32 %v13168_v24, %v11382_v10  ;;  %v3337_v27 = vmax.f32 %v3019_v13, 0.0 }
 0x27e   : > { %14898 = vst [vmem:[#allocation104_spill] sm:$0xff] %v13441_v14  ;;  %v13447_v21 = vmax.f32 %v3261_v17, %v3333_v5  ;;  %v3264_v6 = vmax.f32 %v2654_v26, 0.0  ;;  %v2649_v43 = vadd.f32 %v13168_v24, %v2648_v41  ;;  %v3029_v5 = vadd.f32 %v13168_v24, %v3028_v63  ;;  %v11388_v17 = vpop.f32.mrf.mxu1 }
 0x27f   : > { %v11271_v60 = vpop.f32.mrf.mxu0  ;;  %v3340_v26 = vmax.f32 %v3034_v48, 0.0  ;;  %v3044_v41 = vadd.f32 %v13168_v24, %v11385_v47 }
 0x280   : > { %14899 = vst [vmem:[#allocation105_spill] sm:$0xff] %v13447_v21  ;;  %v3480_v55 = vmax.f32 %v3264_v6, %v3336_v1  ;;  %v3263_v29 = vmax.f32 %v2649_v43, 0.0  ;;  %v2664_v38 = vadd.f32 %v13168_v24, %v11271_v60  ;;  %v3339_v60 = vmax.f32 %v3029_v5, 0.0 }
 0x281   : > { %v2658_v53 = vpop.f32.mrf.mxu0 }
 0x282   : > { %v13456_v19 = vmax.f32 %v13174_v40, %v3480_v55  ;;  %v3479_v57 = vmax.f32 %v3263_v29, %v3335_v31  ;;  %v3266_v9 = vmax.f32 %v2664_v38, 0.0  ;;  %v2659_v58 = vadd.f32 %v13168_v24, %v2658_v53  ;;  %v3048_v38 = vpop.f32.mrf.mxu1 }
 0x283   : > { %v11274_v10 = vpop.f32.mrf.mxu0  ;;  %v3039_v40 = vadd.f32 %v13168_v24, %v3038_v34  ;;  %v3342_v53 = vmax.f32 %v3044_v41, 0.0 }
 0x284   : > { %14900 = vst [vmem:[#allocation106_spill] sm:$0xff] %v13456_v19  ;;  %v13461_v1 = vmax.f32 %v13182_v44, %v3479_v57  ;;  %v3482_v6 = vmax.f32 %v3266_v9, %v3338_v20  ;;  %v3265_v43 = vmax.f32 %v2659_v58, 0.0  ;;  %v2674_v13 = vadd.f32 %v13168_v24, %v11274_v10 }
 0x285   : > { %v2668_v63 = vpop.f32.mrf.mxu0  ;;  %v3054_v44 = vadd.f32 %v13168_v24, %v11388_v17  ;;  %v3341_v58 = vmax.f32 %v3039_v40, 0.0  ;;  %v2344_v40 = vadd.f32 %v13168_v24, %v13225_v16 }
 0x286   : > { %14901 = vst [vmem:[#allocation107_spill] sm:$0xff] %v13461_v1  ;;  %v13466_v31 = vmax.f32 %v13188_v2, %v3482_v6  ;;  %v3481_v55 = vmax.f32 %v3265_v43, %v3337_v27  ;;  %v3268_v29 = vmax.f32 %v2674_v13, 0.0  ;;  %v2669_v48 = vadd.f32 %v13168_v24, %v2668_v63 }
 0x287   : > { %v11277_v47 = vpop.f32.mrf.mxu0  ;;  %v3049_v2 = vadd.f32 %v13168_v24, %v3048_v38  ;;  %v3344_v17 = vmax.f32 %v3054_v44, 0.0 }
 0x288   : > { %14902 = vst [vmem:[#allocation108_spill] sm:$0xff] %v13466_v31  ;;  %v13471_v20 = vmax.f32 %v13196_v4, %v3481_v55  ;;  %v3484_v57 = vmax.f32 %v3268_v29, %v3340_v26  ;;  %v3267_v9 = vmax.f32 %v2669_v48, 0.0  ;;  %v2684_v5 = vadd.f32 %v13168_v24, %v11277_v47 }
 0x289   : > { %v2678_v34 = vpop.f32.mrf.mxu0  ;;  %v3343_v29 = vmax.f32 %v3049_v2, 0.0 }
 0x28a   : > { %14903 = vst [vmem:[#allocation109_spill] sm:$0xff] %v13471_v20  ;;  %v13476_v27 = vmax.f32 %v13202_v28, %v3484_v57  ;;  %v3483_v10 = vmax.f32 %v3267_v9, %v3339_v60  ;;  %v3270_v6 = vmax.f32 %v2684_v5, 0.0  ;;  %v2679_v41 = vadd.f32 %v13168_v24, %v2678_v34 }
 0x28b   : > { %v11280_v43 = vpop.f32.mrf.mxu0  ;;  %v3202_v9 = vmax.f32 %v2344_v40, 0.0 }
 0x28c   : > { %14904 = vst [vmem:[#allocation110_spill] sm:$0xff] %v13476_v27  ;;  %v13480_v4 = vmax.f32 %v13210_v33, %v3483_v10  ;;  %v3486_v26 = vmax.f32 %v3270_v6, %v3342_v53  ;;  %v3269_v13 = vmax.f32 %v2679_v41, 0.0  ;;  %v2694_v63 = vadd.f32 %v13168_v24, %v11280_v43 }
 0x28d   : > { %v2688_v55 = vpop.f32.mrf.mxu0  ;;  %v2339_v33 = vadd.f32 %v13168_v24, %v13232_v42  ;;  %v2349_v10 = vadd.f32 %v13168_v24, %v13242_v35 }
 0x28e   : > { %14905 = vst [vmem:[#allocation111_spill] sm:$0xff] %v13480_v4  ;;  %v13486_v28 = vmax.f32 %v13216_v12, %v3486_v26  ;;  %v3485_v60 = vmax.f32 %v3269_v13, %v3341_v58  ;;  %v3272_v48 = vmax.f32 %v2694_v63, 0.0  ;;  %v2689_v38 = vadd.f32 %v13168_v24, %v2688_v55 }
 0x28f   : > { %v11283_v47 = vpop.f32.mrf.mxu0  ;;  %v2354_v12 = vadd.f32 %v13168_v24, %v13237_v3  ;;  %v2364_v13 = vadd.f32 %v13168_v24, %v13245_v7 }
 0x290   : > { %14906 = vst [vmem:[#allocation112_spill] sm:$0xff] %v13486_v28  ;;  %v13492_v53 = vmax.f32 %v13222_v51, %v3485_v60  ;;  %v13494_v44 = vmax.f32 %v3272_v48, %v3344_v17  ;;  %v3271_v57 = vmax.f32 %v2689_v38, 0.0  ;;  %v2704_v16 = vadd.f32 %v13168_v24, %v11283_v47 }
 0x291   : > { %v2698_v5 = vpop.f32.mrf.mxu0  ;;  %v3201_v51 = vmax.f32 %v2339_v33, 0.0  ;;  %v3204_v26 = vmax.f32 %v2354_v12, 0.0  ;;  %v3203_v60 = vmax.f32 %v2349_v10, 0.0  ;;  %v2359_v48 = vadd.f32 %v13168_v24, %v13250_v52 }
 0x292   : > { %14907 = vst [vmem:[#allocation113_spill] sm:$0xff] %v13492_v53  ;;  %14908 = vst [vmem:[#allocation114_spill] sm:$0xff] %v13494_v44  ;;  %v13501_v58 = vmax.f32 %v3271_v57, %v3343_v29  ;;  %v3274_v42 = vmax.f32 %v2704_v16, 0.0  ;;  %v2699_v2 = vadd.f32 %v13168_v24, %v2698_v5  ;;  %v3206_v7 = vmax.f32 %v2364_v13, 0.0 }
 0x293   : > { %v11286_v6 = vpop.f32.mrf.mxu0  ;;  %v3205_v52 = vmax.f32 %v2359_v48, 0.0 }
 0x294   : > { %14909 = vst [vmem:[#allocation115_spill] sm:$0xff] %v13501_v58  ;;  %v13508_v43 = vmax.f32 %v3202_v9, %v3274_v42  ;;  %v3273_v3 = vmax.f32 %v2699_v2, 0.0  ;;  %v2714_v17 = vadd.f32 %v13168_v24, %v11286_v6  ;;  %v2374_v9 = vadd.f32 %v13168_v24, %v13253_v59 }
 0x295   : > { %v2708_v63 = vpop.f32.mrf.mxu0 }
 0x296   : > { %v3490_v40 = vmax.f32 %v12735_v22, %v13508_v43  ;;  %v3417_v55 = vmax.f32 %v3201_v51, %v3273_v3  ;;  %v3276_v29 = vmax.f32 %v2714_v17, 0.0  ;;  %v2709_v35 = vadd.f32 %v13168_v24, %v2708_v63  ;;  %v14919_v22 = vld [vmem:[#allocation33_spill] sm:$0xff] }
 0x297   : > { %v11289_v38 = vpop.f32.mrf.mxu0 }
 0x298   : > { %v3489_v33 = vmax.f32 %v12743_v30, %v3417_v55  ;;  %v3420_v47 = vmax.f32 %v3204_v26, %v3276_v29  ;;  %v3275_v57 = vmax.f32 %v2709_v35, 0.0  ;;  %v2724_v16 = vadd.f32 %v13168_v24, %v11289_v38 }
 0x299   : > { %v2718_v12 = vpop.f32.mrf.mxu0  ;;  %v2369_v30 = vadd.f32 %v13168_v24, %v13263_v23  ;;  %v3208_v26 = vmax.f32 %v2374_v9, 0.0 }
 0x29a   : > { %v13523_v5 = vmax.f32 %v12749_v50, %v3420_v47  ;;  %v3419_v42 = vmax.f32 %v3203_v60, %v3275_v57  ;;  %v3278_v2 = vmax.f32 %v2724_v16, 0.0  ;;  %v2719_v51 = vadd.f32 %v13168_v24, %v2718_v12 }
 0x29b   : > { %v11292_v10 = vpop.f32.mrf.mxu0  ;;  %v2384_v50 = vadd.f32 %v13168_v24, %v13268_v56  ;;  %v3207_v35 = vmax.f32 %v2369_v30, 0.0  ;;  %v2394_v57 = vadd.f32 %v13168_v24, %v13276_v32  ;;  %v14913_v32 = vld [vmem:[#allocation30_spill] sm:$0xff] }
 0x29c   : > { %v3491_v6 = vmax.f32 %v12757_v8, %v3419_v42  ;;  %v3422_v3 = vmax.f32 %v3206_v7, %v3278_v2  ;;  %v3277_v17 = vmax.f32 %v2719_v51, 0.0  ;;  %v2734_v59 = vadd.f32 %v13168_v24, %v11292_v10  ;;  %v14910_v7 = vld [vmem:[#allocation19_spill] sm:$0xff]  ;;  %v14912_v51 = vld [vmem:[#allocation20_spill] sm:$0xff] }
 0x29d   : > { %v2728_v13 = vpop.f32.mrf.mxu0  ;;  %v2379_v8 = vadd.f32 %v13168_v24, %v13273_v54  ;;  %v3210_v47 = vmax.f32 %v2384_v50, 0.0  ;;  %v14911_v54 = vld [vmem:[#allocation29_spill] sm:$0xff] }
 0x29e   : > { %v13533_v63 = vmax.f32 %v12763_v45, %v3422_v3  ;;  %v3421_v55 = vmax.f32 %v3205_v52, %v3277_v17  ;;  %v3280_v29 = vmax.f32 %v2734_v59, 0.0  ;;  %v2729_v23 = vadd.f32 %v13168_v24, %v2728_v13  ;;  %11391 = vmatprep.mubr.msk.f32.mxu1 %vm3564_vm2, %v3491_v6  ;;  %v14914_v50 = vld [vmem:[#allocation21_spill] sm:$0xff] }
 0x29f   : > { %v11295_v60 = vpop.f32.mrf.mxu0  ;;  %11392 = vmatmul.mubr.msk.f32.vlgmr.msra.gmra.mxu1 %vm3564_vm2, %v13523_v5  ;;  %v3209_v2 = vmax.f32 %v2379_v8, 0.0  ;;  %v2389_v52 = vadd.f32 %v13168_v24, %v14912_v51  ;;  %v2404_v13 = vadd.f32 %v13168_v24, %v14914_v50 }
 0x2a0   : > { %v13542_v56 = vmax.f32 %v12771_v62, %v3421_v55  ;;  %v3424_v48 = vmax.f32 %v3208_v26, %v3280_v29  ;;  %v3279_v45 = vmax.f32 %v2729_v23, 0.0  ;;  %v2744_v38 = vadd.f32 %v13168_v24, %v11295_v60  ;;  %11398 = vmatpush3.msra.mxu1 %v13316_v0  ;;  %v14915_v29 = vld [vmem:[#allocation31_spill] sm:$0xff] }
 0x2a1   : > { %v2738_v16 = vpop.f32.mrf.mxu0  ;;  %11405 = vmatprep.subr.mxu1 %v14910_v7  ;;  %v3212_v26 = vmax.f32 %v2394_v57, 0.0 }
 0x2a2   : > { %v13550_v9 = vmax.f32 %v14911_v54, %v3424_v48  ;;  %v3423_v12 = vmax.f32 %v3207_v35, %v3279_v45  ;;  %v3282_v42 = vmax.f32 %v2744_v38, 0.0  ;;  %v2739_v62 = vadd.f32 %v13168_v24, %v2738_v16  ;;  %11394 = vmatprep.mubr.msk.f32.mxu1 %vm3564_vm2, %v13542_v56  ;;  %v14916_v45 = vld [vmem:[#allocation22_spill] sm:$0xff] }
 0x2a3   : > { %v11298_v30 = vpop.f32.mrf.mxu0  ;;  %11395 = vmatmul.mubr.msk.f32.gmra.mxu1 %vm3564_vm2, %v13533_v63  ;;  %v3211_v48 = vmax.f32 %v2389_v52, 0.0  ;;  %v2399_v38 = vadd.f32 %v13168_v24, %v14916_v45 }
 0x2a4   : > { %v13560_v10 = vmax.f32 %v14913_v32, %v3423_v12  ;;  %v3426_v3 = vmax.f32 %v3210_v47, %v3282_v42  ;;  %v3281_v17 = vmax.f32 %v2739_v62, 0.0  ;;  %v2754_v59 = vadd.f32 %v13168_v24, %v11298_v30  ;;  %11399 = vmatprep.mubr.msk.f32.mxu1 %vm3564_vm2, %v3489_v33  ;;  %v14917_v33 = vld [vmem:[#allocation32_spill] sm:$0xff]  ;;  %v14918_v62 = vld [vmem:[#allocation23_spill] sm:$0xff] }
 0x2a5   : > { %v2748_v55 = vpop.f32.mrf.mxu0  ;;  %v3214_v42 = vmax.f32 %v2404_v13, 0.0  ;;  %v3213_v32 = vmax.f32 %v2399_v38, 0.0 }
 0x2a6   : > { %v13567_v23 = vmax.f32 %v14915_v29, %v3426_v3  ;;  %v3425_v35 = vmax.f32 %v3209_v2, %v3281_v17  ;;  %v3284_v8 = vmax.f32 %v2754_v59, 0.0  ;;  %v2749_v60 = vadd.f32 %v13168_v24, %v2748_v55  ;;  %v14920_v3 = vld [vmem:[#allocation24_spill] sm:$0xff]  ;;  %v14921_v17 = vld [vmem:[#allocation34_spill] sm:$0xff]  ;;  %v14922_v29 = vld [vmem:[#allocation25_spill] sm:$0xff] }
 0x2a7   : > { %v11301_v47 = vpop.f32.mrf.mxu0  ;;  %11400 = vmatmul.mubr.msk.f32.vlgmr.msra.gmra.mxu1 %vm3564_vm2, %v3490_v40  ;;  %v2414_v2 = vadd.f32 %v13168_v24, %v14918_v62 }
 0x2a8   : > { %v13577_v57 = vmax.f32 %v14917_v33, %v3425_v35  ;;  %v13579_v16 = vmax.f32 %v3212_v26, %v3284_v8  ;;  %v3283_v54 = vmax.f32 %v2749_v60, 0.0  ;;  %v2764_v12 = vadd.f32 %v13168_v24, %v11301_v47  ;;  %11402 = vmatprep.mubr.msk.f32.mxu1 %vm3564_vm2, %v3491_v6  ;;  %11406 = vmatpush3.msra.mxu1 %v14910_v7  ;;  %v14923_v60 = vld [vmem:[#allocation35_spill] sm:$0xff]  ;;  %v14924_v33 = vld [vmem:[#allocation26_spill] sm:$0xff] }
 0x2a9   : > { %v2758_v51 = vpop.f32.mrf.mxu0  ;;  %11413 = vmatprep.subr.mxu1 %v13316_v0  ;;  %v2409_v6 = vadd.f32 %v13168_v24, %v14920_v3  ;;  %v3216_v55 = vmax.f32 %v2414_v2, 0.0  ;;  %v2424_v35 = vadd.f32 %v13168_v24, %v14922_v29  ;;  %v14926_v3 = vld [vmem:[#allocation27_spill] sm:$0xff] }
 0x2aa   : > { %v13589_v40 = vmax.f32 %v3211_v48, %v3283_v54  ;;  %v3286_v52 = vmax.f32 %v2764_v12, 0.0  ;;  %v2759_v30 = vadd.f32 %v13168_v24, %v2758_v51  ;;  %v2419_v54 = vadd.f32 %v13168_v24, %v14924_v33 }
 0x2ab   : > { %v11304_v7 = vpop.f32.mrf.mxu0  ;;  %11403 = vmatmul.mubr.msk.f32.gmra.mxu1 %vm3564_vm2, %v13523_v5  ;;  %v3215_v5 = vmax.f32 %v2409_v6, 0.0 }
 0x2ac   : > { %v3430_v26 = vmax.f32 %v3214_v42, %v3286_v52  ;;  %v3285_v50 = vmax.f32 %v2759_v30, 0.0  ;;  %v2774_v13 = vadd.f32 %v13168_v24, %v11304_v7  ;;  %v14925_v42 = vld [vmem:[#allocation36_spill] sm:$0xff]  ;;  %v3218_v30 = vmax.f32 %v2424_v35, 0.0 }
 0x2ad   : > { %v2768_v8 = vpop.f32.mrf.mxu0  ;;  %v2434_v7 = vadd.f32 %v13168_v24, %v14926_v3  ;;  %v14930_v3 = vld [vmem:[#allocation68_spill] sm:$0xff] }
 0x2ae   : > { %v13602_v48 = vmax.f32 %v14923_v60, %v3430_v26  ;;  %v3429_v45 = vmax.f32 %v3213_v32, %v3285_v50  ;;  %v3288_v38 = vmax.f32 %v2774_v13, 0.0  ;;  %v2769_v47 = vadd.f32 %v13168_v24, %v2768_v8  ;;  %v14927_v26 = vld [vmem:[#allocation37_spill] sm:$0xff]  ;;  %v14928_v60 = vld [vmem:[#allocation28_spill] sm:$0xff] }
 0x2af   : > { %v11307_v12 = vpop.f32.mrf.mxu0  ;;  %v3217_v8 = vmax.f32 %v2419_v54, 0.0 }
 0x2b0   : > { %v13608_v62 = vmax.f32 %v14925_v42, %v3429_v45  ;;  %v3432_v2 = vmax.f32 %v3216_v55, %v3288_v38  ;;  %v3287_v51 = vmax.f32 %v2769_v47, 0.0  ;;  %v2784_v52 = vadd.f32 %v13168_v24, %v11307_v12  ;;  %v14929_v38 = vld [vmem:[#allocation38_spill] sm:$0xff] }
 0x2b1   : > { %v2778_v32 = vpop.f32.mrf.mxu0  ;;  %v2429_v45 = vadd.f32 %v13168_v24, %v14928_v60  ;;  %v3220_v42 = vmax.f32 %v2434_v7, 0.0 }
 0x2b2   : > { %v13614_v50 = vmax.f32 %v14927_v26, %v3432_v2  ;;  %v3431_v6 = vmax.f32 %v3215_v5, %v3287_v51  ;;  %v3290_v13 = vmax.f32 %v2784_v52, 0.0  ;;  %v2779_v29 = vadd.f32 %v13168_v24, %v2778_v32  ;;  %v14931_v51 = vld [vmem:[#allocation39_spill] sm:$0xff] }
 0x2b3   : > { %v11310_v55 = vpop.f32.mrf.mxu0  ;;  %v2444_v2 = vadd.f32 %v13168_v24, %v14930_v3  ;;  %v3219_v7 = vmax.f32 %v2429_v45, 0.0 }
 0x2b4   : > { %v13620_v47 = vmax.f32 %v14929_v38, %v3431_v6  ;;  %v3434_v35 = vmax.f32 %v3218_v30, %v3290_v13  ;;  %v3289_v33 = vmax.f32 %v2779_v29, 0.0  ;;  %v2794_v12 = vadd.f32 %v13168_v24, %v11310_v55  ;;  %v13634_v30 = vld [vmem:[%s14719_s3 + $0x10] sm:$0xff]  ;;  %v14932_v6 = vld [vmem:[#allocation69_spill] sm:$0xff] }
 0x2b5   : > { %v2788_v5 = vpop.f32.mrf.mxu0  ;;  %v2439_v13 = vadd.f32 %v13168_v24, %v14932_v6 }
 0x2b6   : > { %v13626_v52 = vmax.f32 %v14931_v51, %v3434_v35  ;;  %v3433_v54 = vmax.f32 %v3217_v8, %v3289_v33  ;;  %v3292_v32 = vmax.f32 %v2794_v12, 0.0  ;;  %v2789_v26 = vadd.f32 %v13168_v24, %v2788_v5  ;;  %11407 = vmatprep.mubr.msk.f32.mxu1 %vm3564_vm2, %v13620_v47  ;;  %v14933_v8 = vld [vmem:[#allocation40_spill] sm:$0xff]  ;;  %v14934_v12 = vld [vmem:[#allocation70_spill] sm:$0xff]  ;;  %v14935_v5 = vld [vmem:[#allocation41_spill] sm:$0xff] }
 0x2b7   : > { %v11313_v29 = vpop.f32.mrf.mxu0  ;;  %11408 = vmatmul.mubr.msk.f32.vlgmr.msra.gmra.mxu1 %vm3564_vm2, %v13614_v50  ;;  %v3222_v33 = vmax.f32 %v2444_v2, 0.0  ;;  %v2454_v45 = vadd.f32 %v13168_v24, %v14934_v12 }
 0x2b8   : > { %v13641_v60 = vmax.f32 %v14933_v8, %v3433_v54  ;;  %v3436_v55 = vmax.f32 %v3220_v42, %v3292_v32  ;;  %v3291_v38 = vmax.f32 %v2789_v26, 0.0  ;;  %v2804_v35 = vadd.f32 %v13168_v24, %v11313_v29  ;;  %11414 = vmatpush3.msra.mxu1 %v13316_v0  ;;  %v14936_v32 = vld [vmem:[#allocation71_spill] sm:$0xff]  ;;  %v14937_v26 = vld [vmem:[#allocation42_spill] sm:$0xff] }
 0x2b9   : > { %v2798_v3 = vpop.f32.mrf.mxu0  ;;  %11421 = vmatprep.subr.mxu1 %v13634_v30  ;;  %v3221_v42 = vmax.f32 %v2439_v13, 0.0  ;;  %v2449_v0 = vadd.f32 %v13168_v24, %v14936_v32 }
 0x2ba   : > { %v13649_v51 = vmax.f32 %v14935_v5, %v3436_v55  ;;  %v3435_v6 = vmax.f32 %v3219_v7, %v3291_v38  ;;  %v3294_v34 = vmax.f32 %v2804_v35, 0.0  ;;  %v2799_v54 = vadd.f32 %v13168_v24, %v2798_v3  ;;  %11410 = vmatprep.mubr.msk.f32.mxu1 %vm3564_vm2, %v13641_v60  ;;  %v14938_v35 = vld [vmem:[#allocation72_spill] sm:$0xff]  ;;  %v14939_v3 = vld [vmem:[#allocation43_spill] sm:$0xff] }
 0x2bb   : > { %v11316_v2 = vpop.f32.mrf.mxu0  ;;  %11411 = vmatmul.mubr.msk.f32.gmra.mxu1 %vm3564_vm2, %v13626_v52  ;;  %v3224_v38 = vmax.f32 %v2454_v45, 0.0  ;;  %v2464_v13 = vadd.f32 %v13168_v24, %v14938_v35  ;;  %v14941_v45 = vld [vmem:[#allocation44_spill] sm:$0xff] }
 0x2bc   : > { %v13659_v29 = vmax.f32 %v14937_v26, %v3435_v6  ;;  %v3438_v8 = vmax.f32 %v3222_v33, %v3294_v34  ;;  %v3293_v55 = vmax.f32 %v2799_v54, 0.0  ;;  %v2814_v7 = vadd.f32 %v13168_v24, %v11316_v2  ;;  %11415 = vmatprep.mubr.msk.f32.mxu1 %vm3564_vm2, %v13608_v62  ;;  %v14940_v34 = vld [vmem:[#allocation73_spill] sm:$0xff] }
 0x2bd   : > { %v2808_v12 = vpop.f32.mrf.mxu0  ;;  %v3223_v26 = vmax.f32 %v2449_v0, 0.0  ;;  %v2459_v33 = vadd.f32 %v13168_v24, %v14940_v34  ;;  %v14942_v0 = vld [vmem:[#allocation74_spill] sm:$0xff] }
 0x2be   : > { %v13667_v5 = vmax.f32 %v14939_v3, %v3438_v8  ;;  %v3437_v32 = vmax.f32 %v3221_v42, %v3293_v55  ;;  %v3296_v41 = vmax.f32 %v2814_v7, 0.0  ;;  %v2809_v6 = vadd.f32 %v13168_v24, %v2808_v12  ;;  %v14943_v12 = vld [vmem:[#allocation45_spill] sm:$0xff] }
 0x2bf   : > { %v11319_v54 = vpop.f32.mrf.mxu0  ;;  %11416 = vmatmul.mubr.msk.f32.vlgmr.msra.gmra.mxu1 %vm3564_vm2, %v13602_v48  ;;  %v3226_v42 = vmax.f32 %v2464_v13, 0.0  ;;  %v2474_v55 = vadd.f32 %v13168_v24, %v14942_v0  ;;  %v3225_v34 = vmax.f32 %v2459_v33, 0.0  ;;  %v14944_v13 = vld [vmem:[#allocation75_spill] sm:$0xff] }
 0x2c0   : > { %v13675_v2 = vmax.f32 %v14941_v45, %v3437_v32  ;;  %v3440_v35 = vmax.f32 %v3224_v38, %v3296_v41  ;;  %v3295_v61 = vmax.f32 %v2809_v6, 0.0  ;;  %v2824_v8 = vadd.f32 %v13168_v24, %v11319_v54  ;;  %11422 = vmatpush3.msra.mxu1 %v13634_v30  ;;  %11418 = vmatprep.mubr.msk.f32.mxu1 %vm3564_vm2, %v13620_v47  ;;  %v13690_v38 = vld [vmem:[%s14718_s2] ss:$0 sm:$0xff]  ;;  %v14945_v45 = vld [vmem:[#allocation46_spill] sm:$0xff] }
 0x2c1   : > { %v2818_v7 = vpop.f32.mrf.mxu0  ;;  %11429 = vmatprep.subr.mxu1 %v13634_v30  ;;  %v2469_v54 = vadd.f32 %v13690_v38, %v14944_v13  ;;  %v3228_v0 = vmax.f32 %v2474_v55, 0.0  ;;  %v14947_v13 = vld [vmem:[#allocation47_spill] sm:$0xff] }
 0x2c2   : > { %v13685_v3 = vmax.f32 %v14943_v12, %v3440_v35  ;;  %v3439_v32 = vmax.f32 %v3223_v26, %v3295_v61  ;;  %v3298_v41 = vmax.f32 %v2824_v8, 0.0  ;;  %v2819_v6 = vadd.f32 %v13690_v38, %v2818_v7  ;;  %v14946_v7 = vld [vmem:[#allocation76_spill] sm:$0xff] }
 0x2c3   : > { %v11322_v24 = vpop.f32.mrf.mxu0  ;;  %11419 = vmatmul.mubr.msk.f32.gmra.mxu1 %vm3564_vm2, %v13614_v50  ;;  %v2484_v33 = vadd.f32 %v13690_v38, %v14946_v7 }
 0x2c4   : > { %v13698_v35 = vmax.f32 %v14945_v45, %v3439_v32  ;;  %v3442_v61 = vmax.f32 %v3226_v42, %v3298_v41  ;;  %v3297_v26 = vmax.f32 %v2819_v6, 0.0  ;;  %v2834_v8 = vadd.f32 %v13690_v38, %v11322_v24  ;;  %11423 = vmatprep.mubr.msk.f32.mxu1 %vm3564_vm2, %v13542_v56  ;;  %v13712_v42 = vld [vmem:[%s14719_s3 + $0x18] sm:$0xff]  ;;  %v14948_v6 = vld [vmem:[#allocation77_spill] sm:$0xff] }
 0x2c5   : > { %v2828_v12 = vpop.f32.mrf.mxu0  ;;  %v3227_v41 = vmax.f32 %v2469_v54, 0.0  ;;  %v2479_v56 = vadd.f32 %v13690_v38, %v14948_v6  ;;  %v14949_v24 = vld [vmem:[#allocation48_spill] sm:$0xff]  ;;  %v3230_v54 = vmax.f32 %v2484_v33, 0.0  ;;  %v14952_v6 = vld [vmem:[#allocation79_spill] sm:$0xff]  ;;  %v14953_v33 = vld [vmem:[#allocation50_spill] sm:$0xff] }
 0x2c6   : > { %v13706_v15 = vmax.f32 %v14947_v13, %v3442_v61  ;;  %v3441_v43 = vmax.f32 %v3225_v34, %v3297_v26  ;;  %v3300_v59 = vmax.f32 %v2834_v8, 0.0  ;;  %v2829_v32 = vadd.f32 %v13690_v38, %v2828_v12  ;;  %v14950_v8 = vld [vmem:[#allocation78_spill] sm:$0xff] }
 0x2c7   : > { %v11325_v55 = vpop.f32.mrf.mxu0  ;;  %11424 = vmatmul.mubr.msk.f32.vlgmr.msra.gmra.mxu1 %vm3564_vm2, %v13533_v63  ;;  %v2494_v7 = vadd.f32 %v13690_v38, %v14950_v8  ;;  %v14951_v63 = vld [vmem:[#allocation49_spill] sm:$0xff] }
 0x2c8   : > { %v13719_v45 = vmax.f32 %v14949_v24, %v3441_v43  ;;  %v3444_v34 = vmax.f32 %v3228_v0, %v3300_v59  ;;  %v3299_v61 = vmax.f32 %v2829_v32, 0.0  ;;  %v2844_v26 = vadd.f32 %v13690_v38, %v11325_v55  ;;  %11430 = vmatpush3.msra.mxu1 %v13634_v30  ;;  %11426 = vmatprep.mubr.msk.f32.mxu1 %vm3564_vm2, %v13560_v10 }
 0x2c9   : > { %v2838_v12 = vpop.f32.mrf.mxu0  ;;  %11437 = vmatprep.subr.mxu1 %v13712_v42  ;;  %v3229_v32 = vmax.f32 %v2479_v56, 0.0  ;;  %v2489_v30 = vadd.f32 %v13690_v38, %v14952_v6 }
 0x2ca   : > { %v13729_v13 = vmax.f32 %v14951_v63, %v3444_v34  ;;  %v3443_v43 = vmax.f32 %v3227_v41, %v3299_v61  ;;  %v3302_v59 = vmax.f32 %v2844_v26, 0.0  ;;  %v2839_v0 = vadd.f32 %v13690_v38, %v2838_v12  ;;  %v14954_v61 = vld [vmem:[#allocation80_spill] sm:$0xff]  ;;  %v14955_v12 = vld [vmem:[#allocation51_spill] sm:$0xff] }
 0x2cb   : > { %v11328_v55 = vpop.f32.mrf.mxu0  ;;  %11427 = vmatmul.mubr.msk.f32.gmra.mxu1 %vm3564_vm2, %v13550_v9  ;;  %v3232_v41 = vmax.f32 %v2494_v7, 0.0  ;;  %v2504_v56 = vadd.f32 %v13690_v38, %v14954_v61  ;;  %v14957_v7 = vld [vmem:[#allocation52_spill] sm:$0xff] }
 0x2cc   : > { %v13737_v24 = vmax.f32 %v14953_v33, %v3443_v43  ;;  %v3446_v8 = vmax.f32 %v3230_v54, %v3302_v59  ;;  %v3301_v44 = vmax.f32 %v2839_v0, 0.0  ;;  %v2854_v34 = vadd.f32 %v13690_v38, %v11328_v55  ;;  %11431 = vmatprep.mubr.msk.f32.mxu1 %vm3564_vm2, %v13641_v60  ;;  %v14956_v54 = vld [vmem:[#allocation81_spill] sm:$0xff] }
 0x2cd   : > { %v2848_v26 = vpop.f32.mrf.mxu0  ;;  %v3231_v33 = vmax.f32 %v2489_v30, 0.0  ;;  %v2499_v59 = vadd.f32 %v13690_v38, %v14956_v54  ;;  %v14960_v54 = vld [vmem:[#allocation83_spill] sm:$0xff] }
 0x2ce   : > { %v13745_v63 = vmax.f32 %v14955_v12, %v3446_v8  ;;  %v3445_v6 = vmax.f32 %v3229_v32, %v3301_v44  ;;  %v3304_v18 = vmax.f32 %v2854_v34, 0.0  ;;  %v2849_v43 = vadd.f32 %v13690_v38, %v2848_v26  ;;  %v14958_v32 = vld [vmem:[#allocation82_spill] sm:$0xff]  ;;  %v14959_v26 = vld [vmem:[#allocation53_spill] sm:$0xff] }
 0x2cf   : > { %v11331_v0 = vpop.f32.mrf.mxu0  ;;  %11432 = vmatmul.mubr.msk.f32.vlgmr.msra.gmra.mxu1 %vm3564_vm2, %v13626_v52  ;;  %v3234_v44 = vmax.f32 %v2504_v56, 0.0  ;;  %v2514_v30 = vadd.f32 %v13690_v38, %v14958_v32  ;;  %v14961_v56 = vld [vmem:[#allocation54_spill] sm:$0xff] }
 0x2d0   : > { %v13753_v55 = vmax.f32 %v14957_v7, %v3445_v6  ;;  %v3448_v61 = vmax.f32 %v3232_v41, %v3304_v18  ;;  %v3303_v58 = vmax.f32 %v2849_v43, 0.0  ;;  %v2864_v8 = vadd.f32 %v13690_v38, %v11331_v0  ;;  %11438 = vmatpush3.msra.mxu1 %v13712_v42  ;;  %11434 = vmatprep.mubr.msk.f32.mxu1 %vm3564_vm2, %v13659_v29 }
 0x2d1   : > { %v2858_v34 = vpop.f32.mrf.mxu0  ;;  %11445 = vmatprep.subr.mxu1 %v13712_v42  ;;  %v3233_v43 = vmax.f32 %v2499_v59, 0.0  ;;  %v2509_v0 = vadd.f32 %v13690_v38, %v14960_v54 }
 0x2d2   : > { %v13763_v12 = vmax.f32 %v14959_v26, %v3448_v61  ;;  %v3447_v6 = vmax.f32 %v3231_v33, %v3303_v58  ;;  %v3306_v18 = vmax.f32 %v2864_v8, 0.0  ;;  %v2859_v41 = vadd.f32 %v13690_v38, %v2858_v34  ;;  %v14962_v33 = vld [vmem:[#allocation84_spill] sm:$0xff]  ;;  %v14963_v34 = vld [vmem:[#allocation55_spill] sm:$0xff] }
 0x2d3   : > { %v11334_v7 = vpop.f32.mrf.mxu0  ;;  %11435 = vmatmul.mubr.msk.f32.gmra.mxu1 %vm3564_vm2, %v13649_v51  ;;  %v3236_v58 = vmax.f32 %v2514_v30, 0.0  ;;  %v2524_v59 = vadd.f32 %v13690_v38, %v14962_v33 }
 0x2d4   : > { %v13771_v32 = vmax.f32 %v14961_v56, %v3447_v6  ;;  %v3450_v37 = vmax.f32 %v3234_v44, %v3306_v18  ;;  %v3305_v28 = vmax.f32 %v2859_v41, 0.0  ;;  %v2874_v61 = vadd.f32 %v13690_v38, %v11334_v7  ;;  %11439 = vmatprep.mubr.msk.f32.mxu1 %vm3564_vm2, %v13560_v10  ;;  %v13785_v44 = vld [vmem:[%s14719_s3 + $0x20] sm:$0xff] }
 0x2d5   : > { %v2868_v8 = vpop.f32.mrf.mxu0  ;;  %v3235_v18 = vmax.f32 %v2509_v0, 0.0  ;;  %v14964_v41 = vld [vmem:[#allocation85_spill] sm:$0xff]  ;;  %v14965_v7 = vld [vmem:[#allocation56_spill] sm:$0xff]  ;;  %v3238_v0 = vmax.f32 %v2524_v59, 0.0  ;;  %v14969_v59 = vld [vmem:[#allocation58_spill] sm:$0xff] }
 0x2d6   : > { %v13779_v26 = vmax.f32 %v14963_v34, %v3450_v37  ;;  %v3449_v54 = vmax.f32 %v3233_v43, %v3305_v28  ;;  %v3308_v53 = vmax.f32 %v2874_v61, 0.0  ;;  %v2869_v6 = vadd.f32 %v13690_v38, %v2868_v8  ;;  %v14966_v61 = vld [vmem:[#allocation86_spill] sm:$0xff] }
 0x2d7   : > { %v2519_v10 = vadd.f32 %v13690_v38, %v14964_v41  ;;  %v11337_v30 = vpop.f32.mrf.mxu0  ;;  %11440 = vmatmul.mubr.msk.f32.vlgmr.msra.gmra.mxu1 %vm3564_vm2, %v13550_v9  ;;  %v2534_v33 = vadd.f32 %v13690_v38, %v14966_v61  ;;  %v14967_v9 = vld [vmem:[#allocation57_spill] sm:$0xff]  ;;  %v14968_v41 = vld [vmem:[#allocation87_spill] sm:$0xff] }
 0x2d8   : > { %v13792_v37 = vmax.f32 %v14965_v7, %v3449_v54  ;;  %v3452_v28 = vmax.f32 %v3236_v58, %v3308_v53  ;;  %v3307_v43 = vmax.f32 %v2869_v6, 0.0  ;;  %v2884_v56 = vadd.f32 %v13690_v38, %v11337_v30  ;;  %11446 = vmatpush3.msra.mxu1 %v13712_v42  ;;  %11442 = vmatprep.mubr.msk.f32.mxu1 %vm3564_vm2, %v13577_v57 }
 0x2d9   : > { %v2878_v8 = vpop.f32.mrf.mxu0  ;;  %11453 = vmatprep.subr.mxu1 %v13785_v44  ;;  %v3237_v6 = vmax.f32 %v2519_v10, 0.0  ;;  %v2529_v42 = vadd.f32 %v13690_v38, %v14968_v41 }
 0x2da   : > { %v13802_v34 = vmax.f32 %v14967_v9, %v3452_v28  ;;  %v3451_v54 = vmax.f32 %v3235_v18, %v3307_v43  ;;  %v3310_v53 = vmax.f32 %v2884_v56, 0.0  ;;  %v2879_v58 = vadd.f32 %v13690_v38, %v2878_v8  ;;  %v14970_v43 = vld [vmem:[#allocation88_spill] sm:$0xff]  ;;  %v14971_v8 = vld [vmem:[#allocation59_spill] sm:$0xff] }
 0x2db   : > { %v11340_v30 = vpop.f32.mrf.mxu0  ;;  %11443 = vmatmul.mubr.msk.f32.gmra.mxu1 %vm3564_vm2, %v13567_v23  ;;  %v3240_v18 = vmax.f32 %v2534_v33, 0.0  ;;  %v2544_v10 = vadd.f32 %v13690_v38, %v14970_v43  ;;  %v14973_v33 = vld [vmem:[#allocation60_spill] sm:$0xff] }
 0x2dc   : > { %v13810_v7 = vmax.f32 %v14969_v59, %v3451_v54  ;;  %v3454_v61 = vmax.f32 %v3238_v0, %v3310_v53  ;;  %v3309_v27 = vmax.f32 %v2879_v58, 0.0  ;;  %v2894_v28 = vadd.f32 %v13690_v38, %v11340_v30  ;;  %11447 = vmatprep.mubr.msk.f32.mxu1 %vm3564_vm2, %v13659_v29  ;;  %v14972_v0 = vld [vmem:[#allocation89_spill] sm:$0xff] }
 0x2dd   : > { %v2888_v56 = vpop.f32.mrf.mxu0  ;;  %v3239_v59 = vmax.f32 %v2529_v42, 0.0  ;;  %v2539_v53 = vadd.f32 %v13690_v38, %v14972_v0  ;;  %v14976_v0 = vld [vmem:[#allocation91_spill] sm:$0xff] }
 0x2de   : > { %v13818_v9 = vmax.f32 %v14971_v8, %v3454_v61  ;;  %v3453_v41 = vmax.f32 %v3237_v6, %v3309_v27  ;;  %v3312_v4 = vmax.f32 %v2894_v28, 0.0  ;;  %v2889_v54 = vadd.f32 %v13690_v38, %v2888_v56  ;;  %v14974_v6 = vld [vmem:[#allocation90_spill] sm:$0xff]  ;;  %v14975_v56 = vld [vmem:[#allocation61_spill] sm:$0xff] }
 0x2df   : > { %v11343_v58 = vpop.f32.mrf.mxu0  ;;  %11448 = vmatmul.mubr.msk.f32.vlgmr.msra.gmra.mxu1 %vm3564_vm2, %v13649_v51  ;;  %v3242_v27 = vmax.f32 %v2544_v10, 0.0  ;;  %v2554_v42 = vadd.f32 %v13690_v38, %v14974_v6  ;;  %v14977_v10 = vld [vmem:[#allocation62_spill] sm:$0xff] }
 0x2e0   : > { %v13826_v30 = vmax.f32 %v14973_v33, %v3453_v41  ;;  %v3456_v43 = vmax.f32 %v3240_v18, %v3312_v4  ;;  %v3311_v31 = vmax.f32 %v2889_v54, 0.0  ;;  %v2904_v61 = vadd.f32 %v13690_v38, %v11343_v58  ;;  %11454 = vmatpush3.msra.mxu1 %v13785_v44  ;;  %11450 = vmatprep.mubr.msk.f32.mxu1 %vm3564_vm2, %v13675_v2 }
 0x2e1   : > { %v2898_v28 = vpop.f32.mrf.mxu0  ;;  %11461 = vmatprep.subr.mxu1 %v13785_v44  ;;  %v3241_v54 = vmax.f32 %v2539_v53, 0.0  ;;  %v2549_v58 = vadd.f32 %v13690_v38, %v14976_v0 }
 0x2e2   : > { %v13836_v8 = vmax.f32 %v14975_v56, %v3456_v43  ;;  %v3455_v41 = vmax.f32 %v3239_v59, %v3311_v31  ;;  %v3314_v4 = vmax.f32 %v2904_v61, 0.0  ;;  %v2899_v18 = vadd.f32 %v13690_v38, %v2898_v28  ;;  %v14978_v59 = vld [vmem:[#allocation92_spill] sm:$0xff]  ;;  %v14979_v28 = vld [vmem:[#allocation63_spill] sm:$0xff] }
 0x2e3   : > { %v11346_v33 = vpop.f32.mrf.mxu0  ;;  %11451 = vmatmul.mubr.msk.f32.gmra.mxu1 %vm3564_vm2, %v13667_v5  ;;  %v3244_v31 = vmax.f32 %v2554_v42, 0.0  ;;  %v2564_v53 = vadd.f32 %v13690_v38, %v14978_v59  ;;  %v14983_v59 = vld [vmem:[#allocation94_spill] sm:$0xff] }
 0x2e4   : > { %v13844_v6 = vmax.f32 %v14977_v10, %v3455_v41  ;;  %v3458_v20 = vmax.f32 %v3242_v27, %v3314_v4  ;;  %v3313_v19 = vmax.f32 %v2899_v18, 0.0  ;;  %v2914_v43 = vadd.f32 %v13690_v38, %v11346_v33  ;;  %11455 = vmatprep.mubr.msk.f32.mxu1 %vm3564_vm2, %v13577_v57  ;;  %v13858_v27 = vld [vmem:[%s14719_s3 + $0x28] sm:$0xff]  ;;  %v14981_v33 = vld [vmem:[#allocation64_spill] sm:$0xff] }
 0x2e5   : > { %v2908_v61 = vpop.f32.mrf.mxu0  ;;  %v3243_v4 = vmax.f32 %v2549_v58, 0.0  ;;  %v14980_v18 = vld [vmem:[#allocation93_spill] sm:$0xff]  ;;  %v3246_v58 = vmax.f32 %v2564_v53, 0.0  ;;  %v14986_v53 = vmax.f32 %v14919_v22, %v13579_v16 }
 0x2e6   : > { %v13852_v56 = vmax.f32 %v14979_v28, %v3458_v20  ;;  %v3457_v0 = vmax.f32 %v3241_v54, %v3313_v19  ;;  %v3316_v1 = vmax.f32 %v2914_v43, 0.0  ;;  %v2909_v41 = vadd.f32 %v13690_v38, %v2908_v61 }
 0x2e7   : > { %v2559_v57 = vadd.f32 %v13690_v38, %v14980_v18  ;;  %v11349_v42 = vpop.f32.mrf.mxu0  ;;  %11456 = vmatmul.mubr.msk.f32.vlgmr.msra.gmra.mxu1 %vm3564_vm2, %v13567_v23  ;;  %v14982_v43 = vmax.f32 %v14921_v17, %v13589_v40  ;;  %v2574_v61 = vadd.f32 %v13690_v38, %v14983_v59  ;;  %v14984_v23 = vld [vmem:[#allocation65_spill] sm:$0xff]  ;;  %v14985_v18 = vld [vmem:[#allocation95_spill] sm:$0xff] }
 0x2e8   : > { %v13865_v20 = vmax.f32 %v14981_v33, %v3457_v0  ;;  %v3460_v19 = vmax.f32 %v3244_v31, %v3316_v1  ;;  %v3315_v54 = vmax.f32 %v2909_v41, 0.0  ;;  %v2924_v10 = vadd.f32 %v13690_v38, %v11349_v42  ;;  %11462 = vmatpush3.msra.mxu1 %v13785_v44  ;;  %v14987_v42 = vld [vmem:[#allocation66_spill] sm:$0xff] }
 0x2e9   : > { %11458 = vmatprep.mubr.msk.f32.mxu1 %vm3564_vm2, %v14982_v43  ;;  %v2918_v28 = vpop.f32.mrf.mxu0  ;;  %11469 = vmatprep.subr.mxu1 %v13858_v27  ;;  %v3245_v44 = vmax.f32 %v2559_v57, 0.0  ;;  %v2569_v40 = vadd.f32 %v13690_v38, %v14985_v18  ;;  %v3248_v57 = vmax.f32 %v2574_v61, 0.0  ;;  %v14991_v61 = vld [vmem:[#allocation5_spill] sm:$0xff] }
 0x2ea   : > { %v13877_v0 = vmax.f32 %v14984_v23, %v3460_v19  ;;  %v3459_v1 = vmax.f32 %v3243_v4, %v3315_v54  ;;  %v3318_v31 = vmax.f32 %v2924_v10, 0.0  ;;  %v2919_v41 = vadd.f32 %v13690_v38, %v2918_v28  ;;  %v14988_v54 = vld [vmem:[#allocation96_spill] sm:$0xff]  ;;  %v14989_v28 = vld [vmem:[#allocation67_spill] sm:$0xff] }
 0x2eb   : > { %v11352_v17 = vpop.f32.mrf.mxu0  ;;  %11459 = vmatmul.mubr.msk.f32.gmra.mxu1 %vm3564_vm2, %v14986_v53  ;;  %v2584_v10 = vadd.f32 %v13690_v38, %v14988_v54  ;;  %v3247_v18 = vmax.f32 %v2569_v40, 0.0  ;;  %v14992_v40 = vld [vmem:[#allocation98_spill] sm:$0xff] }
 0x2ec   : > { %v13887_v33 = vmax.f32 %v14987_v42, %v3459_v1  ;;  %v3462_v43 = vmax.f32 %v3246_v58, %v3318_v31  ;;  %v3317_v19 = vmax.f32 %v2919_v41, 0.0  ;;  %v2934_v4 = vadd.f32 %v13690_v38, %v11352_v17  ;;  %11463 = vmatprep.mubr.msk.f32.mxu1 %vm3564_vm2, %v13675_v2  ;;  %v14990_v58 = vld [vmem:[#allocation97_spill] sm:$0xff]  ;;  %v14993_v54 = vld [vmem:[#allocation6_spill] sm:$0xff] }
 0x2ed   : > { %v2928_v59 = vpop.f32.mrf.mxu0  ;;  %v2579_v31 = vadd.f32 %v13690_v38, %v14990_v58 }
 0x2ee   : > { %v13895_v23 = vmax.f32 %v14989_v28, %v3462_v43  ;;  %v3461_v16 = vmax.f32 %v3245_v44, %v3317_v19  ;;  %v3320_v22 = vmax.f32 %v2934_v4, 0.0  ;;  %v2929_v1 = vadd.f32 %v13690_v38, %v2928_v59 }
 0x2ef   : > { %v11355_v41 = vpop.f32.mrf.mxu0  ;;  %11464 = vmatmul.mubr.msk.f32.vlgmr.msra.gmra.mxu1 %vm3564_vm2, %v13667_v5  ;;  %v3250_v44 = vmax.f32 %v2584_v10, 0.0  ;;  %v2594_v19 = vadd.f32 %v13690_v38, %v14992_v40  ;;  %v14995_v10 = vld [vmem:[#allocation7_spill] sm:$0xff] }
 0x2f0   : > { %v13903_v17 = vmax.f32 %v14991_v61, %v3461_v16  ;;  %v3464_v53 = vmax.f32 %v3248_v57, %v3320_v22  ;;  %v3319_v42 = vmax.f32 %v2929_v1, 0.0  ;;  %v2944_v43 = vadd.f32 %v13690_v38, %v11355_v41  ;;  %11470 = vmatpush3.msra.mxu1 %v13858_v27  ;;  %11466 = vmatprep.mubr.msk.f32.mxu1 %vm3564_vm2, %v13698_v35  ;;  %v14994_v1 = vld [vmem:[#allocation99_spill] sm:$0xff] }
 0x2f1   : > { %v2938_v4 = vpop.f32.mrf.mxu0  ;;  %11477 = vmatprep.subr.mxu1 %v13858_v27  ;;  %v3249_v22 = vmax.f32 %v2579_v31, 0.0  ;;  %v2589_v58 = vadd.f32 %v13690_v38, %v14994_v1 }
 0x2f2   : > { %v13913_v59 = vmax.f32 %v14993_v54, %v3464_v53  ;;  %v3463_v28 = vmax.f32 %v3247_v18, %v3319_v42  ;;  %v3322_v57 = vmax.f32 %v2944_v43, 0.0  ;;  %v2939_v16 = vadd.f32 %v13690_v38, %v2938_v4  ;;  %v14996_v42 = vld [vmem:[#allocation100_spill] sm:$0xff] }
 0x2f3   : > { %v11358_v41 = vpop.f32.mrf.mxu0  ;;  %11467 = vmatmul.mubr.msk.f32.gmra.mxu1 %vm3564_vm2, %v13685_v3  ;;  %v3252_v18 = vmax.f32 %v2594_v19, 0.0  ;;  %v2604_v31 = vadd.f32 %v13690_v38, %v14996_v42  ;;  %v14997_v4 = vld [vmem:[#allocation8_spill] sm:$0xff] }
 0x2f4   : > { %v13921_v61 = vmax.f32 %v14995_v10, %v3463_v28  ;;  %v3466_v40 = vmax.f32 %v3250_v44, %v3322_v57  ;;  %v3321_v14 = vmax.f32 %v2939_v16, 0.0  ;;  %v2954_v53 = vadd.f32 %v13690_v38, %v11358_v41  ;;  %11471 = vmatprep.mubr.msk.f32.mxu1 %vm3564_vm2, %v13608_v62  ;;  %v10111_v44 = vld [vmem:[%s14719_s3 + $0x30] sm:$0xff]  ;;  %v14998_v16 = vld [vmem:[#allocation101_spill] sm:$0xff] }
 0x2f5   : > { %v2948_v43 = vpop.f32.mrf.mxu0  ;;  %v3251_v57 = vmax.f32 %v2589_v58, 0.0  ;;  %v2599_v62 = vadd.f32 %v13690_v38, %v14998_v16  ;;  %v14999_v41 = vld [vmem:[#allocation9_spill] sm:$0xff]  ;;  %v3254_v58 = vmax.f32 %v2604_v31, 0.0  ;;  %v15003_v31 = vld [vmem:[#allocation11_spill] sm:$0xff] }
 0x2f6   : > { %v13929_v54 = vmax.f32 %v14997_v4, %v3466_v40  ;;  %v3465_v1 = vmax.f32 %v3249_v22, %v3321_v14  ;;  %v3324_v11 = vmax.f32 %v2954_v53, 0.0  ;;  %v2949_v28 = vadd.f32 %v13690_v38, %v2948_v43  ;;  %v15000_v53 = vld [vmem:[#allocation102_spill] sm:$0xff] }
 0x2f7   : > { %v11361_v19 = vpop.f32.mrf.mxu0  ;;  %11472 = vmatmul.mubr.msk.f32.vlgmr.msra.gmra.mxu1 %vm3564_vm2, %v13602_v48  ;;  %v2614_v42 = vadd.f32 %v13690_v38, %v15000_v53  ;;  %v15001_v4 = vld [vmem:[#allocation10_spill] sm:$0xff] }
 0x2f8   : > { %v13940_v10 = vmax.f32 %v14999_v41, %v3465_v1  ;;  %v3468_v40 = vmax.f32 %v3252_v18, %v3324_v11  ;;  %v3323_v14 = vmax.f32 %v2949_v28, 0.0  ;;  %v2964_v22 = vadd.f32 %v13690_v38, %v11361_v19  ;;  %11478 = vmatpush3.msra.mxu1 %v13858_v27  ;;  %11474 = vmatprep.mubr.msk.f32.mxu1 %vm3564_vm2, %v13620_v47  ;;  %v15002_v28 = vld [vmem:[#allocation103_spill] sm:$0xff] }
 0x2f9   : > { %v2958_v43 = vpop.f32.mrf.mxu0  ;;  %11485 = vmatprep.subr.mxu1 %v10111_v44  ;;  %v3253_v18 = vmax.f32 %v2599_v62, 0.0  ;;  %v2609_v27 = vadd.f32 %v13690_v38, %v15002_v28  ;;  %v15004_v62 = vld [vmem:[#allocation12_spill] sm:$0xff] }
 0x2fa   : > { %v13949_v48 = vmax.f32 %v15001_v4, %v3468_v40  ;;  %v3467_v1 = vmax.f32 %v3251_v57, %v3323_v14  ;;  %v3326_v16 = vmax.f32 %v2964_v22, 0.0  ;;  %v2959_v11 = vadd.f32 %v13690_v38, %v2958_v43 }
 0x2fb   : > { %v11364_v19 = vpop.f32.mrf.mxu0  ;;  %11475 = vmatmul.mubr.msk.f32.gmra.mxu1 %vm3564_vm2, %v13614_v50  ;;  %v3256_v57 = vmax.f32 %v2614_v42, 0.0  ;;  %v15006_v42 = vld [vmem:[#allocation14_spill] sm:$0xff] }
 0x2fc   : > { %v13957_v41 = vmax.f32 %v15003_v31, %v3467_v1  ;;  %v3470_v53 = vmax.f32 %v3254_v58, %v3326_v16  ;;  %v3325_v21 = vmax.f32 %v2959_v11, 0.0  ;;  %v2974_v40 = vadd.f32 %v13690_v38, %v11364_v19  ;;  %11479 = vmatprep.mubr.msk.f32.mxu1 %vm3564_vm2, %v13719_v45  ;;  %v15005_v58 = vld [vmem:[#allocation13_spill] sm:$0xff] }
 0x2fd   : > { %v2968_v14 = vpop.f32.mrf.mxu0  ;;  %v3255_v1 = vmax.f32 %v2609_v27, 0.0  ;;  %v10120_v27 = vld [vmem:[%s14719_s3 + $0x38] sm:$0xff] }
 0x2fe   : > { %v13963_v22 = vmax.f32 %v15004_v62, %v3470_v53  ;;  %v3469_v43 = vmax.f32 %v3253_v18, %v3325_v21  ;;  %v3328_v4 = vmax.f32 %v2974_v40, 0.0  ;;  %v2969_v28 = vadd.f32 %v13690_v38, %v2968_v14  ;;  %v15007_v38 = vld [vmem:[#allocation15_spill] sm:$0xff] }
 0x2ff   : > { %11480 = vmatmul.mubr.msk.f32.vlgmr.msra.gmra.mxu1 %vm3564_vm2, %v13706_v15 }
 0x300   : > { %v13969_v16 = vmax.f32 %v15005_v58, %v3469_v43  ;;  %v3472_v11 = vmax.f32 %v3256_v57, %v3328_v4  ;;  %v3327_v19 = vmax.f32 %v2969_v28, 0.0  ;;  %11486 = vmatpush3.msra.mxu1 %v10111_v44  ;;  %11482 = vmatprep.mubr.msk.f32.mxu1 %vm3564_vm2, %v13737_v24 }
 0x301   : > { %11493 = vmatprep.subr.mxu1 %v10111_v44 }
 0x302   : > { %v13974_v31 = vmax.f32 %v15006_v42, %v3472_v11  ;;  %v3471_v21 = vmax.f32 %v3255_v1, %v3327_v19  ;;  %v10192_v42 = vld [vmem:[%s14719_s3 + $0x78] sm:$0xff] }
 0x303   : > { %11483 = vmatmul.mubr.msk.f32.gmra.mxu1 %vm3564_vm2, %v13729_v13 }
 0x304   : > { %v13979_v18 = vmax.f32 %v15007_v38, %v3471_v21  ;;  %11487 = vmatprep.mubr.msk.f32.mxu1 %vm3564_vm2, %v13620_v47  ;;  %v10138_v47 = vld [vmem:[%s14719_s3 + $0x48] sm:$0xff] }
 0x307   : > { %11488 = vmatmul.mubr.msk.f32.vlgmr.msra.gmra.mxu1 %vm3564_vm2, %v13614_v50  ;;  %v10129_v50 = vld [vmem:[%s14719_s3 + $0x40] sm:$0xff] }
 0x308   : > { %11494 = vmatpush3.msra.mxu1 %v10111_v44  ;;  %11490 = vmatprep.mubr.msk.f32.mxu1 %vm3564_vm2, %v13641_v60 }
 0x309   : > { %11501 = vmatprep.subr.mxu1 %v10120_v27 }
 0x30b   : > { %11491 = vmatmul.mubr.msk.f32.gmra.mxu1 %vm3564_vm2, %v13626_v52 }
 0x30c   : > { %11495 = vmatprep.mubr.msk.f32.mxu1 %vm3564_vm2, %v13737_v24 }
 0x30f   : > { %11496 = vmatmul.mubr.msk.f32.vlgmr.msra.gmra.mxu1 %vm3564_vm2, %v13729_v13 }
 0x310   : > { %11502 = vmatpush3.msra.mxu1 %v10120_v27  ;;  %11498 = vmatprep.mubr.msk.f32.mxu1 %vm3564_vm2, %v13753_v55 }
 0x311   : > { %11509 = vmatprep.subr.mxu1 %v10120_v27 }
 0x313   : > { %11499 = vmatmul.mubr.msk.f32.gmra.mxu1 %vm3564_vm2, %v13745_v63 }
 0x314   : > { %11503 = vmatprep.mubr.msk.f32.mxu1 %vm3564_vm2, %v13641_v60  ;;  %v10156_v60 = vld [vmem:[%s14719_s3 + $0x58] sm:$0xff] }
 0x317   : > { %11504 = vmatmul.mubr.msk.f32.vlgmr.msra.gmra.mxu1 %vm3564_vm2, %v13626_v52  ;;  %v10147_v52 = vld [vmem:[%s14719_s3 + $0x50] sm:$0xff] }
 0x318   : > { %11510 = vmatpush3.msra.mxu1 %v10120_v27  ;;  %11506 = vmatprep.mubr.msk.f32.mxu1 %vm3564_vm2, %v13659_v29 }
 0x319   : > { %11517 = vmatprep.subr.mxu1 %v10129_v50 }
 0x31b   : > { %11507 = vmatmul.mubr.msk.f32.gmra.mxu1 %vm3564_vm2, %v13649_v51 }
 0x31c   : > { %11511 = vmatprep.mubr.msk.f32.mxu1 %vm3564_vm2, %v13753_v55 }
 0x31f   : > { %11512 = vmatmul.mubr.msk.f32.vlgmr.msra.gmra.mxu1 %vm3564_vm2, %v13745_v63 }
 0x320   : > { %11518 = vmatpush3.msra.mxu1 %v10129_v50  ;;  %11514 = vmatprep.mubr.msk.f32.mxu1 %vm3564_vm2, %v13771_v32 }
 0x321   : > { %11525 = vmatprep.subr.mxu1 %v10129_v50 }
 0x323   : > { %11515 = vmatmul.mubr.msk.f32.gmra.mxu1 %vm3564_vm2, %v13763_v12 }
 0x324   : > { %11519 = vmatprep.mubr.msk.f32.mxu1 %vm3564_vm2, %v13659_v29 }
 0x327   : > { %11520 = vmatmul.mubr.msk.f32.vlgmr.msra.gmra.mxu1 %vm3564_vm2, %v13649_v51 }
 0x328   : > { %11526 = vmatpush3.msra.mxu1 %v10129_v50  ;;  %11522 = vmatprep.mubr.msk.f32.mxu1 %vm3564_vm2, %v13675_v2 }
 0x329   : > { %11533 = vmatprep.subr.mxu1 %v10138_v47 }
 0x32b   : > { %11523 = vmatmul.mubr.msk.f32.gmra.mxu1 %vm3564_vm2, %v13667_v5 }
 0x32c   : > { %11527 = vmatprep.mubr.msk.f32.mxu1 %vm3564_vm2, %v13771_v32 }
 0x32f   : > { %11528 = vmatmul.mubr.msk.f32.vlgmr.msra.gmra.mxu1 %vm3564_vm2, %v13763_v12 }
 0x330   : > { %11534 = vmatpush3.msra.mxu1 %v10138_v47  ;;  %11530 = vmatprep.mubr.msk.f32.mxu1 %vm3564_vm2, %v13792_v37 }
 0x331   : > { %11541 = vmatprep.subr.mxu1 %v10138_v47 }
 0x333   : > { %11531 = vmatmul.mubr.msk.f32.gmra.mxu1 %vm3564_vm2, %v13779_v26 }
 0x334   : > { %11535 = vmatprep.mubr.msk.f32.mxu1 %vm3564_vm2, %v13675_v2 }
 0x337   : > { %11536 = vmatmul.mubr.msk.f32.vlgmr.msra.gmra.mxu1 %vm3564_vm2, %v13667_v5 }
 0x338   : > { %11542 = vmatpush3.msra.mxu1 %v10138_v47  ;;  %11538 = vmatprep.mubr.msk.f32.mxu1 %vm3564_vm2, %v13698_v35 }
 0x339   : > { %11549 = vmatprep.subr.mxu1 %v10147_v52 }
 0x33b   : > { %11539 = vmatmul.mubr.msk.f32.gmra.mxu1 %vm3564_vm2, %v13685_v3  ;;  %v10174_v3 = vld [vmem:[%s14719_s3 + $0x68] sm:$0xff] }
 0x33c   : > { %11543 = vmatprep.mubr.msk.f32.mxu1 %vm3564_vm2, %v13792_v37 }
 0x33f   : > { %11544 = vmatmul.mubr.msk.f32.vlgmr.msra.gmra.mxu1 %vm3564_vm2, %v13779_v26 }
 0x340   : > { %11550 = vmatpush3.msra.mxu1 %v10147_v52  ;;  %11546 = vmatprep.mubr.msk.f32.mxu1 %vm3564_vm2, %v13810_v7 }
 0x341   : > { %11557 = vmatprep.subr.mxu1 %v10147_v52 }
 0x343   : > { %11547 = vmatmul.mubr.msk.f32.gmra.mxu1 %vm3564_vm2, %v13802_v34 }
 0x344   : > { %11551 = vmatprep.mubr.msk.f32.mxu1 %vm3564_vm2, %v13719_v45 }
 0x347   : > { %11552 = vmatmul.mubr.msk.f32.vlgmr.msra.gmra.mxu1 %vm3564_vm2, %v13706_v15  ;;  %v10165_v15 = vld [vmem:[%s14719_s3 + $0x60] sm:$0xff] }
 0x348   : > { %11558 = vmatpush3.msra.mxu1 %v10147_v52  ;;  %11554 = vmatprep.mubr.msk.f32.mxu1 %vm3564_vm2, %v13737_v24 }
 0x349   : > { %11565 = vmatprep.subr.mxu1 %v10156_v60 }
 0x34b   : > { %11555 = vmatmul.mubr.msk.f32.gmra.mxu1 %vm3564_vm2, %v13729_v13 }
 0x34c   : > { %11559 = vmatprep.mubr.msk.f32.mxu1 %vm3564_vm2, %v13826_v30 }
 0x34f   : > { %11560 = vmatmul.mubr.msk.f32.vlgmr.msra.gmra.mxu1 %vm3564_vm2, %v13818_v9 }
 0x350   : > { %11566 = vmatpush3.msra.mxu1 %v10156_v60  ;;  %11562 = vmatprep.mubr.msk.f32.mxu1 %vm3564_vm2, %v13844_v6 }
 0x351   : > { %11573 = vmatprep.subr.mxu1 %v10156_v60 }
 0x353   : > { %11563 = vmatmul.mubr.msk.f32.gmra.mxu1 %vm3564_vm2, %v13836_v8 }
 0x354   : > { %11567 = vmatprep.mubr.msk.f32.mxu1 %vm3564_vm2, %v13737_v24 }
 0x357   : > { %11568 = vmatmul.mubr.msk.f32.vlgmr.msra.gmra.mxu1 %vm3564_vm2, %v13729_v13 }
 0x358   : > { %11574 = vmatpush3.msra.mxu1 %v10156_v60  ;;  %11570 = vmatprep.mubr.msk.f32.mxu1 %vm3564_vm2, %v13753_v55 }
 0x359   : > { %11581 = vmatprep.subr.mxu1 %v10165_v15 }
 0x35b   : > { %11571 = vmatmul.mubr.msk.f32.gmra.mxu1 %vm3564_vm2, %v13745_v63 }
 0x35c   : > { %11575 = vmatprep.mubr.msk.f32.mxu1 %vm3564_vm2, %v13844_v6 }
 0x35f   : > { %v11393_v51 = vpop.f32.mrf.mxu1  ;;  %11576 = vmatmul.mubr.msk.f32.vlgmr.msra.gmra.mxu1 %vm3564_vm2, %v13836_v8 }
 0x360   : > { %11582 = vmatpush3.msra.mxu1 %v10165_v15  ;;  %11578 = vmatprep.mubr.msk.f32.mxu1 %vm3564_vm2, %v13865_v20 }
 0x361   : > { %v3643_v29 = vpop.f32.mrf.mxu1  ;;  %11589 = vmatprep.subr.mxu1 %v10165_v15 }
 0x363   : > { %v11396_v5 = vpop.f32.mrf.mxu1  ;;  %11579 = vmatmul.mubr.msk.f32.gmra.mxu1 %vm3564_vm2, %v13852_v56 }
 0x364   : > { %11583 = vmatprep.mubr.msk.f32.mxu1 %vm3564_vm2, %v13753_v55 }
 0x365   : > { %v3653_v2 = vpop.f32.mrf.mxu1 }
 0x367   : > { %v11401_v35 = vpop.f32.mrf.mxu1  ;;  %11584 = vmatmul.mubr.msk.f32.vlgmr.msra.gmra.mxu1 %vm3564_vm2, %v13745_v63  ;;  %v10183_v63 = vld [vmem:[%s14719_s3 + $0x70] sm:$0xff] }
 0x368   : > { %v3740_v45 = vadd.f32 %v11401_v35, %v11393_v51  ;;  %11590 = vmatpush3.msra.mxu1 %v10165_v15  ;;  %11586 = vmatprep.mubr.msk.f32.mxu1 %vm3564_vm2, %v13771_v32 }
 0x369   : > { %v3734_v13 = vpop.f32.mrf.mxu1  ;;  %11597 = vmatprep.subr.mxu1 %v10174_v3 }
 0x36a   : > { %v3735_v24 = vadd.f32 %v3734_v13, %v3643_v29 }
 0x36b   : > { %v11404_v44 = vpop.f32.mrf.mxu1  ;;  %11587 = vmatmul.mubr.msk.f32.gmra.mxu1 %vm3564_vm2, %v13763_v12 }
 0x36c   : > { %v3750_v55 = vadd.f32 %v11404_v44, %v11396_v5  ;;  %11591 = vmatprep.mubr.msk.f32.mxu1 %vm3564_vm2, %v13865_v20 }
 0x36d   : > { %v3744_v53 = vpop.f32.mrf.mxu1 }
 0x36e   : > { %v3745_v40 = vadd.f32 %v3744_v53, %v3653_v2 }
 0x36f   : > { %11592 = vmatmul.mubr.msk.f32.vlgmr.msra.gmra.mxu1 %vm3564_vm2, %v13852_v56 }
 0x370   : > { %11598 = vmatpush3.msra.mxu1 %v10174_v3  ;;  %11594 = vmatprep.mubr.msk.f32.mxu1 %vm3564_vm2, %v13887_v33 }
 0x371   : > { %11605 = vmatprep.subr.mxu1 %v10174_v3 }
 0x373   : > { %11595 = vmatmul.mubr.msk.f32.gmra.mxu1 %vm3564_vm2, %v13877_v0 }
 0x374   : > { %11599 = vmatprep.mubr.msk.f32.mxu1 %vm3564_vm2, %v13771_v32 }
 0x377   : > { %v11409_v57 = vpop.f32.mrf.mxu1  ;;  %11600 = vmatmul.mubr.msk.f32.vlgmr.msra.gmra.mxu1 %vm3564_vm2, %v13763_v12 }
 0x378   : > { %11606 = vmatpush3.msra.mxu1 %v10174_v3  ;;  %11602 = vmatprep.mubr.msk.f32.mxu1 %vm3564_vm2, %v13792_v37  ;;  %v10201_v3 = vld [vmem:[%s14719_s3 + $0x80] sm:$0xff] }
 0x379   : > { %v3831_v14 = vpop.f32.mrf.mxu1  ;;  %11613 = vmatprep.subr.mxu1 %v10183_v63 }
 0x37b   : > { %v11412_v62 = vpop.f32.mrf.mxu1  ;;  %11603 = vmatmul.mubr.msk.f32.gmra.mxu1 %vm3564_vm2, %v13779_v26 }
 0x37c   : > { %11607 = vmatprep.mubr.msk.f32.mxu1 %vm3564_vm2, %v13887_v33 }
 0x37d   : > { %v3841_v32 = vpop.f32.mrf.mxu1 }
 0x37f   : > { %v11417_v43 = vpop.f32.mrf.mxu1  ;;  %11608 = vmatmul.mubr.msk.f32.vlgmr.msra.gmra.mxu1 %vm3564_vm2, %v13877_v0 }
 0x380   : > { %v3928_v4 = vadd.f32 %v11417_v43, %v11409_v57  ;;  %11614 = vmatpush3.msra.mxu1 %v10183_v63  ;;  %11610 = vmatprep.mubr.msk.f32.mxu1 %vm3564_vm2, %v13903_v17 }
 0x381   : > { %v3922_v12 = vpop.f32.mrf.mxu1  ;;  %11621 = vmatprep.subr.mxu1 %v10183_v63 }
 0x382   : > { %v3923_v28 = vadd.f32 %v3922_v12, %v3831_v14 }
 0x383   : > { %v11420_v1 = vpop.f32.mrf.mxu1  ;;  %11611 = vmatmul.mubr.msk.f32.gmra.mxu1 %vm3564_vm2, %v13895_v23 }
 0x384   : > { %v3938_v58 = vadd.f32 %v11420_v1, %v11412_v62  ;;  %11615 = vmatprep.mubr.msk.f32.mxu1 %vm3564_vm2, %v13792_v37 }
 0x385   : > { %v3932_v11 = vpop.f32.mrf.mxu1 }
 0x386   : > { %v3933_v19 = vadd.f32 %v3932_v11, %v3841_v32 }
 0x387   : > { %v11425_v21 = vpop.f32.mrf.mxu1  ;;  %11616 = vmatmul.mubr.msk.f32.vlgmr.msra.gmra.mxu1 %vm3564_vm2, %v13779_v26 }
 0x388   : > { %v4035_v38 = vadd.f32 %v11425_v21, %v3740_v45  ;;  %11622 = vmatpush3.msra.mxu1 %v10183_v63  ;;  %11618 = vmatprep.mubr.msk.f32.mxu1 %vm3564_vm2, %v13810_v7 }
 0x389   : > { %v4015_v27 = vpop.f32.mrf.mxu1  ;;  %11629 = vmatprep.subr.mxu1 %v10192_v42 }
 0x38a   : > { %v4034_v50 = vadd.f32 %v4015_v27, %v3735_v24 }
 0x38b   : > { %v11428_v47 = vpop.f32.mrf.mxu1  ;;  %11619 = vmatmul.mubr.msk.f32.gmra.mxu1 %vm3564_vm2, %v13802_v34 }
 0x38c   : > { %v4037_v37 = vadd.f32 %v11428_v47, %v3750_v55  ;;  %11623 = vmatprep.mubr.msk.f32.mxu1 %vm3564_vm2, %v13903_v17 }
 0x38d   : > { %v4025_v52 = vpop.f32.mrf.mxu1 }
 0x38e   : > { %v4036_v60 = vadd.f32 %v4025_v52, %v3745_v40 }
 0x38f   : > { %v11433_v15 = vpop.f32.mrf.mxu1  ;;  %11624 = vmatmul.mubr.msk.f32.vlgmr.msra.gmra.mxu1 %vm3564_vm2, %v13895_v23 }
 0x390   : > { %v4130_v26 = vadd.f32 %v11433_v15, %v3928_v4  ;;  %11630 = vmatpush3.msra.mxu1 %v10192_v42  ;;  %11626 = vmatprep.mubr.msk.f32.mxu1 %vm3564_vm2, %v13921_v61  ;;  %v10210_v4 = vld [vmem:[%s14719_s3 + $0x88] sm:$0xff] }
 0x391   : > { %v4110_v7 = vpop.f32.mrf.mxu1  ;;  %11637 = vmatprep.subr.mxu1 %v10192_v42 }
 0x392   : > { %v4129_v51 = vadd.f32 %v4110_v7, %v3923_v28 }
 0x393   : > { %v11436_v29 = vpop.f32.mrf.mxu1  ;;  %11627 = vmatmul.mubr.msk.f32.gmra.mxu1 %vm3564_vm2, %v13913_v59 }
 0x394   : > { %v4132_v34 = vadd.f32 %v11436_v29, %v3938_v58  ;;  %11631 = vmatprep.mubr.msk.f32.mxu1 %vm3564_vm2, %v13826_v30 }
 0x395   : > { %v4120_v5 = vpop.f32.mrf.mxu1 }
 0x396   : > { %v4131_v2 = vadd.f32 %v4120_v5, %v3933_v19 }
 0x397   : > { %v11441_v35 = vpop.f32.mrf.mxu1  ;;  %11632 = vmatmul.mubr.msk.f32.vlgmr.msra.gmra.mxu1 %vm3564_vm2, %v13818_v9 }
 0x398   : > { %v4227_v45 = vadd.f32 %v11441_v35, %v4035_v38  ;;  %11638 = vmatpush3.msra.mxu1 %v10192_v42  ;;  %11634 = vmatprep.mubr.msk.f32.mxu1 %vm3564_vm2, %v13844_v6 }
 0x399   : > { %v4207_v13 = vpop.f32.mrf.mxu1  ;;  %11645 = vmatprep.subr.mxu1 %v10201_v3 }
 0x39a   : > { %v4226_v24 = vadd.f32 %v4207_v13, %v4034_v50 }
 0x39b   : > { %v11444_v44 = vpop.f32.mrf.mxu1  ;;  %11635 = vmatmul.mubr.msk.f32.gmra.mxu1 %vm3564_vm2, %v13836_v8 }
 0x39c   : > { %v4229_v30 = vadd.f32 %v11444_v44, %v4037_v37  ;;  %11639 = vmatprep.mubr.msk.f32.mxu1 %vm3564_vm2, %v13940_v10 }
 0x39d   : > { %v4217_v55 = vpop.f32.mrf.mxu1 }
 0x39e   : > { %v4228_v53 = vadd.f32 %v4217_v55, %v4036_v60  ;;  %v10219_v60 = vld [vmem:[%s14719_s3 + $0x90] sm:$0xff] }
 0x39f   : > { %v11449_v40 = vpop.f32.mrf.mxu1  ;;  %11640 = vmatmul.mubr.msk.f32.vlgmr.msra.gmra.mxu1 %vm3564_vm2, %v13929_v54 }
 0x3a0   : > { %v4322_v9 = vadd.f32 %v11449_v40, %v4130_v26  ;;  %11646 = vmatpush3.msra.mxu1 %v10201_v3  ;;  %11642 = vmatprep.mubr.msk.f32.mxu1 %vm3564_vm2, %v13957_v41 }
 0x3a1   : > { %v4302_v63 = vpop.f32.mrf.mxu1  ;;  %11653 = vmatprep.subr.mxu1 %v10201_v3 }
 0x3a2   : > { %v4321_v57 = vadd.f32 %v4302_v63, %v4129_v51 }
 0x3a3   : > { %v11452_v14 = vpop.f32.mrf.mxu1  ;;  %11643 = vmatmul.mubr.msk.f32.gmra.mxu1 %vm3564_vm2, %v13949_v48 }
 0x3a4   : > { %v4324_v62 = vadd.f32 %v11452_v14, %v4132_v34  ;;  %11647 = vmatprep.mubr.msk.f32.mxu1 %vm3564_vm2, %v13844_v6 }
 0x3a5   : > { %v4312_v32 = vpop.f32.mrf.mxu1 }
 0x3a6   : > { %v4323_v43 = vadd.f32 %v4312_v32, %v4131_v2 }
 0x3a7   : > { %v11457_v12 = vpop.f32.mrf.mxu1  ;;  %11648 = vmatmul.mubr.msk.f32.vlgmr.msra.gmra.mxu1 %vm3564_vm2, %v13836_v8 }
 0x3a8   : > { %v4419_v28 = vadd.f32 %v11457_v12, %v4227_v45  ;;  %11654 = vmatpush3.msra.mxu1 %v10201_v3  ;;  %11650 = vmatprep.mubr.msk.f32.mxu1 %vm3564_vm2, %v13865_v20 }
 0x3a9   : > { %v4399_v1 = vpop.f32.mrf.mxu1  ;;  %11661 = vmatprep.subr.mxu1 %v10210_v4 }
 0x3aa   : > { %v4418_v58 = vadd.f32 %v4399_v1, %v4226_v24 }
 0x3ab   : > { %v11460_v11 = vpop.f32.mrf.mxu1  ;;  %11651 = vmatmul.mubr.msk.f32.gmra.mxu1 %vm3564_vm2, %v13852_v56 }
 0x3ac   : > { %v4421_v6 = vadd.f32 %v11460_v11, %v4229_v30  ;;  %11655 = vmatprep.mubr.msk.f32.mxu1 %vm3564_vm2, %v13957_v41  ;;  %v10228_v30 = vld [vmem:[%s14719_s3 + $0x98] sm:$0xff] }
 0x3ad   : > { %v4409_v19 = vpop.f32.mrf.mxu1 }
 0x3ae   : > { %v4420_v42 = vadd.f32 %v4409_v19, %v4228_v53 }
 0x3af   : > { %v11465_v21 = vpop.f32.mrf.mxu1  ;;  %11656 = vmatmul.mubr.msk.f32.vlgmr.msra.gmra.mxu1 %vm3564_vm2, %v13949_v48 }
 0x3b0   : > { %v4514_v8 = vadd.f32 %v11465_v21, %v4322_v9  ;;  %11662 = vmatpush3.msra.mxu1 %v10210_v4  ;;  %11658 = vmatprep.mubr.msk.f32.mxu1 %vm3564_vm2, %v13969_v16 }
 0x3b1   : > { %v4494_v38 = vpop.f32.mrf.mxu1  ;;  %11669 = vmatprep.subr.mxu1 %v10210_v4 }
 0x3b2   : > { %v4513_v27 = vadd.f32 %v4494_v38, %v4321_v57 }
 0x3b3   : > { %v11468_v50 = vpop.f32.mrf.mxu1  ;;  %11659 = vmatmul.mubr.msk.f32.gmra.mxu1 %vm3564_vm2, %v13963_v22 }
 0x3b4   : > { %v4516_v47 = vadd.f32 %v11468_v50, %v4324_v62  ;;  %11663 = vmatprep.mubr.msk.f32.mxu1 %vm3564_vm2, %v13865_v20 }
 0x3b5   : > { %v4504_v37 = vpop.f32.mrf.mxu1 }
 0x3b6   : > { %v4515_v52 = vadd.f32 %v4504_v37, %v4323_v43 }
 0x3b7   : > { %v11473_v15 = vpop.f32.mrf.mxu1  ;;  %11664 = vmatmul.mubr.msk.f32.vlgmr.msra.gmra.mxu1 %vm3564_vm2, %v13852_v56 }
 0x3b8   : > { %v4605_v26 = vadd.f32 %v11473_v15, %v4419_v28  ;;  %11670 = vmatpush3.msra.mxu1 %v10210_v4  ;;  %11666 = vmatprep.mubr.msk.f32.mxu1 %vm3564_vm2, %v13887_v33 }
 0x3b9   : > { %v4585_v7 = vpop.f32.mrf.mxu1  ;;  %11677 = vmatprep.subr.mxu1 %v10219_v60 }
 0x3ba   : > { %v4604_v51 = vadd.f32 %v4585_v7, %v4418_v58  ;;  %v10237_v58 = vld [vmem:[%s14719_s3 + $0xa0] sm:$0xff] }
 0x3bb   : > { %v11476_v29 = vpop.f32.mrf.mxu1  ;;  %11667 = vmatmul.mubr.msk.f32.gmra.mxu1 %vm3564_vm2, %v13877_v0 }
 0x3bc   : > { %v4607_v20 = vadd.f32 %v11476_v29, %v4421_v6  ;;  %11671 = vmatprep.mubr.msk.f32.mxu1 %vm3564_vm2, %v13969_v16 }
 0x3bd   : > { %v4595_v34 = vpop.f32.mrf.mxu1 }
 0x3be   : > { %v4606_v5 = vadd.f32 %v4595_v34, %v4420_v42 }
 0x3bf   : > { %v11481_v2 = vpop.f32.mrf.mxu1  ;;  %11672 = vmatmul.mubr.msk.f32.vlgmr.msra.gmra.mxu1 %vm3564_vm2, %v13963_v22 }
 0x3c0   : > { %v4706_v56 = vadd.f32 %v11481_v2, %v4514_v8  ;;  %11678 = vmatpush3.msra.mxu1 %v10219_v60  ;;  %11674 = vmatprep.mubr.msk.f32.mxu1 %vm3564_vm2, %v13979_v18 }
 0x3c1   : > { %v4686_v3 = vpop.f32.mrf.mxu1  ;;  %11685 = vmatprep.subr.mxu1 %v10219_v60 }
 0x3c2   : > { %v4705_v35 = vadd.f32 %v4686_v3, %v4513_v27  ;;  %v15011_v3 = vld [vmem:[#allocation104_spill] sm:$0xff] }
 0x3c3   : > { %v11484_v45 = vpop.f32.mrf.mxu1  ;;  %11675 = vmatmul.mubr.msk.f32.gmra.mxu1 %vm3564_vm2, %v13974_v31 }
 0x3c4   : > { %v4708_v13 = vadd.f32 %v11484_v45, %v4516_v47  ;;  %11679 = vmatprep.mubr.msk.f32.mxu1 %vm3564_vm2, %v13887_v33 }
 0x3c5   : > { %v4696_v24 = vpop.f32.mrf.mxu1 }
 0x3c6   : > { %v4707_v44 = vadd.f32 %v4696_v24, %v4515_v52 }
 0x3c7   : > { %v11489_v55 = vpop.f32.mrf.mxu1  ;;  %11680 = vmatmul.mubr.msk.f32.vlgmr.msra.gmra.mxu1 %vm3564_vm2, %v13877_v0 }
 0x3c8   : > { %v4797_v53 = vadd.f32 %v11489_v55, %v4605_v26  ;;  %11686 = vmatpush3.msra.mxu1 %v10219_v60  ;;  %11682 = vmatprep.mubr.msk.f32.mxu1 %vm3564_vm2, %v13903_v17  ;;  %v10246_v60 = vld [vmem:[%s14719_s3 + $0xa8] sm:$0xff] }
 0x3c9   : > { %v4777_v40 = vpop.f32.mrf.mxu1  ;;  %11693 = vmatprep.subr.mxu1 %v10228_v30 }
 0x3ca   : > { %v4796_v9 = vadd.f32 %v4777_v40, %v4604_v51 }
 0x3cb   : > { %v11492_v63 = vpop.f32.mrf.mxu1  ;;  %11683 = vmatmul.mubr.msk.f32.gmra.mxu1 %vm3564_vm2, %v13895_v23 }
 0x3cc   : > { %v4799_v33 = vadd.f32 %v11492_v63, %v4607_v20  ;;  %11687 = vmatprep.mubr.msk.f32.mxu1 %vm3564_vm2, %v13979_v18  ;;  %v15008_v20 = vld [vmem:[#allocation105_spill] sm:$0xff] }
 0x3cd   : > { %v4787_v57 = vpop.f32.mrf.mxu1  ;;  %v15009_v34 = vmax.f32 %v13163_v36, %v15008_v20  ;;  %v15014_v36 = vld [vmem:[#allocation106_spill] sm:$0xff] }
 0x3ce   : > { %v4798_v14 = vadd.f32 %v4787_v57, %v4606_v5 }
 0x3cf   : > { %v11497_v62 = vpop.f32.mrf.mxu1  ;;  %11688 = vmatmul.mubr.msk.f32.vlgmr.msra.gmra.mxu1 %vm3564_vm2, %v13974_v31 }
 0x3d0   : > { %v4892_v0 = vadd.f32 %v11497_v62, %v4706_v56  ;;  %11694 = vmatpush3.msra.mxu1 %v10228_v30  ;;  %11690 = vmatprep.mubr.msk.f32.mxu1 %vm3564_vm2, %v13429_v49  ;;  %v15010_v56 = vld [vmem:[#allocation16_spill] sm:$0xff] }
 0x3d1   : > { %v4872_v32 = vpop.f32.mrf.mxu1  ;;  %11701 = vmatprep.subr.mxu1 %v10228_v30 }
 0x3d2   : > { %v4891_v43 = vadd.f32 %v4872_v32, %v4705_v35  ;;  %v15012_v35 = vmax.f32 %v15010_v56, %v15011_v3 }
 0x3d3   : > { %v11500_v4 = vpop.f32.mrf.mxu1  ;;  %11691 = vmatmul.mubr.msk.f32.gmra.mxu1 %vm3564_vm2, %v13424_v25 }
 0x3d4   : > { %v4894_v12 = vadd.f32 %v11500_v4, %v4708_v13  ;;  %11695 = vmatprep.mubr.msk.f32.mxu1 %vm3564_vm2, %v13903_v17  ;;  %v15013_v13 = vld [vmem:[#allocation107_spill] sm:$0xff]  ;;  %v15015_v4 = vld [vmem:[#allocation109_spill] sm:$0xff] }
 0x3d5   : > { %v4882_v28 = vpop.f32.mrf.mxu1 }
 0x3d6   : > { %v4893_v1 = vadd.f32 %v4882_v28, %v4707_v44 }
 0x3d7   : > { %v11505_v11 = vpop.f32.mrf.mxu1  ;;  %11696 = vmatmul.mubr.msk.f32.vlgmr.msra.gmra.mxu1 %vm3564_vm2, %v13895_v23 }
 0x3d8   : > { %v4983_v6 = vadd.f32 %v11505_v11, %v4797_v53  ;;  %11702 = vmatpush3.msra.mxu1 %v10228_v30  ;;  %11698 = vmatprep.mubr.msk.f32.mxu1 %vm3564_vm2, %v13921_v61 }
 0x3d9   : > { %v4963_v19 = vpop.f32.mrf.mxu1  ;;  %11709 = vmatprep.subr.mxu1 %v10237_v58 }
 0x3da   : > { %v4982_v42 = vadd.f32 %v4963_v19, %v4796_v9  ;;  %v10255_v9 = vld [vmem:[%s14719_s3 + $0xb0] sm:$0xff] }
 0x3db   : > { %v11508_v21 = vpop.f32.mrf.mxu1  ;;  %11699 = vmatmul.mubr.msk.f32.gmra.mxu1 %vm3564_vm2, %v13913_v59 }
 0x3dc   : > { %v4985_v17 = vadd.f32 %v11508_v21, %v4799_v33  ;;  %11703 = vmatprep.mubr.msk.f32.mxu1 %vm3564_vm2, %v13429_v49 }
 0x3dd   : > { %v4973_v8 = vpop.f32.mrf.mxu1 }
 0x3de   : > { %v4984_v38 = vadd.f32 %v4973_v8, %v4798_v14 }
 0x3df   : > { %v11513_v27 = vpop.f32.mrf.mxu1  ;;  %11704 = vmatmul.mubr.msk.f32.vlgmr.msra.gmra.mxu1 %vm3564_vm2, %v13424_v25 }
 0x3e0   : > { %v5078_v23 = vadd.f32 %v11513_v27, %v4892_v0  ;;  %11710 = vmatpush3.msra.mxu1 %v10237_v58  ;;  %11706 = vmatprep.mubr.msk.f32.mxu1 %vm3564_vm2, %v13439_v39 }
 0x3e1   : > { %v5058_v61 = vpop.f32.mrf.mxu1  ;;  %11717 = vmatprep.subr.mxu1 %v10237_v58 }
 0x3e2   : > { %v5077_v50 = vadd.f32 %v5058_v61, %v4891_v43 }
 0x3e3   : > { %v11516_v47 = vpop.f32.mrf.mxu1  ;;  %11707 = vmatmul.mubr.msk.f32.gmra.mxu1 %vm3564_vm2, %v13434_v46 }
 0x3e4   : > { %v5080_v59 = vadd.f32 %v11516_v47, %v4894_v12  ;;  %11711 = vmatprep.mubr.msk.f32.mxu1 %vm3564_vm2, %v13940_v10  ;;  %v15017_v47 = vld [vmem:[#allocation111_spill] sm:$0xff] }
 0x3e5   : > { %v5068_v37 = vpop.f32.mrf.mxu1 }
 0x3e6   : > { %v5079_v52 = vadd.f32 %v5068_v37, %v4893_v1 }
 0x3e7   : > { %v11521_v15 = vpop.f32.mrf.mxu1  ;;  %11712 = vmatmul.mubr.msk.f32.vlgmr.msra.gmra.mxu1 %vm3564_vm2, %v13929_v54 }
 0x3e8   : > { %v5169_v26 = vadd.f32 %v11521_v15, %v4983_v6  ;;  %11718 = vmatpush3.msra.mxu1 %v10237_v58  ;;  %11714 = vmatprep.mubr.msk.f32.mxu1 %vm3564_vm2, %v13957_v41  ;;  %v15016_v58 = vld [vmem:[#allocation108_spill] sm:$0xff] }
 0x3e9   : > { %v5149_v7 = vpop.f32.mrf.mxu1  ;;  %11725 = vmatprep.subr.mxu1 %v10246_v60 }
 0x3ea   : > { %v5168_v51 = vadd.f32 %v5149_v7, %v4982_v42  ;;  %v10264_v42 = vld [vmem:[%s14719_s3 + $0xb8] sm:$0xff] }
 0x3eb   : > { %v11524_v29 = vpop.f32.mrf.mxu1  ;;  %11715 = vmatmul.mubr.msk.f32.gmra.mxu1 %vm3564_vm2, %v13949_v48 }
 0x3ec   : > { %v5171_v10 = vadd.f32 %v11524_v29, %v4985_v17  ;;  %11719 = vmatprep.mubr.msk.f32.mxu1 %vm3564_vm2, %v15009_v34 }
 0x3ed   : > { %v5159_v5 = vpop.f32.mrf.mxu1 }
 0x3ee   : > { %v5170_v54 = vadd.f32 %v5159_v5, %v4984_v38 }
 0x3ef   : > { %v11529_v2 = vpop.f32.mrf.mxu1  ;;  %11720 = vmatmul.mubr.msk.f32.vlgmr.msra.gmra.mxu1 %vm3564_vm2, %v15012_v35  ;;  %v15020_v35 = vld [vmem:[#allocation112_spill] sm:$0xff] }
 0x3f0   : > { %v5264_v45 = vadd.f32 %v11529_v2, %v5078_v23  ;;  %11726 = vmatpush3.msra.mxu1 %v10246_v60  ;;  %11722 = vmatprep.mubr.msk.f32.mxu1 %vm3564_vm2, %v15013_v13  ;;  %v15019_v2 = vld [vmem:[#allocation113_spill] sm:$0xff] }
 0x3f1   : > { %v5244_v24 = vpop.f32.mrf.mxu1  ;;  %11733 = vmatprep.subr.mxu1 %v10246_v60 }
 0x3f2   : > { %v5263_v44 = vadd.f32 %v5244_v24, %v5077_v50 }
 0x3f3   : > { %v11532_v30 = vpop.f32.mrf.mxu1  ;;  %11723 = vmatmul.mubr.msk.f32.gmra.mxu1 %vm3564_vm2, %v15014_v36 }
 0x3f4   : > { %v5266_v55 = vadd.f32 %v11532_v30, %v5080_v59  ;;  %11727 = vmatprep.mubr.msk.f32.mxu1 %vm3564_vm2, %v13957_v41 }
 0x3f5   : > { %v5254_v53 = vpop.f32.mrf.mxu1 }
 0x3f6   : > { %v5265_v40 = vadd.f32 %v5254_v53, %v5079_v52 }
 0x3f7   : > { %v11537_v63 = vpop.f32.mrf.mxu1  ;;  %11728 = vmatmul.mubr.msk.f32.vlgmr.msra.gmra.mxu1 %vm3564_vm2, %v13949_v48 }
 0x3f8   : > { %v5355_v33 = vadd.f32 %v11537_v63, %v5169_v26  ;;  %11734 = vmatpush3.msra.mxu1 %v10246_v60  ;;  %11730 = vmatprep.mubr.msk.f32.mxu1 %vm3564_vm2, %v13969_v16  ;;  %v15018_v60 = vld [vmem:[#allocation110_spill] sm:$0xff] }
 0x3f9   : > { %v5335_v57 = vpop.f32.mrf.mxu1  ;;  %11741 = vmatprep.subr.mxu1 %v10255_v9 }
 0x3fa   : > { %v5354_v14 = vadd.f32 %v5335_v57, %v5168_v51  ;;  %v10273_v51 = vld [vmem:[%s14719_s3 + $0xc0] sm:$0xff] }
 0x3fb   : > { %v11540_v62 = vpop.f32.mrf.mxu1  ;;  %11731 = vmatmul.mubr.msk.f32.gmra.mxu1 %vm3564_vm2, %v13963_v22  ;;  %v15024_v57 = vld [vmem:[#allocation17_spill] sm:$0xff] }
 0x3fc   : > { %v5357_v41 = vadd.f32 %v11540_v62, %v5171_v10  ;;  %11735 = vmatprep.mubr.msk.f32.mxu1 %vm3564_vm2, %v15013_v13 }
 0x3fd   : > { %v5345_v0 = vpop.f32.mrf.mxu1 }
 0x3fe   : > { %v5356_v32 = vadd.f32 %v5345_v0, %v5170_v54 }
 0x3ff   : > { %v11545_v43 = vpop.f32.mrf.mxu1  ;;  %11736 = vmatmul.mubr.msk.f32.vlgmr.msra.gmra.mxu1 %vm3564_vm2, %v15014_v36 }
 0x400   : > { %v5450_v48 = vadd.f32 %v11545_v43, %v5264_v45  ;;  %11742 = vmatpush3.msra.mxu1 %v10255_v9  ;;  %11738 = vmatprep.mubr.msk.f32.mxu1 %vm3564_vm2, %v15015_v4 }
 0x401   : > { %v5430_v12 = vpop.f32.mrf.mxu1  ;;  %11749 = vmatprep.subr.mxu1 %v10255_v9 }
 0x402   : > { %v5449_v28 = vadd.f32 %v5430_v12, %v5263_v44 }
 0x403   : > { %v11548_v1 = vpop.f32.mrf.mxu1  ;;  %11739 = vmatmul.mubr.msk.f32.gmra.mxu1 %vm3564_vm2, %v15016_v58 }
 0x404   : > { %v5452_v11 = vadd.f32 %v11548_v1, %v5266_v55  ;;  %11743 = vmatprep.mubr.msk.f32.mxu1 %vm3564_vm2, %v13969_v16 }
 0x405   : > { %v5440_v6 = vpop.f32.mrf.mxu1 }
 0x406   : > { %v5451_v19 = vadd.f32 %v5440_v6, %v5265_v40  ;;  %v15021_v40 = vld [vmem:[#allocation18_spill] sm:$0xff] }
 0x407   : > { %v11553_v21 = vpop.f32.mrf.mxu1  ;;  %11744 = vmatmul.mubr.msk.f32.vlgmr.msra.gmra.mxu1 %vm3564_vm2, %v13963_v22 }
 0x408   : > { %v5541_v17 = vadd.f32 %v11553_v21, %v5355_v33  ;;  %11750 = vmatpush3.msra.mxu1 %v10255_v9  ;;  %11746 = vmatprep.mubr.msk.f32.mxu1 %vm3564_vm2, %v13979_v18  ;;  %v15022_v9 = vld [vmem:[#allocation115_spill] sm:$0xff] }
 0x409   : > { %v5521_v8 = vpop.f32.mrf.mxu1  ;;  %11757 = vmatprep.subr.mxu1 %v10264_v42  ;;  %v15023_v63 = vmax.f32 %v15021_v40, %v15022_v9 }
 0x40a   : > { %v14298_v38 = vadd.f32 %v5521_v8, %v5354_v14  ;;  %v15025_v14 = vld [vmem:[#allocation114_spill] sm:$0xff] }
 0x40b   : > { %v11556_v16 = vpop.f32.mrf.mxu1  ;;  %11747 = vmatmul.mubr.msk.f32.gmra.mxu1 %vm3564_vm2, %v13974_v31 }
 0x40c   : > { %v5543_v27 = vadd.f32 %v11556_v16, %v5357_v41  ;;  %11751 = vmatprep.mubr.msk.f32.mxu1 %vm3564_vm2, %v15015_v4 }
 0x40d   : > { %v5531_v23 = vpop.f32.mrf.mxu1 }
 0x40e   : > { %v14304_v61 = vadd.f32 %v5531_v23, %v5356_v32 }
 0x40f   : > { %v11561_v22 = vpop.f32.mrf.mxu1  ;;  %11752 = vmatmul.mubr.msk.f32.vlgmr.msra.gmra.mxu1 %vm3564_vm2, %v15016_v58 }
 0x410   : > { %v5642_v50 = vadd.f32 %v11561_v22, %v5450_v48  ;;  %11758 = vmatpush3.msra.mxu1 %v10264_v42  ;;  %11754 = vmatprep.mubr.msk.f32.mxu1 %vm3564_vm2, %v15017_v47 }
 0x411   : > { %v5622_v59 = vpop.f32.mrf.mxu1  ;;  %11765 = vmatprep.subr.mxu1 %v10264_v42 }
 0x412   : > { %v14310_v37 = vadd.f32 %v5622_v59, %v5449_v28 }
 0x413   : > { %v11564_v52 = vpop.f32.mrf.mxu1  ;;  %11755 = vmatmul.mubr.msk.f32.gmra.mxu1 %vm3564_vm2, %v15018_v60 }
 0x414   : > { %v5644_v15 = vadd.f32 %v11564_v52, %v5452_v11  ;;  %11759 = vmatprep.mubr.msk.f32.mxu1 %vm3564_vm2, %v13979_v18 }
 0x415   : > { %v5632_v26 = vpop.f32.mrf.mxu1 }
 0x416   : > { %v14316_v7 = vadd.f32 %v5632_v26, %v5451_v19 }
 0x417   : > { %v11569_v29 = vpop.f32.mrf.mxu1  ;;  %11760 = vmatmul.mubr.msk.f32.vlgmr.msra.gmra.mxu1 %vm3564_vm2, %v13974_v31 }
 0x418   : > { %v5733_v10 = vadd.f32 %v11569_v29, %v5541_v17  ;;  %11766 = vmatpush3.msra.mxu1 %v10264_v42  ;;  %11762 = vmatprep.mubr.msk.f32.mxu1 %vm3564_vm2, %v13429_v49 }
 0x419   : > { %v14325_v20 = vpop.f32.mrf.mxu1  ;;  %11773 = vmatprep.subr.mxu1 %v10273_v51 }
 0x41b   : > { %v11572_v18 = vpop.f32.mrf.mxu1  ;;  %11763 = vmatmul.mubr.msk.f32.gmra.mxu1 %vm3564_vm2, %v13424_v25 }
 0x41c   : > { %v5735_v34 = vadd.f32 %v11572_v18, %v5543_v27  ;;  %11767 = vmatprep.mubr.msk.f32.mxu1 %vm3564_vm2, %v15017_v47 }
 0x41d   : > { %v14331_v5 = vpop.f32.mrf.mxu1 }
 0x41f   : > { %v11577_v54 = vpop.f32.mrf.mxu1  ;;  %11768 = vmatmul.mubr.msk.f32.vlgmr.msra.gmra.mxu1 %vm3564_vm2, %v15018_v60 }
 0x420   : > { %v5828_v31 = vadd.f32 %v11577_v54, %v5642_v50  ;;  %11774 = vmatpush3.msra.mxu1 %v10273_v51  ;;  %11770 = vmatprep.mubr.msk.f32.mxu1 %vm3564_vm2, %v15019_v2 }
 0x421   : > { %v5808_v56 = vpop.f32.mrf.mxu1  ;;  %11781 = vmatprep.subr.mxu1 %v10273_v51 }
 0x423   : > { %v11580_v3 = vpop.f32.mrf.mxu1  ;;  %11771 = vmatmul.mubr.msk.f32.gmra.mxu1 %vm3564_vm2, %v15020_v35 }
 0x424   : > { %v5830_v45 = vadd.f32 %v11580_v3, %v5644_v15  ;;  %11775 = vmatprep.mubr.msk.f32.mxu1 %vm3564_vm2, %v13429_v49  ;;  %v5732_v3 = vadd.f32 %v14325_v20, %v14298_v38 }
 0x425   : > { %v5818_v13 = vpop.f32.mrf.mxu1 }
 0x426   : > { %v5829_v54 = vadd.f32 %v5818_v13, %v14316_v7 }
 0x427   : > { %v11585_v24 = vpop.f32.mrf.mxu1  ;;  %11776 = vmatmul.mubr.msk.f32.vlgmr.msra.gmra.mxu1 %vm3564_vm2, %v13424_v25 }
 0x428   : > { %v5919_v44 = vadd.f32 %v11585_v24, %v5733_v10  ;;  %11782 = vmatpush3.msra.mxu1 %v10273_v51  ;;  %11778 = vmatprep.mubr.msk.f32.mxu1 %vm3564_vm2, %v13439_v39  ;;  %v5827_v51 = vadd.f32 %v5808_v56, %v14310_v37  ;;  %v5734_v37 = vadd.f32 %v14331_v5, %v14304_v61 }
 0x429   : > { %v5899_v30 = vpop.f32.mrf.mxu1 }
 0x42b   : > { %v11588_v36 = vpop.f32.mrf.mxu1  ;;  %11779 = vmatmul.mubr.msk.f32.gmra.mxu1 %vm3564_vm2, %v13434_v46  ;;  %v15026_v46 = vmax.f32 %v15024_v57, %v15025_v14 }
 0x42c   : > { %v5921_v55 = vadd.f32 %v11588_v36, %v5735_v34  ;;  %11783 = vmatprep.mubr.msk.f32.mxu1 %vm3564_vm2, %v15019_v2  ;;  %v5918_v36 = vadd.f32 %v5899_v30, %v5732_v3 }
 0x42d   : > { %v5909_v49 = vpop.f32.mrf.mxu1 }
 0x42e   : > { %v5920_v13 = vadd.f32 %v5909_v49, %v5734_v37 }
 0x42f   : > { %v11593_v53 = vpop.f32.mrf.mxu1  ;;  %11784 = vmatmul.mubr.msk.f32.vlgmr.msra.gmra.mxu1 %vm3564_vm2, %v15020_v35 }
 0x430   : > { %v6014_v25 = vadd.f32 %v11593_v53, %v5828_v31  ;;  %11786 = vmatprep.mubr.msk.f32.mxu1 %vm3564_vm2, %v15023_v63 }
 0x431   : > { %v5994_v39 = vpop.f32.mrf.mxu1 }
 0x432   : > { %v6013_v10 = vadd.f32 %v5994_v39, %v5827_v51 }
 0x433   : > { %v11596_v33 = vpop.f32.mrf.mxu1  ;;  %11787 = vmatmul.mubr.msk.f32.gmra.mxu1 %vm3564_vm2, %v15026_v46 }
 0x434   : > { %v6016_v62 = vadd.f32 %v11596_v33, %v5830_v45 }
 0x435   : > { %v6004_v41 = vpop.f32.mrf.mxu1 }
 0x436   : > { %v6015_v35 = vadd.f32 %v6004_v41, %v5829_v54 }
 0x437   : > { %v11601_v0 = vpop.f32.mrf.mxu1 }
 0x438   : > { %v6105_v32 = vadd.f32 %v11601_v0, %v5919_v44 }
 0x439   : > { %v6085_v43 = vpop.f32.mrf.mxu1 }
 0x43a   : > { %v6104_v56 = vadd.f32 %v6085_v43, %v5918_v36 }
 0x43b   : > { %v11604_v48 = vpop.f32.mrf.mxu1 }
 0x43c   : > { %v6107_v4 = vadd.f32 %v11604_v48, %v5921_v55 }
 0x43d   : > { %v6095_v12 = vpop.f32.mrf.mxu1 }
 0x43e   : > { %v6106_v38 = vadd.f32 %v6095_v12, %v5920_v13 }
 0x43f   : > { %v11609_v28 = vpop.f32.mrf.mxu1 }
 0x440   : > { %v6200_v1 = vadd.f32 %v11609_v28, %v6014_v25 }
 0x441   : > { %v6180_v58 = vpop.f32.mrf.mxu1 }
 0x442   : > { %v6199_v31 = vadd.f32 %v6180_v58, %v6013_v10 }
 0x443   : > { %v11612_v11 = vpop.f32.mrf.mxu1 }
 0x444   : > { %v6202_v6 = vadd.f32 %v11612_v11, %v6016_v62 }
 0x445   : > { %v6190_v19 = vpop.f32.mrf.mxu1 }
 0x446   : > { %v6201_v55 = vadd.f32 %v6190_v19, %v6015_v35 }
 0x447   : > { %v11617_v42 = vpop.f32.mrf.mxu1 }
 0x448   : > { %v6291_v21 = vadd.f32 %v11617_v42, %v6105_v32 }
 0x449   : > { %v6271_v17 = vpop.f32.mrf.mxu1 }
 0x44a   : > { %v6290_v63 = vadd.f32 %v6271_v17, %v6104_v56 }
 0x44b   : > { %v11620_v8 = vpop.f32.mrf.mxu1 }
 0x44c   : > { %v6293_v16 = vadd.f32 %v11620_v8, %v6107_v4 }
 0x44d   : > { %v6281_v27 = vpop.f32.mrf.mxu1 }
 0x44e   : > { %v6292_v46 = vadd.f32 %v6281_v27, %v6106_v38  ;;  %v10284_v27 = vld [vmem:[%s14721_s5 + $0x18] sm:$0xff] }
 0x44f   : > { %v11625_v23 = vpop.f32.mrf.mxu1 }
 0x450   : > { %v6386_v22 = vadd.f32 %v11625_v23, %v6200_v1  ;;  %v10283_v23 = vld [vmem:[%s14721_s5 + $0x10] sm:$0xff] }
 0x451   : > { %v6366_v50 = vpop.f32.mrf.mxu1 }
 0x452   : > { %v6385_v45 = vadd.f32 %v6366_v50, %v6199_v31 }
 0x453   : > { %v11628_v47 = vpop.f32.mrf.mxu1 }
 0x454   : > { %v6388_v59 = vadd.f32 %v11628_v47, %v6202_v6 }
 0x455   : > { %v6376_v52 = vpop.f32.mrf.mxu1 }
 0x456   : > { %v6387_v40 = vadd.f32 %v6376_v52, %v6201_v55 }
 0x457   : > { %v11633_v60 = vpop.f32.mrf.mxu1 }
 0x458   : > { %v6477_v15 = vadd.f32 %v11633_v60, %v6291_v21 }
 0x459   : > { %v6457_v26 = vpop.f32.mrf.mxu1 }
 0x45a   : > { %v6476_v20 = vadd.f32 %v6457_v26, %v6290_v63 }
 0x45b   : > { %v11636_v29 = vpop.f32.mrf.mxu1 }
 0x45c   : > { %v6479_v18 = vadd.f32 %v11636_v29, %v6293_v16  ;;  %v12069_v16 = vmov 0.0  }
 0x45d   : > { %v6467_v34 = vpop.f32.mrf.mxu1  ;;  %11789 = vmatprep.subr.mxu1 %v12069_v16  ;;  %11793 = vmatprep.mubr.msk.f32.mxu1 %vm12070_vm3, %v12069_v16 }
 0x45e   : > { %v6478_v41 = vadd.f32 %v6467_v34, %v6292_v46  ;;  %11790 = vmatpush3.msra.mxu1 %v10284_v27 }
 0x45f   : > { %v11641_v2 = vpop.f32.mrf.mxu1  ;;  %11791 = vmatprep.subr.mxu1 %v12069_v16 }
 0x460   : > { %v6578_v24 = vadd.f32 %v11641_v2, %v6386_v22  ;;  %11792 = vmatpush3.msra.mxu1 %v10283_v23 }
 0x461   : > { %v6558_v44 = vpop.f32.mrf.mxu1  ;;  %11796 = vmatprep.subr.mxu1 %v12069_v16 }
 0x462   : > { %v6577_v53 = vadd.f32 %v6558_v44, %v6385_v45 }
 0x463   : > { %v11644_v25 = vpop.f32.mrf.mxu1 }
 0x464   : > { %v6580_v9 = vadd.f32 %v11644_v25, %v6388_v59 }
 0x465   : > { %v6568_v7 = vpop.f32.mrf.mxu1 }
 0x466   : > { %v6579_v39 = vadd.f32 %v6568_v7, %v6387_v40 }
 0x467   : > { %v11649_v33 = vpop.f32.mrf.mxu1 }
 0x468   : > { %v6669_v57 = vadd.f32 %v11649_v33, %v6477_v15 }
 0x469   : > { %v6649_v14 = vpop.f32.mrf.mxu1 }
 0x46a   : > { %v6668_v30 = vadd.f32 %v6649_v14, %v6476_v20 }
 0x46b   : > { %v11652_v62 = vpop.f32.mrf.mxu1 }
 0x46c   : > { %v6671_v0 = vadd.f32 %v11652_v62, %v6479_v18 }
 0x46d   : > { %v6659_v32 = vpop.f32.mrf.mxu1 }
 0x46e   : > { %v6670_v48 = vadd.f32 %v6659_v32, %v6478_v41 }
 0x46f   : > { %v11657_v61 = vpop.f32.mrf.mxu1 }
 0x470   : > { %v6764_v5 = vadd.f32 %v11657_v61, %v6578_v24 }
 0x471   : > { %v6744_v43 = vpop.f32.mrf.mxu1 }
 0x472   : > { %v6763_v4 = vadd.f32 %v6744_v43, %v6577_v53 }
 0x473   : > { %v11660_v28 = vpop.f32.mrf.mxu1 }
 0x474   : > { %v6766_v49 = vadd.f32 %v11660_v28, %v6580_v9 }
 0x475   : > { %v6754_v1 = vpop.f32.mrf.mxu1 }
 0x476   : > { %v6765_v58 = vadd.f32 %v6754_v1, %v6579_v39 }
 0x477   : > { %v11665_v11 = vpop.f32.mrf.mxu1 }
 0x478   : > { %v6855_v12 = vadd.f32 %v11665_v11, %v6669_v57 }
 0x479   : > { %v6835_v6 = vpop.f32.mrf.mxu1 }
 0x47a   : > { %v6854_v19 = vadd.f32 %v6835_v6, %v6668_v30 }
 0x47b   : > { %v11668_v42 = vpop.f32.mrf.mxu1 }
 0x47c   : > { %v6857_v21 = vadd.f32 %v11668_v42, %v6671_v0 }
 0x47d   : > { %v6845_v17 = vpop.f32.mrf.mxu1 }
 0x47e   : > { %v6856_v8 = vadd.f32 %v6845_v17, %v6670_v48 }
 0x47f   : > { %v11673_v22 = vpop.f32.mrf.mxu1 }
 0x480   : > { %v6950_v50 = vadd.f32 %v11673_v22, %v6764_v5 }
 0x481   : > { %v6930_v47 = vpop.f32.mrf.mxu1 }
 0x482   : > { %v6949_v59 = vadd.f32 %v6930_v47, %v6763_v4 }
 0x483   : > { %v11676_v52 = vpop.f32.mrf.mxu1 }
 0x484   : > { %v6952_v60 = vadd.f32 %v11676_v52, %v6766_v49 }
 0x485   : > { %v6940_v15 = vpop.f32.mrf.mxu1 }
 0x486   : > { %v6951_v26 = vadd.f32 %v6940_v15, %v6765_v58 }
 0x487   : > { %v11681_v51 = vpop.f32.mrf.mxu1 }
 0x488   : > { %v7041_v29 = vadd.f32 %v11681_v51, %v6855_v12 }
 0x489   : > { %v7021_v10 = vpop.f32.mrf.mxu1 }
 0x48a   : > { %v7040_v18 = vadd.f32 %v7021_v10, %v6854_v19 }
 0x48b   : > { %v11684_v34 = vpop.f32.mrf.mxu1 }
 0x48c   : > { %v7043_v54 = vadd.f32 %v11684_v34, %v6857_v21 }
 0x48d   : > { %v7031_v31 = vpop.f32.mrf.mxu1 }
 0x48e   : > { %v7042_v2 = vadd.f32 %v7031_v31, %v6856_v8 }
 0x48f   : > { %v11689_v3 = vpop.f32.mrf.mxu1 }
 0x490   : > { %v7136_v35 = vadd.f32 %v11689_v3, %v6950_v50 }
 0x491   : > { %v7116_v45 = vpop.f32.mrf.mxu1 }
 0x492   : > { %v7135_v24 = vadd.f32 %v7116_v45, %v6949_v59 }
 0x493   : > { %v11692_v44 = vpop.f32.mrf.mxu1 }
 0x494   : > { %v7138_v36 = vadd.f32 %v11692_v44, %v6952_v60 }
 0x495   : > { %v7126_v55 = vpop.f32.mrf.mxu1 }
 0x496   : > { %v7137_v53 = vadd.f32 %v7126_v55, %v6951_v26 }
 0x497   : > { %v11697_v25 = vpop.f32.mrf.mxu1 }
 0x498   : > { %v7227_v37 = vadd.f32 %v11697_v25, %v7041_v29 }
 0x499   : > { %v7207_v56 = vpop.f32.mrf.mxu1 }
 0x49a   : > { %v7226_v40 = vadd.f32 %v7207_v56, %v7040_v18 }
 0x49b   : > { %v11700_v9 = vpop.f32.mrf.mxu1 }
 0x49c   : > { %v7229_v7 = vadd.f32 %v11700_v9, %v7043_v54 }
 0x49d   : > { %v7217_v13 = vpop.f32.mrf.mxu1 }
 0x49e   : > { %v7228_v63 = vadd.f32 %v7217_v13, %v7042_v2 }
 0x49f   : > { %v11705_v39 = vpop.f32.mrf.mxu1 }
 0x4a0   : > { %v7322_v33 = vadd.f32 %v11705_v39, %v7136_v35 }
 0x4a1   : > { %v7302_v38 = vpop.f32.mrf.mxu1 }
 0x4a2   : > { %v7321_v20 = vadd.f32 %v7302_v38, %v7135_v24 }
 0x4a3   : > { %v11708_v57 = vpop.f32.mrf.mxu1 }
 0x4a4   : > { %v7324_v14 = vadd.f32 %v11708_v57, %v7138_v36 }
 0x4a5   : > { %v7312_v46 = vpop.f32.mrf.mxu1 }
 0x4a6   : > { %v14376_v30 = vadd.f32 %v7312_v46, %v7137_v53 }
 0x4a7   : > { %v11713_v62 = vpop.f32.mrf.mxu1 }
 0x4a8   : > { %v7413_v41 = vadd.f32 %v11713_v62, %v7227_v37 }
 0x4a9   : > { %v7393_v0 = vpop.f32.mrf.mxu1 }
 0x4aa   : > { %v7412_v32 = vadd.f32 %v7393_v0, %v7226_v40 }
 0x4ab   : > { %v11716_v48 = vpop.f32.mrf.mxu1 }
 0x4ac   : > { %v7415_v61 = vadd.f32 %v11716_v48, %v7229_v7 }
 0x4ad   : > { %v7403_v5 = vpop.f32.mrf.mxu1 }
 0x4ae   : > { %v7414_v43 = vadd.f32 %v7403_v5, %v7228_v63  ;;  %v10282_v63 = vld [vmem:[%s14720_s4] ss:$0 sm:$0xff] }
 0x4af   : > { %v11721_v4 = vpop.f32.mrf.mxu1 }
 0x4b0   : > { %v7514_v28 = vadd.f32 %v11721_v4, %v7322_v33 }
 0x4b1   : > { %v7494_v49 = vpop.f32.mrf.mxu1 }
 0x4b2   : > { %v7513_v13 = vadd.f32 %v7494_v49, %v7321_v20 }
 0x4b3   : > { %v11724_v1 = vpop.f32.mrf.mxu1 }
 0x4b4   : > { %v7516_v58 = vadd.f32 %v11724_v1, %v7324_v14 }
 0x4b5   : > { %v7504_v11 = vpop.f32.mrf.mxu1 }
 0x4b7   : > { %v11729_v12 = vpop.f32.mrf.mxu1 }
 0x4b8   : > { %v7605_v6 = vadd.f32 %v11729_v12, %v7413_v41 }
 0x4b9   : > { %v7585_v19 = vpop.f32.mrf.mxu1 }
 0x4ba   : > { %v7604_v55 = vadd.f32 %v7585_v19, %v7412_v32  ;;  %v7515_v32 = vadd.f32 %v7504_v11, %v14376_v30 }
 0x4bb   : > { %v11732_v42 = vpop.f32.mrf.mxu1 }
 0x4bc   : > { %v7607_v21 = vadd.f32 %v11732_v42, %v7415_v61 }
 0x4bd   : > { %v7595_v17 = vpop.f32.mrf.mxu1 }
 0x4be   : > { %v7606_v40 = vadd.f32 %v7595_v17, %v7414_v43 }
 0x4bf   : > { %v11737_v8 = vpop.f32.mrf.mxu1 }
 0x4c0   : > { %v7700_v27 = vadd.f32 %v11737_v8, %v7514_v28 }
 0x4c1   : > { %v7680_v23 = vpop.f32.mrf.mxu1 }
 0x4c2   : > { %v7699_v14 = vadd.f32 %v7680_v23, %v7513_v13  ;;  %v10296_v13 = vld [vmem:[%s14721_s5 + $0x50] sm:$0xff] }
 0x4c3   : > { %v11740_v22 = vpop.f32.mrf.mxu1 }
 0x4c4   : > { %v7702_v50 = vadd.f32 %v11740_v22, %v7516_v58 }
 0x4c5   : > { %v7690_v47 = vpop.f32.mrf.mxu1 }
 0x4c6   : > { %v7701_v28 = vadd.f32 %v7690_v47, %v7515_v32  ;;  %v10308_v32 = vld [vmem:[%s14721_s5 + $0x90] sm:$0xff] }
 0x4c7   : > { %v11745_v59 = vpop.f32.mrf.mxu1 }
 0x4c8   : > { %v7791_v52 = vadd.f32 %v11745_v59, %v7605_v6 }
 0x4c9   : > { %v7771_v60 = vpop.f32.mrf.mxu1 }
 0x4ca   : > { %v7790_v25 = vadd.f32 %v7771_v60, %v7604_v55 }
 0x4cb   : > { %v11748_v15 = vpop.f32.mrf.mxu1 }
 0x4cc   : > { %v7793_v26 = vadd.f32 %v11748_v15, %v7607_v21 }
 0x4cd   : > { %v7781_v51 = vpop.f32.mrf.mxu1 }
 0x4ce   : > { %v7792_v33 = vadd.f32 %v7781_v51, %v7606_v40  ;;  %v10293_v40 = vld [vmem:[%s14721_s5 + $0x40] sm:$0xff] }
 0x4cf   : > { %v11753_v29 = vpop.f32.mrf.mxu1 }
 0x4d0   : > { %v7886_v10 = vadd.f32 %v11753_v29, %v7700_v27 }
 0x4d1   : > { %v7866_v18 = vpop.f32.mrf.mxu1 }
 0x4d2   : > { %v7885_v48 = vadd.f32 %v7866_v18, %v7699_v14  ;;  %v10302_v14 = vld [vmem:[%s14721_s5 + $0x70] sm:$0xff] }
 0x4d3   : > { %v11756_v34 = vpop.f32.mrf.mxu1 }
 0x4d4   : > { %v7888_v54 = vadd.f32 %v11756_v34, %v7702_v50 }
 0x4d5   : > { %v7876_v31 = vpop.f32.mrf.mxu1 }
 0x4d6   : > { %v7887_v42 = vadd.f32 %v7876_v31, %v7701_v28 }
 0x4d7   : > { %v11761_v2 = vpop.f32.mrf.mxu1 }
 0x4d8   : > { %v7977_v37 = vadd.f32 %v11761_v2, %v7791_v52 }
 0x4d9   : > { %v7957_v3 = vpop.f32.mrf.mxu1 }
 0x4da   : > { %v7976_v9 = vadd.f32 %v7957_v3, %v7790_v25  ;;  %v10290_v25 = vld [vmem:[%s14721_s5 + $0x30] sm:$0xff] }
 0x4db   : > { %v11764_v35 = vpop.f32.mrf.mxu1 }
 0x4dc   : > { %v7979_v38 = vadd.f32 %v11764_v35, %v7793_v26 }
 0x4dd   : > { %v7967_v45 = vpop.f32.mrf.mxu1 }
 0x4de   : > { %v7978_v62 = vadd.f32 %v7967_v45, %v7792_v33  ;;  %v8291_v45 = vld [vmem:[%s14721_s5 + $0x8] sm:$0xff]  ;;  %v10299_v33 = vld [vmem:[%s14721_s5 + $0x60] sm:$0xff] }
 0x4df   : > { %v11769_v24 = vpop.f32.mrf.mxu1 }
 0x4e0   : > { %v8072_v5 = vadd.f32 %v11769_v24, %v7886_v10  ;;  %v8290_v24 = vld [vmem:[%s14721_s5] sm:$0xff] }
 0x4e1   : > { %v8052_v44 = vpop.f32.mrf.mxu1 }
 0x4e2   : > { %v8071_v49 = vadd.f32 %v8052_v44, %v7885_v48  ;;  %v10288_v44 = vld [vmem:[%s14721_s5 + $0x28] sm:$0xff] }
 0x4e3   : > { %v11772_v36 = vpop.f32.mrf.mxu1 }
 0x4e4   : > { %v8074_v21 = vadd.f32 %v11772_v36, %v7888_v54  ;;  %v10287_v36 = vld [vmem:[%s14721_s5 + $0x20] sm:$0xff] }
 0x4e5   : > { %v8062_v53 = vpop.f32.mrf.mxu1 }
 0x4e6   : > { %v8073_v22 = vadd.f32 %v8062_v53, %v7887_v42  ;;  %v10291_v53 = vld [vmem:[%s14721_s5 + $0x38] sm:$0xff]  ;;  %v10324_v42 = vld [vmem:[%s14721_s5 + $0xe8] sm:$0xff] }
 0x4e7   : > { %v11777_v56 = vpop.f32.mrf.mxu1 }
 0x4e8   : > { %v8163_v7 = vadd.f32 %v11777_v56, %v7977_v37  ;;  %v10294_v56 = vld [vmem:[%s14721_s5 + $0x48] sm:$0xff] }
 0x4e9   : > { %v8143_v39 = vpop.f32.mrf.mxu1 }
 0x4ea   : > { %v8162_v57 = vadd.f32 %v8143_v39, %v7976_v9  ;;  %v8269_v41 = vadd.f32 %v10282_v63, %v8163_v7  ;;  %v10297_v7 = vld [vmem:[%s14721_s5 + $0x58] sm:$0xff]  ;;  %v10300_v39 = vld [vmem:[%s14721_s5 + $0x68] sm:$0xff] }
 0x4eb   : > { %v11780_v46 = vpop.f32.mrf.mxu1 }
 0x4ec   : > { %v8165_v0 = vadd.f32 %v11780_v46, %v7979_v38  ;;  %v8268_v43 = vadd.f32 %v10282_v63, %v8162_v57  ;;  %v8273_v58 = vmax.f32 %v8269_v41, 0.0  ;;  %v10303_v57 = vld [vmem:[%s14721_s5 + $0x78] sm:$0xff]  ;;  %v10305_v41 = vld [vmem:[%s14721_s5 + $0x80] sm:$0xff] }
 0x4ed   : > { %v8153_v61 = vpop.f32.mrf.mxu1 }
 0x4ee   : > { %v8271_v20 = vadd.f32 %v10282_v63, %v8165_v0  ;;  %v8164_v4 = vadd.f32 %v8153_v61, %v7978_v62  ;;  %v8272_v8 = vmax.f32 %v8268_v43, 0.0  ;;  %v10306_v62 = vld [vmem:[%s14721_s5 + $0x88] sm:$0xff]  ;;  %v10309_v0 = vld [vmem:[%s14721_s5 + $0x98] sm:$0xff] }
 0x4ef   : > { %v11785_v1 = vpop.f32.mrf.mxu1  ;;  %v10312_v61 = vld [vmem:[%s14721_s5 + $0xa8] sm:$0xff] }
 0x4f0   : > { %v8275_v12 = vmax.f32 %v8271_v20, 0.0  ;;  %v8270_v6 = vadd.f32 %v10282_v63, %v8164_v4  ;;  %v8258_v19 = vadd.f32 %v11785_v1, %v8072_v5  ;;  %v10311_v5 = vld [vmem:[%s14721_s5 + $0xa0] sm:$0xff]  ;;  %v10315_v20 = vld [vmem:[%s14721_s5 + $0xb8] sm:$0xff]  ;;  %v10314_v4 = vld [vmem:[%s14721_s5 + $0xb0] sm:$0xff] }
 0x4f1   : > { %v8238_v17 = vpop.f32.mrf.mxu1  ;;  %v10317_v1 = vld [vmem:[%s14721_s5 + $0xc0] sm:$0xff] }
 0x4f2   : > { %v8285_v27 = vmax.f32 %v8273_v58, %v8275_v12  ;;  %v8274_v23 = vmax.f32 %v8270_v6, 0.0  ;;  %v8257_v30 = vadd.f32 %v8238_v17, %v8071_v49  ;;  %v8277_v59 = vadd.f32 %v10282_v63, %v8258_v19  ;;  %v10318_v49 = vld [vmem:[%s14721_s5 + $0xc8] sm:$0xff]  ;;  %v10321_v12 = vld [vmem:[%s14721_s5 + $0xd8] sm:$0xff]  ;;  %v10320_v6 = vld [vmem:[%s14721_s5 + $0xd0] sm:$0xff] }
 0x4f3   : > { %v11788_v11 = vpop.f32.mrf.mxu1 }
 0x4f4   : > { %v8284_v50 = vmax.f32 %v8272_v8, %v8274_v23  ;;  %v8260_v52 = vadd.f32 %v11788_v11, %v8074_v21  ;;  %v8276_v47 = vadd.f32 %v10282_v63, %v8257_v30  ;;  %v8281_v51 = vmax.f32 %v8277_v59, 0.0  ;;  %v10323_v21 = vld [vmem:[%s14721_s5 + $0xe0] sm:$0xff]  ;;  %v10327_v8 = vld [vmem:[%s14721_s5 + $0xf8] sm:$0xff]  ;;  %v9537_v11 = vld [vmem:[%s14723_s7 + $0x70] sm:$0xff] }
 0x4f5   : > { %v8248_v60 = vpop.f32.mrf.mxu1  ;;  %v9538_v30 = vld [vmem:[%s14723_s7 + $0x78] sm:$0xff] }
 0x4f6   : > { %v8279_v15 = vadd.f32 %v10282_v63, %v8260_v52  ;;  %v8259_v26 = vadd.f32 %v8248_v60, %v8073_v22  ;;  %v8280_v18 = vmax.f32 %v8276_v47, 0.0  ;;  %v9536_v22 = vld [vmem:[%s14723_s7 + $0x68] sm:$0xff]  ;;  %v9534_v59 = vld [vmem:[%s14723_s7 + $0x58] sm:$0xff]  ;;  %v9533_v52 = vld [vmem:[%s14723_s7 + $0x50] sm:$0xff] }
 0x4f7   : > { %v9532_v60 = vld [vmem:[%s14723_s7 + $0x48] sm:$0xff]  ;;  %v9531_v47 = vld [vmem:[%s14723_s7 + $0x40] sm:$0xff] }
 0x4f8   : > { %v8283_v29 = vmax.f32 %v8279_v15, 0.0  ;;  %v8278_v10 = vadd.f32 %v10282_v63, %v8259_v26  ;;  %v9530_v15 = vld [vmem:[%s14723_s7 + $0x38] sm:$0xff]  ;;  %v9529_v26 = vld [vmem:[%s14723_s7 + $0x30] sm:$0xff] }
 0x4fa   : > { %v8287_v34 = vmax.f32 %v8281_v51, %v8283_v29  ;;  %v8282_v54 = vmax.f32 %v8278_v10, 0.0  ;;  %v9528_v51 = vld [vmem:[%s14723_s7 + $0x28] sm:$0xff]  ;;  %v9527_v29 = vld [vmem:[%s14723_s7 + $0x20] sm:$0xff]  ;;  %v9526_v10 = vld [vmem:[%s14723_s7 + $0x18] sm:$0xff] }
 0x4fc   : > { %v14382_v31 = vmax.f32 %v8285_v27, %v8287_v34  ;;  %v8286_v2 = vmax.f32 %v8280_v18, %v8282_v54  ;;  %v10326_v27 = vld [vmem:[%s14721_s5 + $0xf0] sm:$0xff]  ;;  %v9524_v34 = vld [vmem:[%s14723_s7 + $0x8] sm:$0xff]  ;;  %v9523_v54 = vld [vmem:[%s14723_s7] sm:$0xff] }
 0x4fd   : > { %v9525_v18 = vld [vmem:[%s14723_s7 + $0x10] sm:$0xff] }
 0x4fe   : > { %v14384_v3 = vmax.f32 %v8284_v50, %v8286_v2  ;;  %v8984_v48 = vrot.slane %v14382_v31, 1  ;;  %v9061_v43 = vrot.slane %v14382_v31, 2  ;;  %v9138_v28 = vrot.slane %v14382_v31, 3  ;;  %v9535_v50 = vld [vmem:[%s14723_s7 + $0x60] sm:$0xff] }
 0x4ff   : > { %v9215_v58 = vrot.slane %v14382_v31, 4  ;;  %v9292_v19 = vrot.slane %v14382_v31, 5  ;;  %v9369_v17 = vrot.slane %v14382_v31, 6  ;;  %v9446_v23 = vrot.slane %v14382_v31, 7 }
 0x500   : > { %v8296_v35 = vrot.slane %v14384_v3, 1  ;;  %v8445_v55 = vrot.slane %v14384_v3, 2  ;;  %v8522_v37 = vrot.slane %v14384_v3, 3  ;;  %v8599_v9 = vrot.slane %v14384_v3, 4 }
 0x501   : > { %v8676_v63 = vrot.slane %v14384_v3, 5  ;;  %v8753_v38 = vrot.slane %v14384_v3, 6  ;;  %v8830_v46 = vrot.slane %v14384_v3, 7 }
 0x502   : > { %11794 = vmatmul.mubr.msk.f32.vlgmr.msra.gmra.mxu1 %vm8297_vm4, %v8296_v35 }
 0x503   : > { %11797 = vmatpush3.msra.mxu1 %v8291_v45  ;;  %11800 = vmatprep.mubr.msk.f32.mxu1 %vm12070_vm3, %v12069_v16 }
 0x504   : > { %11798 = vmatprep.subr.mxu1 %v12069_v16 }
 0x505   : > { %11799 = vmatpush3.msra.mxu1 %v8290_v24 }
 0x506   : > { %11803 = vmatprep.subr.mxu1 %v12069_v16  ;;  %11801 = vmatmul.mubr.msk.f32.vlgmr.msra.gmra.mxu1 %vm8297_vm4, %v14384_v3 }
 0x507   : > { %11804 = vmatpush3.msra.mxu1 %v10288_v44  ;;  %11807 = vmatprep.mubr.msk.f32.mxu1 %vm12070_vm3, %v12069_v16 }
 0x508   : > { %11805 = vmatprep.subr.mxu1 %v12069_v16 }
 0x509   : > { %11806 = vmatpush3.msra.mxu1 %v10287_v36 }
 0x50a   : > { %11810 = vmatprep.subr.mxu1 %v12069_v16  ;;  %11808 = vmatmul.mubr.msk.f32.vlgmr.msra.gmra.mxu1 %vm8297_vm4, %v8445_v55 }
 0x50b   : > { %11811 = vmatpush3.msra.mxu1 %v10291_v53  ;;  %11814 = vmatprep.mubr.msk.f32.mxu1 %vm12070_vm3, %v12069_v16 }
 0x50c   : > { %11812 = vmatprep.subr.mxu1 %v12069_v16 }
 0x50d   : > { %11813 = vmatpush3.msra.mxu1 %v10290_v25 }
 0x50e   : > { %11817 = vmatprep.subr.mxu1 %v12069_v16  ;;  %11815 = vmatmul.mubr.msk.f32.vlgmr.msra.gmra.mxu1 %vm8297_vm4, %v8522_v37 }
 0x50f   : > { %11818 = vmatpush3.msra.mxu1 %v10294_v56  ;;  %11821 = vmatprep.mubr.msk.f32.mxu1 %vm12070_vm3, %v12069_v16 }
 0x510   : > { %11819 = vmatprep.subr.mxu1 %v12069_v16 }
 0x511   : > { %11820 = vmatpush3.msra.mxu1 %v10293_v40 }
 0x512   : > { %11824 = vmatprep.subr.mxu1 %v12069_v16  ;;  %11822 = vmatmul.mubr.msk.f32.vlgmr.msra.gmra.mxu1 %vm8297_vm4, %v8599_v9 }
 0x513   : > { %11825 = vmatpush3.msra.mxu1 %v10297_v7  ;;  %11828 = vmatprep.mubr.msk.f32.mxu1 %vm12070_vm3, %v12069_v16 }
 0x514   : > { %11826 = vmatprep.subr.mxu1 %v12069_v16 }
 0x515   : > { %11827 = vmatpush3.msra.mxu1 %v10296_v13 }
 0x516   : > { %11831 = vmatprep.subr.mxu1 %v12069_v16  ;;  %11829 = vmatmul.mubr.msk.f32.vlgmr.msra.gmra.mxu1 %vm8297_vm4, %v8676_v63 }
 0x517   : > { %11832 = vmatpush3.msra.mxu1 %v10300_v39  ;;  %11835 = vmatprep.mubr.msk.f32.mxu1 %vm12070_vm3, %v12069_v16 }
 0x518   : > { %11833 = vmatprep.subr.mxu1 %v12069_v16 }
 0x519   : > { %11834 = vmatpush3.msra.mxu1 %v10299_v33 }
 0x51a   : > { %11838 = vmatprep.subr.mxu1 %v12069_v16  ;;  %11836 = vmatmul.mubr.msk.f32.vlgmr.msra.gmra.mxu1 %vm8297_vm4, %v8753_v38 }
 0x51b   : > { %11839 = vmatpush3.msra.mxu1 %v10303_v57  ;;  %11842 = vmatprep.mubr.msk.f32.mxu1 %vm12070_vm3, %v12069_v16 }
 0x51c   : > { %11840 = vmatprep.subr.mxu1 %v12069_v16 }
 0x51d   : > { %11841 = vmatpush3.msra.mxu1 %v10302_v14 }
 0x51e   : > { %11845 = vmatprep.subr.mxu1 %v12069_v16  ;;  %11843 = vmatmul.mubr.msk.f32.vlgmr.msra.gmra.mxu1 %vm8297_vm4, %v8830_v46 }
 0x51f   : > { %11846 = vmatpush3.msra.mxu1 %v10306_v62  ;;  %11849 = vmatprep.mubr.msk.f32.mxu1 %vm12070_vm3, %v12069_v16 }
 0x520   : > { %11847 = vmatprep.subr.mxu1 %v12069_v16 }
 0x521   : > { %11848 = vmatpush3.msra.mxu1 %v10305_v41 }
 0x522   : > { %11852 = vmatprep.subr.mxu1 %v12069_v16  ;;  %11850 = vmatmul.mubr.msk.f32.vlgmr.msra.gmra.mxu1 %vm8297_vm4, %v14382_v31 }
 0x523   : > { %11853 = vmatpush3.msra.mxu1 %v10309_v0  ;;  %11856 = vmatprep.mubr.msk.f32.mxu1 %vm12070_vm3, %v12069_v16 }
 0x524   : > { %11854 = vmatprep.subr.mxu1 %v12069_v16 }
 0x525   : > { %11855 = vmatpush3.msra.mxu1 %v10308_v32 }
 0x526   : > { %11859 = vmatprep.subr.mxu1 %v12069_v16  ;;  %11857 = vmatmul.mubr.msk.f32.vlgmr.msra.gmra.mxu1 %vm8297_vm4, %v8984_v48 }
 0x527   : > { %11860 = vmatpush3.msra.mxu1 %v10312_v61  ;;  %11863 = vmatprep.mubr.msk.f32.mxu1 %vm12070_vm3, %v12069_v16 }
 0x528   : > { %11861 = vmatprep.subr.mxu1 %v12069_v16 }
 0x529   : > { %11862 = vmatpush3.msra.mxu1 %v10311_v5 }
 0x52a   : > { %11866 = vmatprep.subr.mxu1 %v12069_v16  ;;  %11864 = vmatmul.mubr.msk.f32.vlgmr.msra.gmra.mxu1 %vm8297_vm4, %v9061_v43 }
 0x52b   : > { %11867 = vmatpush3.msra.mxu1 %v10315_v20  ;;  %11870 = vmatprep.mubr.msk.f32.mxu1 %vm12070_vm3, %v12069_v16 }
 0x52c   : > { %11868 = vmatprep.subr.mxu1 %v12069_v16 }
 0x52d   : > { %11869 = vmatpush3.msra.mxu1 %v10314_v4 }
 0x52e   : > { %11873 = vmatprep.subr.mxu1 %v12069_v16  ;;  %11871 = vmatmul.mubr.msk.f32.vlgmr.msra.gmra.mxu1 %vm8297_vm4, %v9138_v28 }
 0x52f   : > { %11874 = vmatpush3.msra.mxu1 %v10318_v49  ;;  %11877 = vmatprep.mubr.msk.f32.mxu1 %vm12070_vm3, %v12069_v16 }
 0x530   : > { %11875 = vmatprep.subr.mxu1 %v12069_v16 }
 0x531   : > { %11876 = vmatpush3.msra.mxu1 %v10317_v1 }
 0x532   : > { %11880 = vmatprep.subr.mxu1 %v12069_v16  ;;  %11878 = vmatmul.mubr.msk.f32.vlgmr.msra.gmra.mxu1 %vm8297_vm4, %v9215_v58 }
 0x533   : > { %11881 = vmatpush3.msra.mxu1 %v10321_v12  ;;  %11884 = vmatprep.mubr.msk.f32.mxu1 %vm12070_vm3, %v12069_v16 }
 0x534   : > { %11882 = vmatprep.subr.mxu1 %v12069_v16 }
 0x535   : > { %11883 = vmatpush3.msra.mxu1 %v10320_v6 }
 0x536   : > { %11887 = vmatprep.subr.mxu1 %v12069_v16  ;;  %11885 = vmatmul.mubr.msk.f32.vlgmr.msra.gmra.mxu1 %vm8297_vm4, %v9292_v19 }
 0x537   : > { %11888 = vmatpush3.msra.mxu1 %v10324_v42  ;;  %11891 = vmatprep.mubr.msk.f32.mxu1 %vm12070_vm3, %v12069_v16 }
 0x538   : > { %11889 = vmatprep.subr.mxu1 %v12069_v16 }
 0x539   : > { %11890 = vmatpush3.msra.mxu1 %v10323_v21 }
 0x53a   : > { %11894 = vmatprep.subr.mxu1 %v12069_v16  ;;  %11892 = vmatmul.mubr.msk.f32.vlgmr.msra.gmra.mxu1 %vm8297_vm4, %v9369_v17 }
 0x53b   : > { %11895 = vmatpush3.msra.mxu1 %v10327_v8  ;;  %11898 = vmatprep.mubr.msk.f32.mxu1 %vm12070_vm3, %v12069_v16 }
 0x53c   : > { %11896 = vmatprep.subr.mxu1 %v12069_v16 }
 0x53d   : > { %11897 = vmatpush3.msra.mxu1 %v10326_v27  ;;  %v9520_v27 = vld [vmem:[%s14722_s6] sm:$0x1] }
 0x53e   : > { %11899 = vmatmul.mubr.msk.f32.vlgmr.msra.gmra.mxu1 %vm8297_vm4, %v9446_v23  ;;  %11901 = vmatprep.subr.mxu1 %v12069_v16 }
 0x53f   : > { %11933 = vmatprep.mubr.msk.f32.mxu1 %vm12070_vm3, %v12069_v16  ;;  %11902 = vmatpush3.msra.mxu1 %v9538_v30 }
 0x540   : > { %11903 = vmatprep.subr.mxu1 %v12069_v16 }
 0x541   : > { %11904 = vmatpush3.msra.mxu1 %v9537_v11 }
 0x542   : > { %11905 = vmatprep.subr.mxu1 %v12069_v16 }
 0x543   : > { %11906 = vmatpush3.msra.mxu1 %v9536_v22 }
 0x544   : > { %11907 = vmatprep.subr.mxu1 %v12069_v16 }
 0x545   : > { %11908 = vmatpush3.msra.mxu1 %v9535_v50  ;;  %v9618_v50 = vld [vmem:[%s14725_s9 + $0x38] sm:$0xff] }
 0x546   : > { %11909 = vmatprep.subr.mxu1 %v12069_v16 }
 0x547   : > { %11910 = vmatpush3.msra.mxu1 %v9534_v59  ;;  %v9617_v59 = vld [vmem:[%s14725_s9 + $0x30] sm:$0xff] }
 0x548   : > { %11911 = vmatprep.subr.mxu1 %v12069_v16 }
 0x549   : > { %11912 = vmatpush3.msra.mxu1 %v9533_v52  ;;  %v9616_v52 = vld [vmem:[%s14725_s9 + $0x28] sm:$0xff] }
 0x54a   : > { %11913 = vmatprep.subr.mxu1 %v12069_v16 }
 0x54b   : > { %11914 = vmatpush3.msra.mxu1 %v9532_v60  ;;  %v9615_v60 = vld [vmem:[%s14725_s9 + $0x20] sm:$0xff] }
 0x54c   : > { %11915 = vmatprep.subr.mxu1 %v12069_v16 }
 0x54d   : > { %11916 = vmatpush3.msra.mxu1 %v9531_v47  ;;  %v9614_v47 = vld [vmem:[%s14725_s9 + $0x18] sm:$0xff] }
 0x54e   : > { %11917 = vmatprep.subr.mxu1 %v12069_v16 }
 0x54f   : > { %11918 = vmatpush3.msra.mxu1 %v9530_v15  ;;  %v9613_v15 = vld [vmem:[%s14725_s9 + $0x10] sm:$0xff] }
 0x550   : > { %11919 = vmatprep.subr.mxu1 %v12069_v16 }
 0x551   : > { %11920 = vmatpush3.msra.mxu1 %v9529_v26  ;;  %v9612_v26 = vld [vmem:[%s14725_s9 + $0x8] sm:$0xff] }
 0x552   : > { %11921 = vmatprep.subr.mxu1 %v12069_v16 }
 0x553   : > { %11922 = vmatpush3.msra.mxu1 %v9528_v51  ;;  %v9611_v51 = vld [vmem:[%s14725_s9] sm:$0xff] }
 0x554   : > { %11923 = vmatprep.subr.mxu1 %v12069_v16 }
 0x555   : > { %11924 = vmatpush3.msra.mxu1 %v9527_v29  ;;  %v9539_v29 = vld [vmem:[%s14724_s8] sm:$0x1] }
 0x556   : > { %11925 = vmatprep.subr.mxu1 %v12069_v16 }
 0x557   : > { %11926 = vmatpush3.msra.mxu1 %v9526_v10 }
 0x558   : > { %11927 = vmatprep.subr.mxu1 %v12069_v16 }
 0x559   : > { %11928 = vmatpush3.msra.mxu1 %v9525_v18 }
 0x55a   : > { %11929 = vmatprep.subr.mxu1 %v12069_v16 }
 0x55b   : > { %11930 = vmatpush3.msra.mxu1 %v9524_v34 }
 0x55c   : > { %11931 = vmatprep.subr.mxu1 %v12069_v16 }
 0x55d   : > { %11932 = vmatpush3.msra.mxu1 %v9523_v54 }
 0x55e   : > { %11936 = vmatprep.subr.mxu1 %v12069_v16 }
 0x5c2   : > { %v8366_v31 = vpop.f32.mrf.mxu1 }
 0x5c4   : > { %v11795_v2 = vpop.f32.mrf.mxu1 }
 0x5c6   : > { %v8438_v3 = vpop.f32.mrf.mxu1 }
 0x5c7   : > { %v8439_v63 = vadd.f32 %v8438_v3, %v8366_v31  ;;  %v9619_v31 = vld [vmem:[%s14726_s10] sm:$0x1] }
 0x5c8   : > { %v11802_v35 = vpop.f32.mrf.mxu1 }
 0x5ca   : > { %v8514_v45 = vpop.f32.mrf.mxu1 }
 0x5cb   : > { %v8518_v33 = vadd.f32 %v8514_v45, %v8439_v63 }
 0x5cc   : > { %v11809_v24 = vpop.f32.mrf.mxu1 }
 0x5ce   : > { %v8591_v44 = vpop.f32.mrf.mxu1 }
 0x5cf   : > { %v8595_v57 = vadd.f32 %v8591_v44, %v8518_v33 }
 0x5d0   : > { %v11816_v36 = vpop.f32.mrf.mxu1 }
 0x5d2   : > { %v8668_v55 = vpop.f32.mrf.mxu1 }
 0x5d3   : > { %v8672_v46 = vadd.f32 %v8668_v55, %v8595_v57 }
 0x5d4   : > { %v11823_v53 = vpop.f32.mrf.mxu1 }
 0x5d6   : > { %v8745_v25 = vpop.f32.mrf.mxu1 }
 0x5d7   : > { %v8749_v41 = vadd.f32 %v8745_v25, %v8672_v46 }
 0x5d8   : > { %v11830_v37 = vpop.f32.mrf.mxu1 }
 0x5da   : > { %v8822_v56 = vpop.f32.mrf.mxu1 }
 0x5db   : > { %v8826_v32 = vadd.f32 %v8822_v56, %v8749_v41 }
 0x5dc   : > { %v11837_v40 = vpop.f32.mrf.mxu1 }
 0x5de   : > { %v8899_v9 = vpop.f32.mrf.mxu1 }
 0x5df   : > { %v8903_v61 = vadd.f32 %v8899_v9, %v8826_v32 }
 0x5e0   : > { %v11844_v7 = vpop.f32.mrf.mxu1 }
 0x5e2   : > { %v8976_v13 = vpop.f32.mrf.mxu1 }
 0x5e3   : > { %v8980_v43 = vadd.f32 %v8976_v13, %v8903_v61 }
 0x5e4   : > { %v11851_v39 = vpop.f32.mrf.mxu1 }
 0x5e6   : > { %v9053_v38 = vpop.f32.mrf.mxu1 }
 0x5e7   : > { %v9057_v4 = vadd.f32 %v9053_v38, %v8980_v43 }
 0x5e8   : > { %v11858_v14 = vpop.f32.mrf.mxu1 }
 0x5ea   : > { %v9130_v62 = vpop.f32.mrf.mxu1 }
 0x5eb   : > { %v9134_v49 = vadd.f32 %v9130_v62, %v9057_v4 }
 0x5ec   : > { %v11865_v0 = vpop.f32.mrf.mxu1 }
 0x5ee   : > { %v9207_v48 = vpop.f32.mrf.mxu1 }
 0x5ef   : > { %v9211_v58 = vadd.f32 %v9207_v48, %v9134_v49 }
 0x5f0   : > { %v11872_v5 = vpop.f32.mrf.mxu1 }
 0x5f2   : > { %v9284_v20 = vpop.f32.mrf.mxu1 }
 0x5f3   : > { %v9288_v6 = vadd.f32 %v9284_v20, %v9211_v58 }
 0x5f4   : > { %v11879_v28 = vpop.f32.mrf.mxu1 }
 0x5f6   : > { %v9361_v1 = vpop.f32.mrf.mxu1 }
 0x5f7   : > { %v9365_v42 = vadd.f32 %v9361_v1, %v9288_v6 }
 0x5f8   : > { %v11886_v12 = vpop.f32.mrf.mxu1 }
 0x5fa   : > { %v9438_v19 = vpop.f32.mrf.mxu1 }
 0x5fb   : > { %v9442_v17 = vadd.f32 %v9438_v19, %v9365_v42 }
 0x5fc   : > { %v11893_v21 = vpop.f32.mrf.mxu1 }
 0x5fe   : > { %v9515_v8 = vpop.f32.mrf.mxu1 }
 0x5ff   : > { %v9519_v23 = vadd.f32 %v9515_v8, %v9442_v17 }
 0x600   : > { %v11900_v30 = vpop.f32.mrf.mxu1 }
 0x601   : > { %v9521_v11 = vadd.f32 %v9520_v27, %v9519_v23 }
 0x603   : > { %v9522_v22 = vmax.f32 %v9521_v11, 0.0 }
 0x605   : > { %11934 = vmatmul.mubr.f32.vlgmr.msra.gmra.mxu1 %v9522_v22 }
 0x606   : > { %11937 = vmatpush3.msra.mxu1 %v9618_v50  ;;  %11952 = vmatprep.mubr.msk.f32.mxu1 %vm12070_vm3, %v12069_v16 }
 0x607   : > { %11938 = vmatprep.subr.mxu1 %v12069_v16 }
 0x608   : > { %11939 = vmatpush3.msra.mxu1 %v9617_v59 }
 0x609   : > { %11940 = vmatprep.subr.mxu1 %v12069_v16 }
 0x60a   : > { %11941 = vmatpush3.msra.mxu1 %v9616_v52 }
 0x60b   : > { %11942 = vmatprep.subr.mxu1 %v12069_v16 }
 0x60c   : > { %11943 = vmatpush3.msra.mxu1 %v9615_v60 }
 0x60d   : > { %11944 = vmatprep.subr.mxu1 %v12069_v16 }
 0x60e   : > { %11945 = vmatpush3.msra.mxu1 %v9614_v47 }
 0x60f   : > { %11946 = vmatprep.subr.mxu1 %v12069_v16 }
 0x610   : > { %11947 = vmatpush3.msra.mxu1 %v9613_v15 }
 0x611   : > { %11948 = vmatprep.subr.mxu1 %v12069_v16 }
 0x612   : > { %11949 = vmatpush3.msra.mxu1 %v9612_v26 }
 0x613   : > { %11950 = vmatprep.subr.mxu1 %v12069_v16 }
 0x614   : > { %11951 = vmatpush3.msra.mxu1 %v9611_v51 }
 0x6c5   : > { %v9606_v10 = vpop.f32.mrf.mxu1 }
 0x6c6   : > { %v9607_v18 = vadd.f32 %v9606_v10, %v9539_v29 }
 0x6c7   : > { %v11935_v34 = vpop.f32.mrf.mxu1 }
 0x6c8   : > { %v9610_v54 = vmax.f32 %v9607_v18, 0.0 }
 0x6ca   : > { %11953 = vmatmul.mubr.msk.f32.vlgmr.msra.gmra.mxu1 %vm9620_vm5, %v9610_v54 }
 0x78a   : > { %v9690_v16 = vpop.f32.mrf.mxu1 }
 0x78b   : > { %v9691_v2 = vadd.f32 %v9690_v16, %v9619_v31 }
 0x78c   : > { %v11954_v3 = vpop.f32.mrf.mxu1 }
 0x78d   : > { %9694 = vst [vmem:[%s378_s30] sm:$0x1] %v9691_v2 }
 0x78e   : > { %12020 = shalt.err (!%p12017_p3)
}
 0x78f   : > { %s12021_s29 = scalar_lea.hbm %s14681_s15, 16  ;;  %s12025_s13 = scalar_lea.hbm %s14727_s11, 32 }
 0x790   : > { %p12022_p4 = scmp.ne.s32.totalorder %s14681_s15, %s12021_s29  ;;  %p12026_p9 = scmp.lt.s32.totalorder %s14681_s15, %s14727_s11 }
 0x791   : > { %p12027_p10 = scmp.lt.s32.totalorder %s12025_s13, %s12021_s29 }
 0x792   : > { %p12023_p7 = pnand %p12022_p4, %p12170_p5 }
 0x793   : > { %p12028_p11 = por %p12027_p10, %p12026_p9 }
 0x794   : > { %p12024_p8 = pneg %p12023_p7 }
 0x796   : > { %p12029_p12 = pnand %p12028_p11, %p12024_p8 }
 0x798   : > { %12032 = shalt.err (!%p12029_p12)
}
 0x799   : > { %11964 = dma.vmem_to_hbm [thread:$0]  (%p12170_p5), %s9709_s12, 16, %s14681_s15, %s9696_s16  }
 0x79a PF: > { %p11970_p13 = scmp.ge.s32.totalorder %s12067_s20, 2  ;;  %s9720_s0 = sand.u32 1, %s12055_s17  }
 0x79b   : > { %s9721_s21 = scalar_lea.sflag [#allocation3], %s9720_s0 }
 0x79c   : > { %p11967_p0 = pnand %p11970_p13, %p12174_p6 }
 0x79e   : > { %p11968_p1 = pneg %p11967_p0 }
 0x7a0   : > { %12050 = dma.done.wait (%p11968_p1), %s9721_s21, 16  }
 0x7a1   : > { %12052 = vsyncadd (%p11968_p1), %s9721_s21, 4294967280  ;;  %p21_p2 = scmp.ge.s32.totalorder %s12157_s23, 4   ;;  %s15027_s17 = smov %s12059_s18 }
 0x7a2   : > { %s15028_s18 = smov %s12063_s19  ;;  %s15029_s19 = smov %s12168_s26 }
 0x7a3   : > { %s15030_s20 = smov %s12157_s23  ;;  %23 = sbr.rel (!%p21_p2) target bundleno = 5 (0x5), region = 138 }
 0x7a8   :  { %9725 = vsyncpa [#allocation3], 1 }
 0x7a9   :  { %9727 = vsyncpa [#allocation3 + $0x1], 1 }

</bundles_post_ra>
